<compile_context>
chip_gen: v7x
topology: tpu7x:2x2x1
jax: 0.10.0
libtpu: 0.0.40
codegen_flags: <defaults>
</compile_context>

<pallas_src>
import math
import jax
import jax.numpy as jnp
from jax import lax
from jax.experimental import pallas as pl
from jax.experimental.pallas import tpu as pltpu

D_MODEL = 128
N_HEADS = 4
HEAD_DIM = D_MODEL // N_HEADS
D_FF = 2048          # nn.TransformerEncoderLayer default dim_feedforward
FF_CHUNK = 512       # D_FF tiling (keeps hmid live footprint small)
EPS = 1e-5           # default layer_norm_eps
OUT_DIM = 3
OUT_PAD = 128        # lane-dense padded decoder output width
NEG_INF = -1e30      # finite "masked" value (safe: causal diag never masked)


def _layernorm(x, gamma, beta):
    mu = jnp.mean(x, axis=-1, keepdims=True)
    var = jnp.mean((x - mu) ** 2, axis=-1, keepdims=True)
    return (x - mu) * lax.rsqrt(var + EPS) * gamma + beta


def vanilla_kernel(src_ref,
                   wemb_ref, bemb_ref,
                   wqkv_ref, bqkv_ref,
                   wo_ref, bo_ref,
                   g1_ref, be1_ref,
                   w1_ref, b1_ref, w2_ref, b2_ref,
                   g2_ref, be2_ref,
                   wd_ref, bd_ref,
                   out_ref):
    M, Fp = src_ref.shape                      # flattened (b_tile*S, F_pad), bf16
    bt = out_ref.shape[0]
    S = M // bt
    bf16 = jnp.bfloat16

    # ---- Embedding Linear (bf16 MXU inputs, f32 accumulation) ----
    x = jnp.dot(src_ref[...], wemb_ref[...],
                preferred_element_type=jnp.float32) + bemb_ref[...]        # (M, D)

    # ---- Fused Q/K/V projection: one (D, 3D) matmul ----
    qkv = jnp.dot(x.astype(bf16), wqkv_ref[...],
                  preferred_element_type=jnp.float32) + bqkv_ref[...]      # (M, 3D)
    qkv = qkv.reshape(bt, S, 3 * D_MODEL).astype(bf16)

    # Causal mask built in-kernel: row >= col -> 0, else -1e30 (no HBM stream).
    row = lax.broadcasted_iota(jnp.int32, (S, S), 0)
    col = lax.broadcasted_iota(jnp.int32, (S, S), 1)
    mask = jnp.where(row >= col, 0.0, NEG_INF).astype(jnp.float32)         # (S, S)

    # ---- Multi-head self-attention, heads folded into the einsum batch dim ----
    # Head h of q/k/v is a 32-lane slice; stacking along the (major) batch axis
    # is free, giving (H*bt, S, hd) and ONE batched matmul per q*k / p*v.
    def head_batch(base):
        return jnp.concatenate(
            [qkv[:, :, base + h * HEAD_DIM: base + (h + 1) * HEAD_DIM]
             for h in range(N_HEADS)], axis=0)                             # (H*bt, S, hd)

    q = head_batch(0)
    k = head_batch(D_MODEL)
    v = head_batch(2 * D_MODEL)

    scale = 1.0 / math.sqrt(HEAD_DIM)
    s = jnp.einsum('bqd,bkd->bqk', q, k,
                   preferred_element_type=jnp.float32) * scale + mask      # (H*bt, S, S)
    m = jnp.max(s, axis=-1, keepdims=True)
    e = jnp.exp(s - m)
    p = e * pl.reciprocal(jnp.sum(e, axis=-1, keepdims=True), approx=True)
    ctx = jnp.einsum('bqk,bkd->bqd', p.astype(bf16), v,
                     preferred_element_type=jnp.float32)                   # (H*bt, S, hd)

    # Lane-concat heads back to (bt, S, D) and run ONE K=128 out-projection.
    ctx_cat = jnp.concatenate(
        [ctx[h * bt:(h + 1) * bt] for h in range(N_HEADS)], axis=-1)       # (bt, S, D)
    attn = jnp.dot(ctx_cat.reshape(M, D_MODEL).astype(bf16), wo_ref[...],
                   preferred_element_type=jnp.float32) + bo_ref[...]       # (M, D)

    x = _layernorm(x + attn, g1_ref[...], be1_ref[...])                    # norm1 (post-norm)

    # ---- Feed-forward (relu), tiled over D_FF to bound the live intermediate ----
    xb = x.astype(bf16)
    ff = jnp.zeros((M, D_MODEL), jnp.float32)
    for c in range(0, D_FF, FF_CHUNK):                                     # static unroll (4)
        h1 = jnp.dot(xb, w1_ref[:, c:c + FF_CHUNK],
                     preferred_element_type=jnp.float32) + b1_ref[:, c:c + FF_CHUNK]
        h1 = jnp.maximum(h1, 0.0)
        ff = ff + jnp.dot(h1.astype(bf16), w2_ref[c:c + FF_CHUNK, :],
                          preferred_element_type=jnp.float32)
    ff = ff + b2_ref[...]

    x = _layernorm(x + ff, g2_ref[...], be2_ref[...])                      # norm2 (post-norm)

    # ---- Decoder only on the LAST token, lane-dense padded (bt, 128) output ----
    x_last = x.reshape(bt, S, D_MODEL)[:, S - 1, :]                        # (bt, D)
    out_ref[...] = jnp.dot(x_last.astype(bf16), wd_ref[...],
                           preferred_element_type=jnp.float32) + bd_ref[...]


def _full_spec(shape):
    n = len(shape)
    return pl.BlockSpec(tuple(shape), lambda b, _n=n: (0,) * _n)


def _prepare_weights(params, f_in, f_pad):
    """Fuse QKV, pad wemb/wd, and cast matmul weights to bf16 (biases stay f32)."""
    bf = lambda w: w.astype(jnp.bfloat16)
    wemb = jnp.pad(params["wemb"], ((0, f_pad - f_in), (0, 0)))
    wqkv = jnp.concatenate([params["wq"], params["wk"], params["wv"]], axis=1)
    bqkv = jnp.concatenate([params["bq"], params["bk"], params["bv"]], axis=1)
    wd = jnp.pad(params["wd"], ((0, 0), (0, OUT_PAD - OUT_DIM)))
    bd = jnp.pad(params["bd"], ((0, 0), (0, OUT_PAD - OUT_DIM)))
    return (
        bf(wemb), params["bemb"],
        bf(wqkv), bqkv,
        bf(params["wo"]), params["bo"],
        params["g1"], params["be1"],
        bf(params["w1"]), params["b1"],
        bf(params["w2"]), params["b2"],
        params["g2"], params["be2"],
        bf(wd), bd,
    )


def _pick_b_tile(B, S):
    """Target ~512 flattened rows per grid step; keep b_tile a multiple of 16
    whenever the grid has >1 step (layout-clean blocks), and give batches big
    enough to split >= 2 steps so both v7x TensorCores stay busy."""
    target = max(16, min(256, ((512 // max(S, 1)) // 16) * 16))
    if B <= target:
        return B                              # single step: block dims == array dims
    if B < 2 * target:
        return max(16, (pl.cdiv(B, 2) // 16) * 16)
    return target


def vanilla_forward(src, params, b_tile=None):
    B, S, F_in = src.shape
    if b_tile is None:
        b_tile = _pick_b_tile(B, S)
    b_pad = pl.cdiv(B, b_tile) * b_tile

    # Pad the tiny input-feature dim to a sublane-friendly width.
    f_pad = max(8, ((F_in + 7) // 8) * 8)

    # bf16, zero-padded, pre-flattened (batch*seq, feat) input: halves the only
    # per-step HBM->VMEM input stream and removes the in-kernel src reshape.
    src_p = jnp.pad(src, ((0, b_pad - B), (0, 0), (0, f_pad - F_in)))
    src_p = src_p.astype(jnp.bfloat16).reshape(b_pad * S, f_pad)

    weight_args = _prepare_weights(params, F_in, f_pad)

    in_specs = [pl.BlockSpec((b_tile * S, f_pad), lambda b: (b, 0))]
    in_specs += [_full_spec(w.shape) for w in weight_args]

    out = pl.pallas_call(
        vanilla_kernel,
        out_shape=jax.ShapeDtypeStruct((b_pad, OUT_PAD), jnp.float32),
        grid_spec=pltpu.PrefetchScalarGridSpec(
            num_scalar_prefetch=0,
            grid=(b_pad // b_tile,),
            in_specs=in_specs,
            out_specs=pl.BlockSpec((b_tile, OUT_PAD), lambda b: (b, 0)),
        ),
        compiler_params=pltpu.CompilerParams(
            dimension_semantics=("parallel",),
            vmem_limit_bytes=32 * 1024 * 1024),
    )(src_p, *weight_args)

    return out[:B, :OUT_DIM]                       # matches output[:, -1, :]


def init_params(key, input_feature_size):
    ks = jax.random.split(key, 16)

    def uni(k, shape, a):
        return jax.random.uniform(k, shape, jnp.float32, -a, a)

    d = D_MODEL
    p = {}
    # embedding Linear(input_feature_size -> d): weights stored pre-transposed (in, out)
    a_e = 1.0 / math.sqrt(input_feature_size)
    p["wemb"] = uni(ks[0], (input_feature_size, d), a_e)
    p["bemb"] = uni(ks[1], (1, d), a_e)
    # multi-head attention in/out projections
    a_d = 1.0 / math.sqrt(d)
    p["wq"] = uni(ks[2], (d, d), a_d); p["bq"] = jnp.zeros((1, d), jnp.float32)
    p["wk"] = uni(ks[3], (d, d), a_d); p["bk"] = jnp.zeros((1, d), jnp.float32)
    p["wv"] = uni(ks[4], (d, d), a_d); p["bv"] = jnp.zeros((1, d), jnp.float32)
    p["wo"] = uni(ks[5], (d, d), a_d); p["bo"] = uni(ks[6], (1, d), a_d)
    # layernorms
    p["g1"] = jnp.ones((1, d), jnp.float32); p["be1"] = jnp.zeros((1, d), jnp.float32)
    p["g2"] = jnp.ones((1, d), jnp.float32); p["be2"] = jnp.zeros((1, d), jnp.float32)
    # feed-forward
    p["w1"] = uni(ks[7], (d, D_FF), a_d); p["b1"] = uni(ks[8], (1, D_FF), a_d)
    a_f = 1.0 / math.sqrt(D_FF)
    p["w2"] = uni(ks[9], (D_FF, d), a_f); p["b2"] = uni(ks[10], (1, d), a_f)
    # decoder Linear(d -> 3): matches init_weights (uniform(-0.1, 0.1), zero bias)
    p["wd"] = uni(ks[11], (d, OUT_DIM), 0.1)
    p["bd"] = jnp.zeros((1, OUT_DIM), jnp.float32)
    return p


if __name__ == "__main__":
    # Small, deterministic example consistent with the module's forward:
    # src: (batch=2, seq=8, input_feature_size=4)
    key = jax.random.PRNGKey(0)
    k_x, k_p = jax.random.split(key)
    B, S, F_in = 2, 8, 4
    src = jax.random.normal(k_x, (B, S, F_in), jnp.float32)
    params = init_params(k_p, F_in)

    out = vanilla_forward(src, params)     # (B, 3)
    jax.block_until_ready(out)
    assert out.shape == (B, OUT_DIM) and out.dtype == jnp.float32
    assert bool(jnp.all(jnp.isfinite(out)))
    print("KERNEL_OK")
</pallas_src>

<mosaic_0001>
module attributes {stable_mosaic.version = 11 : i64} {
  func.func @vanilla_kernel(%arg0: i32, %arg1: memref<16x8xbf16, #tpu.memory_space<vmem>>, %arg2: memref<8x128xbf16, #tpu.memory_space<vmem>>, %arg3: memref<1x128xf32, #tpu.memory_space<vmem>>, %arg4: memref<128x384xbf16, #tpu.memory_space<vmem>>, %arg5: memref<1x384xf32, #tpu.memory_space<vmem>>, %arg6: memref<128x128xbf16, #tpu.memory_space<vmem>>, %arg7: memref<1x128xf32, #tpu.memory_space<vmem>>, %arg8: memref<1x128xf32, #tpu.memory_space<vmem>>, %arg9: memref<1x128xf32, #tpu.memory_space<vmem>>, %arg10: memref<128x2048xbf16, #tpu.memory_space<vmem>>, %arg11: memref<1x2048xf32, #tpu.memory_space<vmem>>, %arg12: memref<2048x128xbf16, #tpu.memory_space<vmem>>, %arg13: memref<1x128xf32, #tpu.memory_space<vmem>>, %arg14: memref<1x128xf32, #tpu.memory_space<vmem>>, %arg15: memref<1x128xf32, #tpu.memory_space<vmem>>, %arg16: memref<128x128xbf16, #tpu.memory_space<vmem>>, %arg17: memref<1x128xf32, #tpu.memory_space<vmem>>, %arg18: memref<2x128xf32, #tpu.memory_space<vmem>>) attributes {dimension_semantics = [#tpu.dimension_semantics<parallel>], iteration_bounds = array<i64: 1>, scalar_prefetch = 0 : i64, scratch_operands = 0 : i64, tpu.core_type = #tpu.core_type<tc>, window_params = [{transform_indices = @transform_0, window_bounds = array<i64: 16, 8>}, {pipeline_mode = #tpu.pipeline_mode<synchronous>, transform_indices = @transform_1, window_bounds = array<i64: 8, 128>}, {pipeline_mode = #tpu.pipeline_mode<synchronous>, transform_indices = @transform_2, window_bounds = array<i64: 1, 128>}, {pipeline_mode = #tpu.pipeline_mode<synchronous>, transform_indices = @transform_3, window_bounds = array<i64: 128, 384>}, {pipeline_mode = #tpu.pipeline_mode<synchronous>, transform_indices = @transform_4, window_bounds = array<i64: 1, 384>}, {pipeline_mode = #tpu.pipeline_mode<synchronous>, transform_indices = @transform_5, window_bounds = array<i64: 128, 128>}, {pipeline_mode = #tpu.pipeline_mode<synchronous>, transform_indices = @transform_6, window_bounds = array<i64: 1, 128>}, {pipeline_mode = #tpu.pipeline_mode<synchronous>, transform_indices = @transform_7, window_bounds = array<i64: 1, 128>}, {pipeline_mode = #tpu.pipeline_mode<synchronous>, transform_indices = @transform_8, window_bounds = array<i64: 1, 128>}, {pipeline_mode = #tpu.pipeline_mode<synchronous>, transform_indices = @transform_9, window_bounds = array<i64: 128, 2048>}, {pipeline_mode = #tpu.pipeline_mode<synchronous>, transform_indices = @transform_10, window_bounds = array<i64: 1, 2048>}, {pipeline_mode = #tpu.pipeline_mode<synchronous>, transform_indices = @transform_11, window_bounds = array<i64: 2048, 128>}, {pipeline_mode = #tpu.pipeline_mode<synchronous>, transform_indices = @transform_12, window_bounds = array<i64: 1, 128>}, {pipeline_mode = #tpu.pipeline_mode<synchronous>, transform_indices = @transform_13, window_bounds = array<i64: 1, 128>}, {pipeline_mode = #tpu.pipeline_mode<synchronous>, transform_indices = @transform_14, window_bounds = array<i64: 1, 128>}, {pipeline_mode = #tpu.pipeline_mode<synchronous>, transform_indices = @transform_15, window_bounds = array<i64: 128, 128>}, {pipeline_mode = #tpu.pipeline_mode<synchronous>, transform_indices = @transform_16, window_bounds = array<i64: 1, 128>}, {transform_indices = @transform_17, window_bounds = array<i64: 2, 128>}]} {
    %c0 = arith.constant 0 : index
    %c0_0 = arith.constant 0 : index
    %0 = vector.load %arg1[%c0, %c0_0] : memref<16x8xbf16, #tpu.memory_space<vmem>>, vector<16x8xbf16>
    %c0_1 = arith.constant 0 : index
    %c0_2 = arith.constant 0 : index
    %1 = vector.load %arg2[%c0_1, %c0_2] : memref<8x128xbf16, #tpu.memory_space<vmem>>, vector<8x128xbf16>
    %cst = arith.constant dense<0.000000e+00> : vector<16x128xf32>
    %2 = tpu.matmul %0, %1, %cst {dimension_numbers = #tpu.dot_dimension_numbers<[1], [0], [0], [1], [0, 0, 1, 1], [], []>} : vector<16x8xbf16>, vector<8x128xbf16>, vector<16x128xf32> -> vector<16x128xf32>
    %c0_3 = arith.constant 0 : index
    %c0_4 = arith.constant 0 : index
    %3 = vector.load %arg3[%c0_3, %c0_4] : memref<1x128xf32, #tpu.memory_space<vmem>>, vector<1x128xf32>
    %4 = vector.broadcast %3 : vector<1x128xf32> to vector<16x128xf32>
    %5 = arith.addf %2, %4 : vector<16x128xf32>
    %6 = arith.truncf %5 : vector<16x128xf32> to vector<16x128xbf16>
    %c0_5 = arith.constant 0 : index
    %c0_6 = arith.constant 0 : index
    %7 = vector.load %arg4[%c0_5, %c0_6] : memref<128x384xbf16, #tpu.memory_space<vmem>>, vector<128x384xbf16>
    %cst_7 = arith.constant dense<0.000000e+00> : vector<16x384xf32>
    %8 = tpu.matmul %6, %7, %cst_7 {dimension_numbers = #tpu.dot_dimension_numbers<[1], [0], [0], [1], [0, 0, 1, 1], [], []>} : vector<16x128xbf16>, vector<128x384xbf16>, vector<16x384xf32> -> vector<16x384xf32>
    %c0_8 = arith.constant 0 : index
    %c0_9 = arith.constant 0 : index
    %9 = vector.load %arg5[%c0_8, %c0_9] : memref<1x384xf32, #tpu.memory_space<vmem>>, vector<1x384xf32>
    %10 = vector.broadcast %9 : vector<1x384xf32> to vector<16x384xf32>
    %11 = arith.addf %8, %10 : vector<16x384xf32>
    %12 = vector.shape_cast %11 : vector<16x384xf32> to vector<2x8x384xf32>
    %13 = arith.truncf %12 : vector<2x8x384xf32> to vector<2x8x384xbf16>
    %14 = tpu.iota {dimensions = array<i32: 0>} : vector<8x8xi32>
    %15 = tpu.iota {dimensions = array<i32: 1>} : vector<8x8xi32>
    %16 = arith.cmpi sge, %14, %15 : vector<8x8xi32>
    %cst_10 = arith.constant 0.000000e+00 : f32
    %cst_11 = arith.constant -1.000000e+30 : f32
    %17 = vector.broadcast %cst_10 : f32 to vector<8x8xf32>
    %18 = vector.broadcast %cst_11 : f32 to vector<8x8xf32>
    %19 = arith.select %16, %17, %18 : vector<8x8xi1>, vector<8x8xf32>
    %20 = vector.extract_strided_slice %13 {offsets = [0, 0, 0], sizes = [2, 8, 32], strides = [1, 1, 1]} : vector<2x8x384xbf16> to vector<2x8x32xbf16>
    %21 = vector.extract_strided_slice %13 {offsets = [0, 0, 32], sizes = [2, 8, 32], strides = [1, 1, 1]} : vector<2x8x384xbf16> to vector<2x8x32xbf16>
    %22 = vector.extract_strided_slice %13 {offsets = [0, 0, 64], sizes = [2, 8, 32], strides = [1, 1, 1]} : vector<2x8x384xbf16> to vector<2x8x32xbf16>
    %23 = vector.extract_strided_slice %13 {offsets = [0, 0, 96], sizes = [2, 8, 32], strides = [1, 1, 1]} : vector<2x8x384xbf16> to vector<2x8x32xbf16>
    %24 = tpu.concatenate %20, %21, %22, %23 in 0 : vector<2x8x32xbf16>, vector<2x8x32xbf16>, vector<2x8x32xbf16>, vector<2x8x32xbf16> -> vector<8x8x32xbf16>
    %25 = vector.extract_strided_slice %13 {offsets = [0, 0, 128], sizes = [2, 8, 32], strides = [1, 1, 1]} : vector<2x8x384xbf16> to vector<2x8x32xbf16>
    %26 = vector.extract_strided_slice %13 {offsets = [0, 0, 160], sizes = [2, 8, 32], strides = [1, 1, 1]} : vector<2x8x384xbf16> to vector<2x8x32xbf16>
    %27 = vector.extract_strided_slice %13 {offsets = [0, 0, 192], sizes = [2, 8, 32], strides = [1, 1, 1]} : vector<2x8x384xbf16> to vector<2x8x32xbf16>
    %28 = vector.extract_strided_slice %13 {offsets = [0, 0, 224], sizes = [2, 8, 32], strides = [1, 1, 1]} : vector<2x8x384xbf16> to vector<2x8x32xbf16>
    %29 = tpu.concatenate %25, %26, %27, %28 in 0 : vector<2x8x32xbf16>, vector<2x8x32xbf16>, vector<2x8x32xbf16>, vector<2x8x32xbf16> -> vector<8x8x32xbf16>
    %30 = vector.extract_strided_slice %13 {offsets = [0, 0, 256], sizes = [2, 8, 32], strides = [1, 1, 1]} : vector<2x8x384xbf16> to vector<2x8x32xbf16>
    %31 = vector.extract_strided_slice %13 {offsets = [0, 0, 288], sizes = [2, 8, 32], strides = [1, 1, 1]} : vector<2x8x384xbf16> to vector<2x8x32xbf16>
    %32 = vector.extract_strided_slice %13 {offsets = [0, 0, 320], sizes = [2, 8, 32], strides = [1, 1, 1]} : vector<2x8x384xbf16> to vector<2x8x32xbf16>
    %33 = vector.extract_strided_slice %13 {offsets = [0, 0, 352], sizes = [2, 8, 32], strides = [1, 1, 1]} : vector<2x8x384xbf16> to vector<2x8x32xbf16>
    %34 = tpu.concatenate %30, %31, %32, %33 in 0 : vector<2x8x32xbf16>, vector<2x8x32xbf16>, vector<2x8x32xbf16>, vector<2x8x32xbf16> -> vector<8x8x32xbf16>
    "tpu.trace_start"() <{level = 10 : i32, message = "bqd,bkd->bqk"}> : () -> ()
    %cst_12 = arith.constant dense<0.000000e+00> : vector<8x8x8xf32>
    %35 = tpu.matmul %24, %29, %cst_12 {dimension_numbers = #tpu.dot_dimension_numbers<[2], [2], [1], [1], [0, 0, 0, 1, 1, 1], [0], [0]>} : vector<8x8x32xbf16>, vector<8x8x32xbf16>, vector<8x8x8xf32> -> vector<8x8x8xf32>
    "tpu.trace_stop"() : () -> ()
    %cst_13 = arith.constant 0.176776692 : f32
    %36 = vector.broadcast %cst_13 : f32 to vector<8x8x8xf32>
    %37 = arith.mulf %35, %36 : vector<8x8x8xf32>
    %38 = vector.shape_cast %19 : vector<8x8xf32> to vector<1x8x8xf32>
    %39 = vector.broadcast %38 : vector<1x8x8xf32> to vector<8x8x8xf32>
    %40 = arith.addf %37, %39 : vector<8x8x8xf32>
    %cst_14 = arith.constant dense<0xFF800000> : vector<8x8xf32>
    %41 = vector.multi_reduction <maximumf>, %40, %cst_14 [2] : vector<8x8x8xf32> to vector<8x8xf32>
    %42 = vector.shape_cast %41 : vector<8x8xf32> to vector<8x8x1xf32>
    %43 = vector.broadcast %42 : vector<8x8x1xf32> to vector<8x8x8xf32>
    %44 = arith.subf %40, %43 : vector<8x8x8xf32>
    %45 = math.exp %44 : vector<8x8x8xf32>
    %cst_15 = arith.constant dense<0.000000e+00> : vector<8x8xf32>
    %46 = vector.multi_reduction <add>, %45, %cst_15 [2] : vector<8x8x8xf32> to vector<8x8xf32>
    %47 = vector.shape_cast %46 : vector<8x8xf32> to vector<8x8x1xf32>
    %48 = tpu.reciprocal %47 {approx = true} : vector<8x8x1xf32> -> vector<8x8x1xf32>
    %49 = vector.broadcast %48 : vector<8x8x1xf32> to vector<8x8x8xf32>
    %50 = arith.mulf %45, %49 : vector<8x8x8xf32>
    %51 = arith.truncf %50 : vector<8x8x8xf32> to vector<8x8x8xbf16>
    "tpu.trace_start"() <{level = 10 : i32, message = "bqk,bkd->bqd"}> : () -> ()
    %cst_16 = arith.constant dense<0.000000e+00> : vector<8x8x32xf32>
    %52 = tpu.matmul %51, %34, %cst_16 {dimension_numbers = #tpu.dot_dimension_numbers<[2], [1], [1], [2], [0, 0, 0, 1, 1, 2], [0], [0]>} : vector<8x8x8xbf16>, vector<8x8x32xbf16>, vector<8x8x32xf32> -> vector<8x8x32xf32>
    "tpu.trace_stop"() : () -> ()
    %53 = vector.extract_strided_slice %52 {offsets = [0, 0, 0], sizes = [2, 8, 32], strides = [1, 1, 1]} : vector<8x8x32xf32> to vector<2x8x32xf32>
    %54 = vector.extract_strided_slice %52 {offsets = [2, 0, 0], sizes = [2, 8, 32], strides = [1, 1, 1]} : vector<8x8x32xf32> to vector<2x8x32xf32>
    %55 = vector.extract_strided_slice %52 {offsets = [4, 0, 0], sizes = [2, 8, 32], strides = [1, 1, 1]} : vector<8x8x32xf32> to vector<2x8x32xf32>
    %56 = vector.extract_strided_slice %52 {offsets = [6, 0, 0], sizes = [2, 8, 32], strides = [1, 1, 1]} : vector<8x8x32xf32> to vector<2x8x32xf32>
    %57 = tpu.concatenate %53, %54, %55, %56 in 2 : vector<2x8x32xf32>, vector<2x8x32xf32>, vector<2x8x32xf32>, vector<2x8x32xf32> -> vector<2x8x128xf32>
    %58 = vector.shape_cast %57 : vector<2x8x128xf32> to vector<16x128xf32>
    %59 = arith.truncf %58 : vector<16x128xf32> to vector<16x128xbf16>
    %c0_17 = arith.constant 0 : index
    %c0_18 = arith.constant 0 : index
    %60 = vector.load %arg6[%c0_17, %c0_18] : memref<128x128xbf16, #tpu.memory_space<vmem>>, vector<128x128xbf16>
    %cst_19 = arith.constant dense<0.000000e+00> : vector<16x128xf32>
    %61 = tpu.matmul %59, %60, %cst_19 {dimension_numbers = #tpu.dot_dimension_numbers<[1], [0], [0], [1], [0, 0, 1, 1], [], []>} : vector<16x128xbf16>, vector<128x128xbf16>, vector<16x128xf32> -> vector<16x128xf32>
    %c0_20 = arith.constant 0 : index
    %c0_21 = arith.constant 0 : index
    %62 = vector.load %arg7[%c0_20, %c0_21] : memref<1x128xf32, #tpu.memory_space<vmem>>, vector<1x128xf32>
    %63 = vector.broadcast %62 : vector<1x128xf32> to vector<16x128xf32>
    %64 = arith.addf %61, %63 : vector<16x128xf32>
    %65 = arith.addf %5, %64 : vector<16x128xf32>
    %c0_22 = arith.constant 0 : index
    %c0_23 = arith.constant 0 : index
    %66 = vector.load %arg8[%c0_22, %c0_23] : memref<1x128xf32, #tpu.memory_space<vmem>>, vector<1x128xf32>
    %c0_24 = arith.constant 0 : index
    %c0_25 = arith.constant 0 : index
    %67 = vector.load %arg9[%c0_24, %c0_25] : memref<1x128xf32, #tpu.memory_space<vmem>>, vector<1x128xf32>
    %cst_26 = arith.constant dense<0.000000e+00> : vector<16xf32>
    %68 = vector.multi_reduction <add>, %65, %cst_26 [1] : vector<16x128xf32> to vector<16xf32>
    %69 = vector.shape_cast %68 : vector<16xf32> to vector<16x1xf32>
    %cst_27 = arith.constant 1.280000e+02 : f32
    %70 = vector.broadcast %cst_27 : f32 to vector<16x1xf32>
    %71 = arith.divf %69, %70 : vector<16x1xf32>
    %72 = vector.broadcast %71 : vector<16x1xf32> to vector<16x128xf32>
    %73 = arith.subf %65, %72 : vector<16x128xf32>
    %74 = arith.mulf %73, %73 : vector<16x128xf32>
    %cst_28 = arith.constant dense<0.000000e+00> : vector<16xf32>
    %75 = vector.multi_reduction <add>, %74, %cst_28 [1] : vector<16x128xf32> to vector<16xf32>
    %76 = vector.shape_cast %75 : vector<16xf32> to vector<16x1xf32>
    %cst_29 = arith.constant 1.280000e+02 : f32
    %77 = vector.broadcast %cst_29 : f32 to vector<16x1xf32>
    %78 = arith.divf %76, %77 : vector<16x1xf32>
    %79 = vector.broadcast %71 : vector<16x1xf32> to vector<16x128xf32>
    %80 = arith.subf %65, %79 : vector<16x128xf32>
    %cst_30 = arith.constant 9.99999974E-6 : f32
    %81 = vector.broadcast %cst_30 : f32 to vector<16x1xf32>
    %82 = arith.addf %78, %81 : vector<16x1xf32>
    %83 = math.rsqrt %82 : vector<16x1xf32>
    %84 = vector.broadcast %83 : vector<16x1xf32> to vector<16x128xf32>
    %85 = arith.mulf %80, %84 : vector<16x128xf32>
    %86 = vector.broadcast %66 : vector<1x128xf32> to vector<16x128xf32>
    %87 = arith.mulf %85, %86 : vector<16x128xf32>
    %88 = vector.broadcast %67 : vector<1x128xf32> to vector<16x128xf32>
    %89 = arith.addf %87, %88 : vector<16x128xf32>
    %90 = arith.truncf %89 : vector<16x128xf32> to vector<16x128xbf16>
    %cst_31 = arith.constant 0.000000e+00 : f32
    %91 = vector.broadcast %cst_31 : f32 to vector<16x128xf32>
    %c0_32 = arith.constant 0 : index
    %c0_33 = arith.constant 0 : index
    %92 = vector.load %arg10[%c0_32, %c0_33] : memref<128x2048xbf16, #tpu.memory_space<vmem>>, vector<128x512xbf16>
    %cst_34 = arith.constant dense<0.000000e+00> : vector<16x512xf32>
    %93 = tpu.matmul %90, %92, %cst_34 {dimension_numbers = #tpu.dot_dimension_numbers<[1], [0], [0], [1], [0, 0, 1, 1], [], []>} : vector<16x128xbf16>, vector<128x512xbf16>, vector<16x512xf32> -> vector<16x512xf32>
    %c0_35 = arith.constant 0 : index
    %c0_36 = arith.constant 0 : index
    %94 = vector.load %arg11[%c0_35, %c0_36] : memref<1x2048xf32, #tpu.memory_space<vmem>>, vector<1x512xf32>
    %95 = vector.broadcast %94 : vector<1x512xf32> to vector<16x512xf32>
    %96 = arith.addf %93, %95 : vector<16x512xf32>
    %cst_37 = arith.constant 0.000000e+00 : f32
    %97 = vector.broadcast %cst_37 : f32 to vector<16x512xf32>
    %98 = arith.maximumf %96, %97 : vector<16x512xf32>
    %99 = arith.truncf %98 : vector<16x512xf32> to vector<16x512xbf16>
    %c0_38 = arith.constant 0 : index
    %c0_39 = arith.constant 0 : index
    %100 = vector.load %arg12[%c0_38, %c0_39] : memref<2048x128xbf16, #tpu.memory_space<vmem>>, vector<512x128xbf16>
    %cst_40 = arith.constant dense<0.000000e+00> : vector<16x128xf32>
    %101 = tpu.matmul %99, %100, %cst_40 {dimension_numbers = #tpu.dot_dimension_numbers<[1], [0], [0], [1], [0, 0, 1, 1], [], []>} : vector<16x512xbf16>, vector<512x128xbf16>, vector<16x128xf32> -> vector<16x128xf32>
    %102 = arith.addf %91, %101 : vector<16x128xf32>
    %c0_41 = arith.constant 0 : index
    %c512 = arith.constant 512 : index
    %103 = vector.load %arg10[%c0_41, %c512] : memref<128x2048xbf16, #tpu.memory_space<vmem>>, vector<128x512xbf16>
    %cst_42 = arith.constant dense<0.000000e+00> : vector<16x512xf32>
    %104 = tpu.matmul %90, %103, %cst_42 {dimension_numbers = #tpu.dot_dimension_numbers<[1], [0], [0], [1], [0, 0, 1, 1], [], []>} : vector<16x128xbf16>, vector<128x512xbf16>, vector<16x512xf32> -> vector<16x512xf32>
    %c0_43 = arith.constant 0 : index
    %c512_44 = arith.constant 512 : index
    %105 = vector.load %arg11[%c0_43, %c512_44] : memref<1x2048xf32, #tpu.memory_space<vmem>>, vector<1x512xf32>
    %106 = vector.broadcast %105 : vector<1x512xf32> to vector<16x512xf32>
    %107 = arith.addf %104, %106 : vector<16x512xf32>
    %cst_45 = arith.constant 0.000000e+00 : f32
    %108 = vector.broadcast %cst_45 : f32 to vector<16x512xf32>
    %109 = arith.maximumf %107, %108 : vector<16x512xf32>
    %110 = arith.truncf %109 : vector<16x512xf32> to vector<16x512xbf16>
    %c512_46 = arith.constant 512 : index
    %c0_47 = arith.constant 0 : index
    %111 = vector.load %arg12[%c512_46, %c0_47] : memref<2048x128xbf16, #tpu.memory_space<vmem>>, vector<512x128xbf16>
    %cst_48 = arith.constant dense<0.000000e+00> : vector<16x128xf32>
    %112 = tpu.matmul %110, %111, %cst_48 {dimension_numbers = #tpu.dot_dimension_numbers<[1], [0], [0], [1], [0, 0, 1, 1], [], []>} : vector<16x512xbf16>, vector<512x128xbf16>, vector<16x128xf32> -> vector<16x128xf32>
    %113 = arith.addf %102, %112 : vector<16x128xf32>
    %c0_49 = arith.constant 0 : index
    %c1024 = arith.constant 1024 : index
    %114 = vector.load %arg10[%c0_49, %c1024] : memref<128x2048xbf16, #tpu.memory_space<vmem>>, vector<128x512xbf16>
    %cst_50 = arith.constant dense<0.000000e+00> : vector<16x512xf32>
    %115 = tpu.matmul %90, %114, %cst_50 {dimension_numbers = #tpu.dot_dimension_numbers<[1], [0], [0], [1], [0, 0, 1, 1], [], []>} : vector<16x128xbf16>, vector<128x512xbf16>, vector<16x512xf32> -> vector<16x512xf32>
    %c0_51 = arith.constant 0 : index
    %c1024_52 = arith.constant 1024 : index
    %116 = vector.load %arg11[%c0_51, %c1024_52] : memref<1x2048xf32, #tpu.memory_space<vmem>>, vector<1x512xf32>
    %117 = vector.broadcast %116 : vector<1x512xf32> to vector<16x512xf32>
    %118 = arith.addf %115, %117 : vector<16x512xf32>
    %cst_53 = arith.constant 0.000000e+00 : f32
    %119 = vector.broadcast %cst_53 : f32 to vector<16x512xf32>
    %120 = arith.maximumf %118, %119 : vector<16x512xf32>
    %121 = arith.truncf %120 : vector<16x512xf32> to vector<16x512xbf16>
    %c1024_54 = arith.constant 1024 : index
    %c0_55 = arith.constant 0 : index
    %122 = vector.load %arg12[%c1024_54, %c0_55] : memref<2048x128xbf16, #tpu.memory_space<vmem>>, vector<512x128xbf16>
    %cst_56 = arith.constant dense<0.000000e+00> : vector<16x128xf32>
    %123 = tpu.matmul %121, %122, %cst_56 {dimension_numbers = #tpu.dot_dimension_numbers<[1], [0], [0], [1], [0, 0, 1, 1], [], []>} : vector<16x512xbf16>, vector<512x128xbf16>, vector<16x128xf32> -> vector<16x128xf32>
    %124 = arith.addf %113, %123 : vector<16x128xf32>
    %c0_57 = arith.constant 0 : index
    %c1536 = arith.constant 1536 : index
    %125 = vector.load %arg10[%c0_57, %c1536] : memref<128x2048xbf16, #tpu.memory_space<vmem>>, vector<128x512xbf16>
    %cst_58 = arith.constant dense<0.000000e+00> : vector<16x512xf32>
    %126 = tpu.matmul %90, %125, %cst_58 {dimension_numbers = #tpu.dot_dimension_numbers<[1], [0], [0], [1], [0, 0, 1, 1], [], []>} : vector<16x128xbf16>, vector<128x512xbf16>, vector<16x512xf32> -> vector<16x512xf32>
    %c0_59 = arith.constant 0 : index
    %c1536_60 = arith.constant 1536 : index
    %127 = vector.load %arg11[%c0_59, %c1536_60] : memref<1x2048xf32, #tpu.memory_space<vmem>>, vector<1x512xf32>
    %128 = vector.broadcast %127 : vector<1x512xf32> to vector<16x512xf32>
    %129 = arith.addf %126, %128 : vector<16x512xf32>
    %cst_61 = arith.constant 0.000000e+00 : f32
    %130 = vector.broadcast %cst_61 : f32 to vector<16x512xf32>
    %131 = arith.maximumf %129, %130 : vector<16x512xf32>
    %132 = arith.truncf %131 : vector<16x512xf32> to vector<16x512xbf16>
    %c1536_62 = arith.constant 1536 : index
    %c0_63 = arith.constant 0 : index
    %133 = vector.load %arg12[%c1536_62, %c0_63] : memref<2048x128xbf16, #tpu.memory_space<vmem>>, vector<512x128xbf16>
    %cst_64 = arith.constant dense<0.000000e+00> : vector<16x128xf32>
    %134 = tpu.matmul %132, %133, %cst_64 {dimension_numbers = #tpu.dot_dimension_numbers<[1], [0], [0], [1], [0, 0, 1, 1], [], []>} : vector<16x512xbf16>, vector<512x128xbf16>, vector<16x128xf32> -> vector<16x128xf32>
    %135 = arith.addf %124, %134 : vector<16x128xf32>
    %c0_65 = arith.constant 0 : index
    %c0_66 = arith.constant 0 : index
    %136 = vector.load %arg13[%c0_65, %c0_66] : memref<1x128xf32, #tpu.memory_space<vmem>>, vector<1x128xf32>
    %137 = vector.broadcast %136 : vector<1x128xf32> to vector<16x128xf32>
    %138 = arith.addf %135, %137 : vector<16x128xf32>
    %139 = arith.addf %89, %138 : vector<16x128xf32>
    %c0_67 = arith.constant 0 : index
    %c0_68 = arith.constant 0 : index
    %140 = vector.load %arg14[%c0_67, %c0_68] : memref<1x128xf32, #tpu.memory_space<vmem>>, vector<1x128xf32>
    %c0_69 = arith.constant 0 : index
    %c0_70 = arith.constant 0 : index
    %141 = vector.load %arg15[%c0_69, %c0_70] : memref<1x128xf32, #tpu.memory_space<vmem>>, vector<1x128xf32>
    %cst_71 = arith.constant dense<0.000000e+00> : vector<16xf32>
    %142 = vector.multi_reduction <add>, %139, %cst_71 [1] : vector<16x128xf32> to vector<16xf32>
    %143 = vector.shape_cast %142 : vector<16xf32> to vector<16x1xf32>
    %cst_72 = arith.constant 1.280000e+02 : f32
    %144 = vector.broadcast %cst_72 : f32 to vector<16x1xf32>
    %145 = arith.divf %143, %144 : vector<16x1xf32>
    %146 = vector.broadcast %145 : vector<16x1xf32> to vector<16x128xf32>
    %147 = arith.subf %139, %146 : vector<16x128xf32>
    %148 = arith.mulf %147, %147 : vector<16x128xf32>
    %cst_73 = arith.constant dense<0.000000e+00> : vector<16xf32>
    %149 = vector.multi_reduction <add>, %148, %cst_73 [1] : vector<16x128xf32> to vector<16xf32>
    %150 = vector.shape_cast %149 : vector<16xf32> to vector<16x1xf32>
    %cst_74 = arith.constant 1.280000e+02 : f32
    %151 = vector.broadcast %cst_74 : f32 to vector<16x1xf32>
    %152 = arith.divf %150, %151 : vector<16x1xf32>
    %153 = vector.broadcast %145 : vector<16x1xf32> to vector<16x128xf32>
    %154 = arith.subf %139, %153 : vector<16x128xf32>
    %cst_75 = arith.constant 9.99999974E-6 : f32
    %155 = vector.broadcast %cst_75 : f32 to vector<16x1xf32>
    %156 = arith.addf %152, %155 : vector<16x1xf32>
    %157 = math.rsqrt %156 : vector<16x1xf32>
    %158 = vector.broadcast %157 : vector<16x1xf32> to vector<16x128xf32>
    %159 = arith.mulf %154, %158 : vector<16x128xf32>
    %160 = vector.broadcast %140 : vector<1x128xf32> to vector<16x128xf32>
    %161 = arith.mulf %159, %160 : vector<16x128xf32>
    %162 = vector.broadcast %141 : vector<1x128xf32> to vector<16x128xf32>
    %163 = arith.addf %161, %162 : vector<16x128xf32>
    %164 = vector.shape_cast %163 : vector<16x128xf32> to vector<2x8x128xf32>
    %165 = vector.extract_strided_slice %164 {offsets = [0, 7, 0], sizes = [2, 1, 128], strides = [1, 1, 1]} : vector<2x8x128xf32> to vector<2x1x128xf32>
    %166 = vector.shape_cast %165 : vector<2x1x128xf32> to vector<2x128xf32>
    %167 = arith.truncf %166 : vector<2x128xf32> to vector<2x128xbf16>
    %c0_76 = arith.constant 0 : index
    %c0_77 = arith.constant 0 : index
    %168 = vector.load %arg16[%c0_76, %c0_77] : memref<128x128xbf16, #tpu.memory_space<vmem>>, vector<128x128xbf16>
    %cst_78 = arith.constant dense<0.000000e+00> : vector<2x128xf32>
    %169 = tpu.matmul %167, %168, %cst_78 {dimension_numbers = #tpu.dot_dimension_numbers<[1], [0], [0], [1], [0, 0, 1, 1], [], []>} : vector<2x128xbf16>, vector<128x128xbf16>, vector<2x128xf32> -> vector<2x128xf32>
    %c0_79 = arith.constant 0 : index
    %c0_80 = arith.constant 0 : index
    %170 = vector.load %arg17[%c0_79, %c0_80] : memref<1x128xf32, #tpu.memory_space<vmem>>, vector<1x128xf32>
    %171 = vector.broadcast %170 : vector<1x128xf32> to vector<2x128xf32>
    %172 = arith.addf %169, %171 : vector<2x128xf32>
    %c0_81 = arith.constant 0 : index
    %c0_82 = arith.constant 0 : index
    %173 = vector.load %arg18[%c0_81, %c0_82] : memref<2x128xf32, #tpu.memory_space<vmem>>, vector<2x128xf32>
    tpu.vector_store %arg18[%c0_81, %c0_82], %172 {strides = array<i32>} : memref<2x128xf32, #tpu.memory_space<vmem>>, vector<2x128xf32>,
    return
  }
  func.func @transform_0(%arg0: i32) -> (i32, i32) {
    %c0_i32 = arith.constant 0 : i32
    %c0_i32_0 = arith.constant 0 : i32
    return %arg0, %c0_i32 : i32, i32
  }
  func.func @transform_1(%arg0: i32) -> (i32, i32) {
    %c0_i32 = arith.constant 0 : i32
    %c0_i32_0 = arith.constant 0 : i32
    %c0_i32_1 = arith.constant 0 : i32
    return %c0_i32, %c0_i32_0 : i32, i32
  }
  func.func @transform_2(%arg0: i32) -> (i32, i32) {
    %c0_i32 = arith.constant 0 : i32
    %c0_i32_0 = arith.constant 0 : i32
    %c0_i32_1 = arith.constant 0 : i32
    return %c0_i32, %c0_i32_0 : i32, i32
  }
  func.func @transform_3(%arg0: i32) -> (i32, i32) {
    %c0_i32 = arith.constant 0 : i32
    %c0_i32_0 = arith.constant 0 : i32
    %c0_i32_1 = arith.constant 0 : i32
    return %c0_i32, %c0_i32_0 : i32, i32
  }
  func.func @transform_4(%arg0: i32) -> (i32, i32) {
    %c0_i32 = arith.constant 0 : i32
    %c0_i32_0 = arith.constant 0 : i32
    %c0_i32_1 = arith.constant 0 : i32
    return %c0_i32, %c0_i32_0 : i32, i32
  }
  func.func @transform_5(%arg0: i32) -> (i32, i32) {
    %c0_i32 = arith.constant 0 : i32
    %c0_i32_0 = arith.constant 0 : i32
    %c0_i32_1 = arith.constant 0 : i32
    return %c0_i32, %c0_i32_0 : i32, i32
  }
  func.func @transform_6(%arg0: i32) -> (i32, i32) {
    %c0_i32 = arith.constant 0 : i32
    %c0_i32_0 = arith.constant 0 : i32
    %c0_i32_1 = arith.constant 0 : i32
    return %c0_i32, %c0_i32_0 : i32, i32
  }
  func.func @transform_7(%arg0: i32) -> (i32, i32) {
    %c0_i32 = arith.constant 0 : i32
    %c0_i32_0 = arith.constant 0 : i32
    %c0_i32_1 = arith.constant 0 : i32
    return %c0_i32, %c0_i32_0 : i32, i32
  }
  func.func @transform_8(%arg0: i32) -> (i32, i32) {
    %c0_i32 = arith.constant 0 : i32
    %c0_i32_0 = arith.constant 0 : i32
    %c0_i32_1 = arith.constant 0 : i32
    return %c0_i32, %c0_i32_0 : i32, i32
  }
  func.func @transform_9(%arg0: i32) -> (i32, i32) {
    %c0_i32 = arith.constant 0 : i32
    %c0_i32_0 = arith.constant 0 : i32
    %c0_i32_1 = arith.constant 0 : i32
    return %c0_i32, %c0_i32_0 : i32, i32
  }
  func.func @transform_10(%arg0: i32) -> (i32, i32) {
    %c0_i32 = arith.constant 0 : i32
    %c0_i32_0 = arith.constant 0 : i32
    %c0_i32_1 = arith.constant 0 : i32
    return %c0_i32, %c0_i32_0 : i32, i32
  }
  func.func @transform_11(%arg0: i32) -> (i32, i32) {
    %c0_i32 = arith.constant 0 : i32
    %c0_i32_0 = arith.constant 0 : i32
    %c0_i32_1 = arith.constant 0 : i32
    return %c0_i32, %c0_i32_0 : i32, i32
  }
  func.func @transform_12(%arg0: i32) -> (i32, i32) {
    %c0_i32 = arith.constant 0 : i32
    %c0_i32_0 = arith.constant 0 : i32
    %c0_i32_1 = arith.constant 0 : i32
    return %c0_i32, %c0_i32_0 : i32, i32
  }
  func.func @transform_13(%arg0: i32) -> (i32, i32) {
    %c0_i32 = arith.constant 0 : i32
    %c0_i32_0 = arith.constant 0 : i32
    %c0_i32_1 = arith.constant 0 : i32
    return %c0_i32, %c0_i32_0 : i32, i32
  }
  func.func @transform_14(%arg0: i32) -> (i32, i32) {
    %c0_i32 = arith.constant 0 : i32
    %c0_i32_0 = arith.constant 0 : i32
    %c0_i32_1 = arith.constant 0 : i32
    return %c0_i32, %c0_i32_0 : i32, i32
  }
  func.func @transform_15(%arg0: i32) -> (i32, i32) {
    %c0_i32 = arith.constant 0 : i32
    %c0_i32_0 = arith.constant 0 : i32
    %c0_i32_1 = arith.constant 0 : i32
    return %c0_i32, %c0_i32_0 : i32, i32
  }
  func.func @transform_16(%arg0: i32) -> (i32, i32) {
    %c0_i32 = arith.constant 0 : i32
    %c0_i32_0 = arith.constant 0 : i32
    %c0_i32_1 = arith.constant 0 : i32
    return %c0_i32, %c0_i32_0 : i32, i32
  }
  func.func @transform_17(%arg0: i32) -> (i32, i32) {
    %c0_i32 = arith.constant 0 : i32
    %c0_i32_0 = arith.constant 0 : i32
    return %arg0, %c0_i32 : i32, i32
  }
}

</mosaic_0001>

<bundles_post_ra>
// kernel: tpu_custom_call.1
= control target key start
LH: loop header
LB: loop body
LE: loop exit
PB: predicated region body
PF: predicated region fallthrough
CT: control target
= control target key end

     0   :  { %s6388_s0 = inlined_call_operand.vmem [shape: bf16[16,8], index: 0, kind: input, shape index: {}]   ;;  %s6389_s1 = inlined_call_operand.vmem [shape: bf16[8,128], index: 1, kind: input, shape index: {}]   ;;  %s6390_s2 = inlined_call_operand.hbm [shape: f32[1,128], index: 2, kind: input, shape index: {}]   ;;  %s6391_s3 = inlined_call_operand.hbm [shape: bf16[128,384], index: 3, kind: input, shape index: {}]   ;;  %s6392_s4 = inlined_call_operand.hbm [shape: f32[1,384], index: 4, kind: input, shape index: {}]   ;;  %s6393_s5 = inlined_call_operand.hbm [shape: bf16[128,128], index: 5, kind: input, shape index: {}]   ;;  %s6394_s6 = inlined_call_operand.hbm [shape: f32[1,128], index: 6, kind: input, shape index: {}]   ;;  %s6395_s7 = inlined_call_operand.hbm [shape: f32[1,128], index: 7, kind: input, shape index: {}]   ;;  %s6396_s8 = inlined_call_operand.hbm [shape: f32[1,128], index: 8, kind: input, shape index: {}]   ;;  %s6397_s9 = inlined_call_operand.hbm [shape: bf16[128,2048], index: 9, kind: input, shape index: {}]   ;;  %s6398_s10 = inlined_call_operand.hbm [shape: f32[1,2048], index: 10, kind: input, shape index: {}]   ;;  %s6399_s11 = inlined_call_operand.hbm [shape: bf16[2048,128], index: 11, kind: input, shape index: {}]   ;;  %s6400_s12 = inlined_call_operand.hbm [shape: f32[1,128], index: 12, kind: input, shape index: {}]   ;;  %s6401_s13 = inlined_call_operand.hbm [shape: f32[1,128], index: 13, kind: input, shape index: {}]   ;;  %s6402_s14 = inlined_call_operand.hbm [shape: f32[1,128], index: 14, kind: input, shape index: {}]   ;;  %s6403_s15 = inlined_call_operand.vmem [shape: bf16[128,128], index: 15, kind: input, shape index: {}]   ;;  %s6404_s16 = inlined_call_operand.vmem [shape: f32[1,128], index: 16, kind: input, shape index: {}]   ;;  %s6405_s17 = inlined_call_operand.hbm [shape: f32[2,128], index: 17, kind: output, shape index: {}]  }
   0x1   :  { %6406 = sst [smem:[#allocation32_spill]] %s6388_s0 }
   0x2   :  { %6407 = sst [smem:[#allocation33_spill]] %s6389_s1 }
   0x3   :  { %22 = vsyncpa [#allocation3], 0 }
   0x4   :  { %23 = vsyncpa [#allocation6], 0 }
   0x5   :  { %24 = vsyncpa [#allocation9], 0 }
   0x6   :  { %25 = vsyncpa [#allocation12], 0 }
   0x7   :  { %26 = vsyncpa [#allocation15], 0 }
   0x8   :  { %27 = vsyncpa [#allocation18], 0 }
   0x9   :  { %28 = vsyncpa [#allocation21], 0 }
   0xa   :  { %29 = vsyncpa [#allocation4], 0  ;;  %s5736_s24 = smov [#allocation5]   ;;  %s5412_s28 = scalar_lea.hbm %s6391_s3, 3072 }
   0xb   :  { %s49_s25 = sshll.u32 %s5736_s24, 4  ;;  %p5413_p0 = scmp.ne.s32.totalorder %s6391_s3, %s5412_s28  ;;  %s50_s25 = int_to_ptr.vmem [resolvable:$true] %s49_s25 }
   0xc   :  { %p5416_p1 = scmp.lt.u32.totalorder %s5412_s28, %s6391_s3 }
   0xe   :  { %p5418_p2 = pnand %p5416_p1, %p5413_p0 }
  0x10   :  { %5421 = shalt.err (!%p5418_p2)
}
  0x11   :  { %s5422_s19 = scalar_lea.vmem %s50_s25, 3072  ;;  %p5427_p4 = scmp.lt.s32.totalorder %s50_s25, %s50_s25 }
  0x12   :  { %p5423_p3 = scmp.ne.s32.totalorder %s50_s25, %s5422_s19  ;;  %p5428_p5 = scmp.lt.s32.totalorder %s5422_s19, %s5422_s19 }
  0x14   :  { %p5429_p6 = por %p5428_p5, %p5427_p4 }
  0x16   :  { %p5430_p7 = pnand %p5429_p6, %p5423_p3 }
  0x18   :  { %5433 = shalt.err (!%p5430_p7)
}
  0x19   :  { %s5737_s1 = smov 192   ;;  %s5738_s20 = smov 12  }
  0x1a   :  { %55 = dma.hbm_to_vmem [thread:$0]  %s6391_s3, 3072, %s50_s25, [#allocation6], %s5737_s1, %s5737_s1, %s5738_s20  }
  0x1b   :  { %s5739_s23 = smov [#allocation8]   ;;  %s5434_s28 = scalar_lea.hbm %s6393_s5, 1024 }
  0x1c   :  { %s71_s24 = sshll.u32 %s5739_s23, 4  ;;  %p5435_p8 = scmp.ne.s32.totalorder %s6393_s5, %s5434_s28  ;;  %s72_s24 = int_to_ptr.vmem [resolvable:$true] %s71_s24 }
  0x1d   :  { %p5438_p9 = scmp.lt.u32.totalorder %s5434_s28, %s6393_s5 }
  0x1f   :  { %p5440_p10 = pnand %p5438_p9, %p5435_p8 }
  0x21   :  { %5443 = shalt.err (!%p5440_p10)
}
  0x22   :  { %s5444_s19 = scalar_lea.vmem %s72_s24, 1024  ;;  %p5449_p12 = scmp.lt.s32.totalorder %s72_s24, %s72_s24 }
  0x23   :  { %p5445_p11 = scmp.ne.s32.totalorder %s72_s24, %s5444_s19  ;;  %p5450_p13 = scmp.lt.s32.totalorder %s5444_s19, %s5444_s19 }
  0x25   :  { %p5451_p0 = por %p5450_p13, %p5449_p12 }
  0x27   :  { %p5452_p1 = pnand %p5451_p0, %p5445_p11 }
  0x29   :  { %5455 = shalt.err (!%p5452_p1)
}
  0x2a   :  { %s5740_s3 = smov 64   ;;  %s5741_s25 = smov 4  }
  0x2b   :  { %77 = dma.hbm_to_vmem [thread:$0]  %s6393_s5, 1024, %s72_s24, [#allocation9], %s5740_s3, %s5740_s3, %s5741_s25  }
  0x2c   :  { %s5742_s21 = smov [#allocation11]   ;;  %s5743_s23 = smov [#allocation14]  }
  0x2d   :  { %s94_s22 = sshll.u32 %s5742_s21, 4  ;;  %s113_s26 = sshll.u32 %s5743_s23, 4  ;;  %s95_s22 = int_to_ptr.vmem [resolvable:$true] %s94_s22  ;;  %s5878_s26 = int_to_ptr.vmem [resolvable:$true] %s113_s26 }
  0x2e   :  { %s5456_s29 = scalar_lea.hbm %s6395_s7, 16 }
  0x2f   :  { %p5457_p2 = scmp.ne.s32.totalorder %s6395_s7, %s5456_s29  ;;  %p5460_p3 = scmp.lt.u32.totalorder %s5456_s29, %s6395_s7 }
  0x31   :  { %p5462_p4 = pnand %p5460_p3, %p5457_p2 }
  0x33   :  { %5465 = shalt.err (!%p5462_p4)
}
  0x34   :  { %s5466_s5 = scalar_lea.vmem %s95_s22, 16  ;;  %s5470_s24 = scalar_lea.vmem %s95_s22, 32 }
  0x35   :  { %p5467_p5 = scmp.ne.s32.totalorder %s95_s22, %s5466_s5  ;;  %p5471_p6 = scmp.lt.s32.totalorder %s95_s22, %s95_s22 }
  0x36   :  { %p5472_p7 = scmp.lt.s32.totalorder %s5470_s24, %s5466_s5 }
  0x38   :  { %p5473_p8 = por %p5472_p7, %p5471_p6 }
  0x3a   :  { %p5474_p9 = pnand %p5473_p8, %p5467_p5 }
  0x3c   :  { %5477 = shalt.err (!%p5474_p9)
}
  0x3d   :  { %97 = dma.hbm_to_vmem [thread:$0]  %s6395_s7, 16, %s95_s22, [#allocation12]  }
  0x3e   :  { %s5478_s27 = scalar_lea.hbm %s6397_s9, 16384 }
  0x3f   :  { %p5479_p10 = scmp.ne.s32.totalorder %s6397_s9, %s5478_s27  ;;  %p5482_p11 = scmp.lt.u32.totalorder %s5478_s27, %s6397_s9 }
  0x41   :  { %p5484_p12 = pnand %p5482_p11, %p5479_p10 }
  0x43   :  { %5487 = shalt.err (!%p5484_p12)
}
  0x44   :  { %s5488_s18 = scalar_lea.vmem %s5878_s26, 16384  ;;  %p5493_p0 = scmp.lt.s32.totalorder %s5878_s26, %s5878_s26 }
  0x45   :  { %p5489_p13 = scmp.ne.s32.totalorder %s5878_s26, %s5488_s18  ;;  %p5494_p1 = scmp.lt.s32.totalorder %s5488_s18, %s5488_s18 }
  0x47   :  { %p5495_p2 = por %p5494_p1, %p5493_p0 }
  0x49   :  { %p5496_p3 = pnand %p5495_p2, %p5489_p13 }
  0x4b   :  { %5499 = shalt.err (!%p5496_p3)
}
  0x4c   :  { %s5744_s7 = smov 1024   ;;  %s5745_s5 = smov [#allocation17]  }
  0x4d   :  { %119 = dma.hbm_to_vmem [thread:$0]  %s6397_s9, 16384, %s5878_s26, [#allocation15], %s5744_s7, %s5744_s7, %s5740_s3  }
  0x4e   :  { %s135_s24 = sshll.u32 %s5745_s5, 4  ;;  %s5746_s1 = smov [#allocation20]   ;;  %s136_s24 = int_to_ptr.vmem [resolvable:$true] %s135_s24 }
  0x4f   :  { %s158_s20 = sshll.u32 %s5746_s1, 4  ;;  %s5500_s27 = scalar_lea.hbm %s6399_s11, 16384  ;;  %s159_s20 = int_to_ptr.vmem [resolvable:$true] %s158_s20 }
  0x50   :  { %p5501_p4 = scmp.ne.s32.totalorder %s6399_s11, %s5500_s27  ;;  %p5504_p5 = scmp.lt.u32.totalorder %s5500_s27, %s6399_s11 }
  0x52   :  { %p5506_p6 = pnand %p5504_p5, %p5501_p4 }
  0x54   :  { %5509 = shalt.err (!%p5506_p6)
}
  0x55   :  { %s5510_s9 = scalar_lea.vmem %s136_s24, 16384  ;;  %p5515_p8 = scmp.lt.s32.totalorder %s136_s24, %s136_s24 }
  0x56   :  { %p5511_p7 = scmp.ne.s32.totalorder %s136_s24, %s5510_s9  ;;  %p5516_p9 = scmp.lt.s32.totalorder %s5510_s9, %s5510_s9 }
  0x58   :  { %p5517_p10 = por %p5516_p9, %p5515_p8 }
  0x5a   :  { %p5518_p11 = pnand %p5517_p10, %p5511_p7 }
  0x5c   :  { %5521 = shalt.err (!%p5518_p11)
}
  0x5d   :  { %141 = dma.hbm_to_vmem [thread:$0]  %s6399_s11, 16384, %s136_s24, [#allocation18], %s5740_s3, %s5740_s3, %s5741_s25  }
  0x5e   :  { %s5522_s19 = scalar_lea.hbm %s6401_s13, 16 }
  0x5f   :  { %p5523_p12 = scmp.ne.s32.totalorder %s6401_s13, %s5522_s19  ;;  %p5526_p13 = scmp.lt.u32.totalorder %s5522_s19, %s6401_s13 }
  0x61   :  { %p5528_p0 = pnand %p5526_p13, %p5523_p12 }
  0x63   :  { %5531 = shalt.err (!%p5528_p0)
}
  0x64   :  { %s5532_s27 = scalar_lea.vmem %s159_s20, 16  ;;  %s5536_s28 = scalar_lea.vmem %s159_s20, 32 }
  0x65   :  { %p5533_p1 = scmp.ne.s32.totalorder %s159_s20, %s5532_s27  ;;  %p5537_p2 = scmp.lt.s32.totalorder %s159_s20, %s159_s20 }
  0x66   :  { %p5538_p3 = scmp.lt.s32.totalorder %s5536_s28, %s5532_s27 }
  0x68   :  { %p5539_p4 = por %p5538_p3, %p5537_p2 }
  0x6a   :  { %p5540_p5 = pnand %p5539_p4, %p5533_p1 }
  0x6c   :  { %5543 = shalt.err (!%p5540_p5)
}
  0x6d   :  { %161 = dma.hbm_to_vmem [thread:$0]  %s6401_s13, 16, %s159_s20, [#allocation21]  }
  0x6e   :  { %s5747_s24 = smov [#allocation2]   ;;  %s5748_s0 = smov [#allocation7]  }
  0x6f   :  { %s40_s29 = sshll.u32 %s5747_s24, 4  ;;  %s62_s30 = sshll.u32 %s5748_s0, 4  ;;  %s41_s29 = int_to_ptr.vmem [resolvable:$true] %s40_s29  ;;  %s63_s30 = int_to_ptr.vmem [resolvable:$true] %s62_s30 }
  0x70   :  { %s5544_s18 = scalar_lea.hbm %s6390_s2, 16 }
  0x71   :  { %p5545_p6 = scmp.ne.s32.totalorder %s6390_s2, %s5544_s18  ;;  %p5548_p7 = scmp.lt.u32.totalorder %s5544_s18, %s6390_s2 }
  0x73   :  { %p5550_p8 = pnand %p5548_p7, %p5545_p6 }
  0x75   :  { %5553 = shalt.err (!%p5550_p8)
}
  0x76   :  { %s5554_s13 = scalar_lea.vmem %s41_s29, 16  ;;  %s5558_s20 = scalar_lea.vmem %s41_s29, 32 }
  0x77   :  { %p5555_p9 = scmp.ne.s32.totalorder %s41_s29, %s5554_s13  ;;  %p5559_p10 = scmp.lt.s32.totalorder %s41_s29, %s41_s29 }
  0x78   :  { %p5560_p11 = scmp.lt.s32.totalorder %s5558_s20, %s5554_s13 }
  0x7a   :  { %p5561_p12 = por %p5560_p11, %p5559_p10 }
  0x7c   :  { %p5562_p13 = pnand %p5561_p12, %p5555_p9 }
  0x7e   :  { %5565 = shalt.err (!%p5562_p13)
}
  0x7f   :  { %43 = dma.hbm_to_vmem [thread:$0]  %s6390_s2, 16, %s41_s29, [#allocation3]  }
  0x80   :  { %s5566_s28 = scalar_lea.hbm %s6392_s4, 48 }
  0x81   :  { %p5567_p0 = scmp.ne.s32.totalorder %s6392_s4, %s5566_s28  ;;  %p5570_p1 = scmp.lt.u32.totalorder %s5566_s28, %s6392_s4 }
  0x83   :  { %p5572_p2 = pnand %p5570_p1, %p5567_p0 }
  0x85   :  { %5575 = shalt.err (!%p5572_p2)
}
  0x86   :  { %s5576_s9 = scalar_lea.vmem %s63_s30, 48  ;;  %s5580_s26 = scalar_lea.vmem %s63_s30, 64 }
  0x87   :  { %p5577_p3 = scmp.ne.s32.totalorder %s63_s30, %s5576_s9  ;;  %p5581_p4 = scmp.lt.s32.totalorder %s63_s30, %s63_s30 }
  0x88   :  { %p5582_p5 = scmp.lt.s32.totalorder %s5580_s26, %s5576_s9 }
  0x8a   :  { %p5583_p6 = por %p5582_p5, %p5581_p4 }
  0x8c   :  { %p5584_p7 = pnand %p5583_p6, %p5577_p3 }
  0x8e   :  { %5587 = shalt.err (!%p5584_p7)
}
  0x8f   :  { %65 = dma.hbm_to_vmem [thread:$0]  %s6392_s4, 48, %s63_s30, [#allocation6]  }
  0x90   :  { %s5749_s18 = smov [#allocation10]   ;;  %s5750_s22 = smov [#allocation13]  }
  0x91   :  { %s84_s7 = sshll.u32 %s5749_s18, 4  ;;  %s104_s19 = sshll.u32 %s5750_s22, 4  ;;  %s85_s7 = int_to_ptr.vmem [resolvable:$true] %s84_s7  ;;  %s105_s19 = int_to_ptr.vmem [resolvable:$true] %s104_s19 }
  0x92   :  { %s5588_s20 = scalar_lea.hbm %s6394_s6, 16 }
  0x93   :  { %p5589_p8 = scmp.ne.s32.totalorder %s6394_s6, %s5588_s20  ;;  %p5592_p9 = scmp.lt.u32.totalorder %s5588_s20, %s6394_s6 }
  0x95   :  { %p5594_p10 = pnand %p5592_p9, %p5589_p8 }
  0x97   :  { %5597 = shalt.err (!%p5594_p10)
}
  0x98   :  { %s5598_s4 = scalar_lea.vmem %s85_s7, 16  ;;  %s5602_s30 = scalar_lea.vmem %s85_s7, 32 }
  0x99   :  { %p5599_p11 = scmp.ne.s32.totalorder %s85_s7, %s5598_s4  ;;  %p5603_p12 = scmp.lt.s32.totalorder %s85_s7, %s85_s7 }
  0x9a   :  { %p5604_p13 = scmp.lt.s32.totalorder %s5602_s30, %s5598_s4 }
  0x9c   :  { %p5605_p0 = por %p5604_p13, %p5603_p12 }
  0x9e   :  { %p5606_p1 = pnand %p5605_p0, %p5599_p11 }
  0xa0   :  { %5609 = shalt.err (!%p5606_p1)
}
  0xa1   :  { %87 = dma.hbm_to_vmem [thread:$0]  %s6394_s6, 16, %s85_s7, [#allocation9]  }
  0xa2   :  { %s5610_s0 = scalar_lea.hbm %s6396_s8, 16 }
  0xa3   :  { %p5611_p2 = scmp.ne.s32.totalorder %s6396_s8, %s5610_s0  ;;  %p5614_p3 = scmp.lt.u32.totalorder %s5610_s0, %s6396_s8 }
  0xa5   :  { %p5616_p4 = pnand %p5614_p3, %p5611_p2 }
  0xa7   :  { %5619 = shalt.err (!%p5616_p4)
}
  0xa8   :  { %s5620_s18 = scalar_lea.vmem %s105_s19, 16  ;;  %s5624_s22 = scalar_lea.vmem %s105_s19, 32 }
  0xa9   :  { %p5621_p5 = scmp.ne.s32.totalorder %s105_s19, %s5620_s18  ;;  %p5625_p6 = scmp.lt.s32.totalorder %s105_s19, %s105_s19 }
  0xaa   :  { %p5626_p7 = scmp.lt.s32.totalorder %s5624_s22, %s5620_s18 }
  0xac   :  { %p5627_p8 = por %p5626_p7, %p5625_p6 }
  0xae   :  { %p5628_p9 = pnand %p5627_p8, %p5621_p5 }
  0xb0   :  { %5631 = shalt.err (!%p5628_p9)
}
  0xb1   :  { %107 = dma.hbm_to_vmem [thread:$0]  %s6396_s8, 16, %s105_s19, [#allocation12]  }
  0xb2   :  { %s5751_s5 = smov [#allocation16]   ;;  %s5752_s20 = smov [#allocation19]  }
  0xb3   :  { %s126_s13 = sshll.u32 %s5751_s5, 4  ;;  %s148_s1 = sshll.u32 %s5752_s20, 4  ;;  %s127_s13 = int_to_ptr.vmem [resolvable:$true] %s126_s13  ;;  %s149_s1 = int_to_ptr.vmem [resolvable:$true] %s148_s1 }
  0xb4   :  { %s5632_s27 = scalar_lea.hbm %s6398_s10, 256 }
  0xb5   :  { %p5633_p10 = scmp.ne.s32.totalorder %s6398_s10, %s5632_s27  ;;  %p5636_p11 = scmp.lt.u32.totalorder %s5632_s27, %s6398_s10 }
  0xb7   :  { %p5638_p12 = pnand %p5636_p11, %p5633_p10 }
  0xb9   :  { %5641 = shalt.err (!%p5638_p12)
}
  0xba   :  { %s5642_s8 = scalar_lea.vmem %s127_s13, 256  ;;  %p5647_p0 = scmp.lt.s32.totalorder %s127_s13, %s127_s13 }
  0xbb   :  { %p5643_p13 = scmp.ne.s32.totalorder %s127_s13, %s5642_s8  ;;  %p5648_p1 = scmp.lt.s32.totalorder %s5642_s8, %s5642_s8 }
  0xbd   :  { %p5649_p2 = por %p5648_p1, %p5647_p0 }
  0xbf   :  { %p5650_p3 = pnand %p5649_p2, %p5643_p13 }
  0xc1   :  { %5653 = shalt.err (!%p5650_p3)
}
  0xc2   :  { %129 = dma.hbm_to_vmem [thread:$0]  %s6398_s10, 256, %s127_s13, [#allocation15]  }
  0xc3   :  { %s5654_s9 = scalar_lea.hbm %s6400_s12, 16 }
  0xc4   :  { %p5655_p4 = scmp.ne.s32.totalorder %s6400_s12, %s5654_s9  ;;  %p5658_p5 = scmp.lt.u32.totalorder %s5654_s9, %s6400_s12 }
  0xc6   :  { %p5660_p6 = pnand %p5658_p5, %p5655_p4 }
  0xc8   :  { %5663 = shalt.err (!%p5660_p6)
}
  0xc9   :  { %s5664_s22 = scalar_lea.vmem %s149_s1, 16  ;;  %s5668_s6 = scalar_lea.vmem %s149_s1, 32 }
  0xca   :  { %p5665_p7 = scmp.ne.s32.totalorder %s149_s1, %s5664_s22  ;;  %p5669_p8 = scmp.lt.s32.totalorder %s149_s1, %s149_s1 }
  0xcb   :  { %p5670_p9 = scmp.lt.s32.totalorder %s5668_s6, %s5664_s22 }
  0xcd   :  { %p5671_p10 = por %p5670_p9, %p5669_p8 }
  0xcf   :  { %p5672_p11 = pnand %p5671_p10, %p5665_p7 }
  0xd1   :  { %5675 = shalt.err (!%p5672_p11)
}
  0xd2   :  { %151 = dma.hbm_to_vmem [thread:$0]  %s6400_s12, 16, %s149_s1, [#allocation18]  }
  0xd3   :  { %s5753_s5 = smov [#allocation22]   ;;  %s5676_s23 = scalar_lea.hbm %s6402_s14, 16 }
  0xd4   :  { %s168_s13 = sshll.u32 %s5753_s5, 4  ;;  %p5677_p12 = scmp.ne.s32.totalorder %s6402_s14, %s5676_s23  ;;  %s169_s13 = int_to_ptr.vmem [resolvable:$true] %s168_s13 }
  0xd5   :  { %p5680_p13 = scmp.lt.u32.totalorder %s5676_s23, %s6402_s14 }
  0xd7   :  { %p5682_p0 = pnand %p5680_p13, %p5677_p12 }
  0xd9   :  { %5685 = shalt.err (!%p5682_p0)
}
  0xda   :  { %s5686_s11 = scalar_lea.vmem %s169_s13, 16  ;;  %s5690_s12 = scalar_lea.vmem %s169_s13, 32 }
  0xdb   :  { %p5687_p1 = scmp.ne.s32.totalorder %s169_s13, %s5686_s11  ;;  %p5691_p2 = scmp.lt.s32.totalorder %s169_s13, %s169_s13 }
  0xdc   :  { %p5692_p3 = scmp.lt.s32.totalorder %s5690_s12, %s5686_s11 }
  0xde   :  { %p5693_p4 = por %p5692_p3, %p5691_p2 }
  0xe0   :  { %p5694_p5 = pnand %p5693_p4, %p5687_p1 }
  0xe2   :  { %5697 = shalt.err (!%p5694_p5)
}
  0xe3   :  { %171 = dma.hbm_to_vmem [thread:$0]  %s6402_s14, 16, %s169_s13, [#allocation21]  }
  0xe4   :  { %5720 = dma.done.wait [#allocation3], 16  }
  0xe5   :  { %5721 = vsyncadd [#allocation3], 4294967280 }
  0xe6   :  { %5722 = dma.done.wait [#allocation6], 3120  }
  0xe7   :  { %5723 = vsyncadd [#allocation6], 4294964176 }
  0xe8   :  { %5724 = dma.done.wait [#allocation9], 1040  }
  0xe9   :  { %5725 = vsyncadd [#allocation9], 4294966256 }
  0xea   :  { %5726 = dma.done.wait [#allocation12], 32  }
  0xeb   :  { %5727 = vsyncadd [#allocation12], 4294967264 }
  0xec   :  { %5728 = dma.done.wait [#allocation15], 16640  }
  0xed   :  { %5729 = vsyncadd [#allocation15], 4294950656 }
  0xee   :  { %5730 = dma.done.wait [#allocation18], 16400  }
  0xef   :  { %5731 = vsyncadd [#allocation18], 4294950896 }
  0xf0   :  { %5732 = dma.done.wait [#allocation21], 32  }
  0xf1   :  { %5733 = vsyncadd [#allocation21], 4294967264  ;;  %v5754_v0 = vmov 0.0   ;;  %vm5755_vm0 = vmmov 0   ;;  %vm235_vm1 = vcmask 1043456   ;;  %s6408_s25 = sld [smem:[#allocation33_spill]]  ;;  %v315_v37 = vlaneseq }
  0xf2   :  { %4993 = vmatprep.subr.bf16.mxu0 %v5754_v0  ;;  %4995 = vmatprep.mubr.msk.bf16.mxu0 %vm5755_vm0, %v5754_v0  ;;  %s6409_s9 = sld [smem:[#allocation32_spill]]  ;;  %vm231_vm2 = vcmask 64512   ;;  %v5196_v4 = vld [vmem:[#allocation5 + $0x4] ss:$12 sps:$4 sm:$0xff]   ;;  %v5198_v5 = vld [vmem:[#allocation5] ss:$12 sps:$4 sm:$0xff]  }
  0xf3   :  { %v5199_v6 = vld [vmem:[#allocation5 + $0x8] ss:$12 sps:$4 sm:$0xff]   ;;  %458 = vmatprep.subr.bf16.mxu1 %v5196_v4  ;;  %v5202_v8 = vld [vmem:[#allocation5 + $0x18] ss:$12 sps:$4 sm:$0xff]   ;;  %v5203_v9 = vld [vmem:[#allocation5 + $0x20] ss:$12 sps:$4 sm:$0xff]  }
  0xf4   :  { %v5200_v7 = vld [vmem:[#allocation5 + $0x1c] ss:$12 sps:$4 sm:$0xff]   ;;  %459 = vmatpush1.bf16.msra.mxu1 %v5198_v5  ;;  %v5204_v10 = vld [vmem:[#allocation5 + $0x34] ss:$12 sps:$4 sm:$0xff]   ;;  %v5207_v12 = vld [vmem:[#allocation5 + $0x38] ss:$12 sps:$4 sm:$0xff]  }
  0xf5   :  { %460 = vmatprep.subr.bf16.mxu1 %v5200_v7  ;;  %v5206_v11 = vld [vmem:[#allocation5 + $0x30] ss:$12 sps:$4 sm:$0xff]   ;;  %v5208_v13 = vld [vmem:[#allocation5 + $0x4c] ss:$12 sps:$4 sm:$0xff]   ;;  %v5210_v14 = vld [vmem:[#allocation5 + $0x48] ss:$12 sps:$4 sm:$0xff]  }
  0xf6   :  { %v5211_v15 = vld [vmem:[#allocation5 + $0x50] ss:$12 sps:$4 sm:$0xff]   ;;  %v5214_v17 = vld [vmem:[#allocation5 + $0x60] ss:$12 sps:$4 sm:$0xff]   ;;  %v5215_v18 = vld [vmem:[#allocation5 + $0x68] ss:$12 sps:$4 sm:$0xff]  }
  0xf7   :  { %v218_v1 = vld [vmem:[%s6408_s25] sm:$0xf]  ;;  %v5212_v16 = vld [vmem:[#allocation5 + $0x64] ss:$12 sps:$4 sm:$0xff]   ;;  %v5224_v25 = vld [vmem:[#allocation5 + $0xac] ss:$12 sps:$4 sm:$0xff]  }
  0xf8   :  { %v237_v2 = vsel %vm235_vm1, %v218_v1, 0  ;;  %v5195_v3 = vld [vmem:[%s6409_s9] sm:$0xff]   ;;  %461 = vmatpush1.bf16.msra.mxu1 %v5202_v8  ;;  %v5226_v26 = vld [vmem:[#allocation5 + $0xa8] ss:$12 sps:$4 sm:$0xff]   ;;  %v5756_v28 = vmov 0   ;;  %v6056_v38 = vshrl.u32 %v315_v37, 7 }
  0xf9   :  { %4994 = vmatpush3.bf16.msra.mxu0 %v237_v2  ;;  %462 = vmatprep.subr.bf16.mxu1 %v5204_v10  ;;  %v5216_v19 = vld [vmem:[#allocation5 + $0x7c] ss:$12 sps:$4 sm:$0xff]   ;;  %v5218_v20 = vld [vmem:[#allocation5 + $0x78] ss:$12 sps:$4 sm:$0xff]   ;;  %v5219_v21 = vld [vmem:[#allocation5 + $0x80] ss:$12 sps:$4 sm:$0xff]  }
  0xfa   :  { %4999 = vmatprep.subr.bf16.mxu0 %v5754_v0  ;;  %v5220_v22 = vld [vmem:[#allocation5 + $0x94] ss:$12 sps:$4 sm:$0xff]   ;;  %v5222_v23 = vld [vmem:[#allocation5 + $0x90] ss:$12 sps:$4 sm:$0xff]   ;;  %v5223_v24 = vld [vmem:[#allocation5 + $0x98] ss:$12 sps:$4 sm:$0xff]   ;;  %490 = vmatprep.mubr.bf16.mxu1 %v5756_v28 }
  0xfb   :  { %v5227_v27 = vld [vmem:[#allocation5 + $0xb0] ss:$12 sps:$4 sm:$0xff]   ;;  %v6059_v39 = vsub.s32 0, %v6056_v38  ;;  %v6061_v40 = vld [vmem:[#allocation7] sm:$0x7]  ;;  %v6064_v41 = vsub.s32 1, %v6056_v38 }
  0xfc   :  { %4996 = vmatmul.mubr.msk.bf16.vlgmr.msra.gmra.mrb[0].mxu0 %vm231_vm2, %v5195_v3  ;;  %463 = vmatpush1.bf16.msra.mxu1 %v5206_v11  ;;  %v4434_v29 = vld [vmem:[#allocation2] ss:$0 sm:$0xff]  ;;  %vm596_vm3 = vcmask 261120   ;;  %s5757_s26 = smov 96   ;;  %s5758_s2 = smov 32   ;;  %v6101_v7 = vsub.s32 2, %v6056_v38 }
  0xfd   :  { %5000 = vmatpush3.bf16.msra.mxu0 %v5199_v6  ;;  %5015 = vmatprep.mubr.msk.bf16.mxu0 %vm5755_vm0, %v5754_v0  ;;  %v318_v42 = vrot.slane %v6061_v40, %v6059_v39  ;;  %v322_v43 = vrot.slane %v6061_v40, %v6064_v41  ;;  %vm1471_vm5 = vcmask 523264   ;;  %vm1474_vm6 = vcmask 785408   ;;  %s5760_s12 = smov [#allocation23]  }
  0xfe   :  { %5001 = vmatprep.subr.bf16.mxu0 %v5754_v0  ;;  %464 = vmatprep.subr.bf16.mxu1 %v5208_v13  ;;  %v326_v11 = vrot.slane %v6061_v40, %v6101_v7  ;;  %vm4320_vm7 = vcmask 1041409   ;;  %s4419_s1 = sshll.u32 %s5760_s12, 4  ;;  %s4420_s1 = int_to_ptr.vmem [resolvable:$true] %s4419_s1 }
  0xff   :  { %s5698_s8 = scalar_lea.vmem %s4420_s1, 32  ;;  %p5703_p7 = scmp.lt.s32.totalorder %s4420_s1, %s4420_s1 }
 0x100   :  { %465 = vmatpush1.bf16.msra.mxu1 %v5210_v14  ;;  %p5699_p6 = scmp.ne.s32.totalorder %s4420_s1, %s5698_s8  ;;  %p5704_p8 = scmp.lt.s32.totalorder %s5698_s8, %s5698_s8 }
 0x101   :  { %5002 = vmatpush3.bf16.msra.mxu0 %v5203_v9  ;;  %466 = vmatprep.subr.bf16.mxu1 %v5212_v16 }
 0x102   :  { %5003 = vmatprep.subr.bf16.mxu0 %v5754_v0  ;;  %p5705_p9 = por %p5704_p8, %p5703_p7 }
 0x104   :  { %467 = vmatpush1.bf16.msra.mxu1 %v5214_v17  ;;  %p5706_p10 = pnand %p5705_p9, %p5699_p6 }
 0x105   :  { %5004 = vmatpush3.bf16.msra.mxu0 %v5207_v12  ;;  %468 = vmatprep.subr.bf16.mxu1 %v5216_v19 }
 0x106   :  { %5005 = vmatprep.subr.bf16.mxu0 %v5754_v0 }
 0x108   :  { %469 = vmatpush1.bf16.msra.mxu1 %v5218_v20 }
 0x109   :  { %5006 = vmatpush3.bf16.msra.mxu0 %v5211_v15  ;;  %470 = vmatprep.subr.bf16.mxu1 %v5220_v22 }
 0x10a   :  { %5007 = vmatprep.subr.bf16.mxu0 %v5754_v0 }
 0x10c   :  { %471 = vmatpush1.bf16.msra.mxu1 %v5222_v23 }
 0x10d   :  { %5008 = vmatpush3.bf16.msra.mxu0 %v5215_v18  ;;  %472 = vmatprep.subr.bf16.mxu1 %v5224_v25  ;;  %v551_v25 = vand.u32 127, %v315_v37 }
 0x10e   :  { %5009 = vmatprep.subr.bf16.mxu0 %v5754_v0 }
 0x10f   :  { %vm552_vm4 = vcmp.ge.s32.totalorder %v6056_v38, %v551_v25 }
 0x110   :  { %473 = vmatpush1.bf16.msra.mxu1 %v5226_v26 }
 0x111   :  { %5010 = vmatpush3.bf16.msra.mxu0 %v5219_v21  ;;  %5019 = vmatprep.subr.bf16.mxu1 %v5754_v0 }
 0x112   :  { %5011 = vmatprep.subr.bf16.mxu0 %v5754_v0 }
 0x115   :  { %5012 = vmatpush3.bf16.msra.mxu0 %v5223_v24 }
 0x116   :  { %5013 = vmatprep.subr.bf16.mxu0 %v5754_v0 }
 0x119   :  { %5014 = vmatpush3.bf16.msra.mxu0 %v5227_v27  ;;  %v5759_v27 = vmov -1e+30  }
 0x11a   :  { %5025 = vmatprep.subr.bf16.mxu0 %v5754_v0 }
 0x1cf   :  { %v273_v30 = vpop.f32.mrb[0].mxu0 }
 0x1d0   :  { %v4997_v31 = vpop.f32.mrb[1].mxu0  ;;  %v6045_v33 = vadd.f32 %v4434_v29, %v273_v30 }
 0x1d1   :  { %v276_v32 = vpop.f32.mrb[2].mxu0 }
 0x1d2   :  { %v6047_v34 = vadd.f32 %v4434_v29, %v276_v32  ;;  %v4998_v35 = vpop.f32.mrb[3].mxu0  ;;  %v553_v29 = vsel %vm552_vm4, 0.0, %v5759_v27 }
 0x1d4   :  { %v280_v36 = vpack.c.bf16 %v6047_v34, %v6045_v33 }
 0x1d6   :  { %491 = vmatmul.mubr.bf16.vlgmr.msra.gmra.mrb[0].mxu1 %v280_v36  ;;  %5016 = vmatmul.mubr.bf16.vlgmr.msra.gmra.mrb[4].mxu0 %v280_v36 }
 0x1d7   :  { %5021 = vmatprep.mubr.msk.bf16.mxu1 %vm5755_vm0, %v5754_v0  ;;  %5027 = vmatprep.mubr.msk.bf16.mxu0 %vm5755_vm0, %v5754_v0 }
 0x2a9   :  { %v492_v44 = vpop.f32.mrb[0].mxu1  ;;  %v6070_v45 = vpop.f32.mrb[4].mxu0 }
 0x2aa   :  { %v493_v46 = vadd.f32 %v492_v44, %v318_v42  ;;  %v494_v47 = vpop.f32.mrb[1].mxu1  ;;  %v5017_v48 = vpop.f32.mrb[5].mxu0  ;;  %v536_v14 = vadd.f32 %v6070_v45, %v326_v11 }
 0x2ab   :  { %v495_v49 = vadd.f32 %v494_v47, %v322_v43  ;;  %v496_v50 = vpop.f32.mrb[2].mxu1  ;;  %v6072_v51 = vpop.f32.mrb[6].mxu0 }
 0x2ac   :  { %v542_v52 = vpack.c.bf16 %v493_v46, %v493_v46  ;;  %v497_v53 = vadd.f32 %v496_v50, %v318_v42  ;;  %v498_v54 = vpop.f32.mrb[3].mxu1  ;;  %v5018_v55 = vpop.f32.mrb[7].mxu0  ;;  %v6121_v17 = vpack.c.bf16 %v536_v14, %v536_v14  ;;  %v539_v18 = vadd.f32 %v6072_v51, %v326_v11 }
 0x2ad   :  { %v543_v56 = vpack.c.bf16 %v495_v49, %v495_v49  ;;  %v499_v57 = vadd.f32 %v498_v54, %v322_v43 }
 0x2ae   :  { %556 = vrot.lane.b32.xlu1 %v542_v52, %s5757_s26  ;;  %v545_v60 = vpack.c.bf16 %v497_v53, %v497_v53  ;;  %v6129_v21 = vpack.c.bf16 %v539_v18, %v539_v18  ;;  %v1081_v22 = vsel %vm235_vm1, %v6121_v17, 0 }
 0x2af   :  { %v546_v58 = vpack.c.bf16 %v499_v57, %v499_v57  ;;  %570 = vrot.lane.b32.xlu0 %v543_v56, %s5757_s26  ;;  %v601_v59 = vsel %vm596_vm3, %v543_v56, 0 }
 0x2b0   :  { %5020 = vmatpush3.bf16.xpose.msra.mxu1 %v601_v59  ;;  %v1127_v24 = vsel %vm235_vm1, %v6129_v21, 0 }
 0x2b1   :  { %v647_v61 = vsel %vm596_vm3, %v546_v58, 0  ;;  %5031 = vmatprep.subr.bf16.mxu1 %v5754_v0 }
 0x2b2   :  { %5026 = vmatpush3.bf16.xpose.msra.mxu0 %v647_v61  ;;  %558 = vrot.lane.b32.xlu1 %v545_v60, %s5757_s26 }
 0x2b3   :  { %572 = vrot.lane.b32.xlu0 %v546_v58, %s5757_s26  ;;  %5037 = vmatprep.subr.bf16.mxu0 %v5754_v0 }
 0x2b6   :  { %576 = vrot.lane.b32.xlu1 %v546_v58, %s5740_s3 }
 0x2b7   :  { %574 = vrot.lane.b32.xlu0 %v543_v56, %s5740_s3  ;;  %5022 = vmatmul.mubr.msk.bf16.vlgmr.msra.gmra.mrb[4].mxu1 %vm596_vm3, %v542_v52 }
 0x2b8   :  { %5033 = vmatprep.mubr.msk.bf16.mxu1 %vm5755_vm0, %v5754_v0 }
 0x2b9   :  { %5028 = vmatmul.mubr.msk.bf16.vlgmr.msra.gmra.mrb[8].mxu0 %vm596_vm3, %v545_v60 }
 0x2ba   :  { %562 = vrot.lane.b32.xlu1 %v545_v60, %s5740_s3  ;;  %5039 = vmatprep.mubr.msk.bf16.mxu0 %vm5755_vm0, %v5754_v0 }
 0x2bb   :  { %560 = vrot.lane.b32.xlu0 %v542_v52, %s5740_s3 }
 0x2be   :  { %580 = vrot.lane.b32.xlu1 %v546_v58, %s5758_s2 }
 0x2bf   :  { %578 = vrot.lane.b32.xlu0 %v543_v56, %s5758_s2 }
 0x2c2   :  { %566 = vrot.lane.b32.xlu1 %v545_v60, %s5758_s2 }
 0x2c3   :  { %564 = vrot.lane.b32.xlu0 %v542_v52, %s5758_s2 }
 0x320   :  { %v557_v62 = vpop.permute.xlu1 %556 }
 0x321   :  { %v571_v63 = vpop.permute.xlu0 %570 }
 0x322   :  { %v693_v1 = vsel %vm596_vm3, %v571_v63, 0 }
 0x323   :  { %5032 = vmatpush3.bf16.xpose.msra.mxu1 %v693_v1 }
 0x324   :  { %v559_v2 = vpop.permute.xlu1 %558  ;;  %5043 = vmatprep.subr.bf16.mxu1 %v5754_v0 }
 0x325   :  { %v573_v3 = vpop.permute.xlu0 %572 }
 0x326   :  { %v739_v4 = vsel %vm596_vm3, %v573_v3, 0 }
 0x327   :  { %5038 = vmatpush3.bf16.xpose.msra.mxu0 %v739_v4 }
 0x328   :  { %v577_v5 = vpop.permute.xlu1 %576  ;;  %5049 = vmatprep.subr.bf16.mxu0 %v5754_v0 }
 0x329   :  { %v575_v6 = vpop.permute.xlu0 %574  ;;  %v831_v12 = vsel %vm596_vm3, %v577_v5, 0 }
 0x32a   :  { %v785_v8 = vsel %vm596_vm3, %v575_v6, 0  ;;  %5034 = vmatmul.mubr.msk.bf16.vlgmr.msra.gmra.mrb[8].mxu1 %vm596_vm3, %v557_v62 }
 0x32b   :  { %5044 = vmatpush3.bf16.xpose.msra.mxu1 %v785_v8  ;;  %5045 = vmatprep.mubr.msk.bf16.mxu1 %vm5755_vm0, %v5754_v0 }
 0x32c   :  { %5055 = vmatprep.subr.bf16.mxu1 %v5754_v0  ;;  %v563_v9 = vpop.permute.xlu1 %562 }
 0x32d   :  { %v561_v10 = vpop.permute.xlu0 %560 }
 0x32e   :  { %5040 = vmatmul.mubr.msk.bf16.vlgmr.msra.gmra.mrb[12].mxu0 %vm596_vm3, %v559_v2 }
 0x32f   :  { %5050 = vmatpush3.bf16.xpose.msra.mxu0 %v831_v12  ;;  %5051 = vmatprep.mubr.msk.bf16.mxu0 %vm5755_vm0, %v5754_v0 }
 0x330   :  { %5061 = vmatprep.subr.bf16.mxu0 %v5754_v0  ;;  %v581_v16 = vpop.permute.xlu1 %580 }
 0x331   :  { %v579_v13 = vpop.permute.xlu0 %578  ;;  %v923_v19 = vsel %vm596_vm3, %v581_v16, 0 }
 0x332   :  { %v877_v15 = vsel %vm596_vm3, %v579_v13, 0  ;;  %5046 = vmatmul.mubr.msk.bf16.vlgmr.msra.gmra.mrb[12].mxu1 %vm596_vm3, %v561_v10 }
 0x333   :  { %5056 = vmatpush3.bf16.xpose.msra.mxu1 %v877_v15  ;;  %5057 = vmatprep.mubr.msk.bf16.mxu1 %vm5755_vm0, %v5754_v0 }
 0x334   :  { %5067 = vmatprep.subr.bf16.mxu1 %v5754_v0  ;;  %v567_v23 = vpop.permute.xlu1 %566 }
 0x335   :  { %v565_v20 = vpop.permute.xlu0 %564 }
 0x336   :  { %5052 = vmatmul.mubr.msk.bf16.vlgmr.msra.gmra.mrb[16].mxu0 %vm596_vm3, %v563_v9 }
 0x337   :  { %5062 = vmatpush3.bf16.xpose.msra.mxu0 %v923_v19  ;;  %5063 = vmatprep.mubr.msk.bf16.mxu0 %vm5755_vm0, %v5754_v0 }
 0x338   :  { %5073 = vmatprep.subr.bf16.mxu0 %v5754_v0 }
 0x33a   :  { %5058 = vmatmul.mubr.msk.bf16.vlgmr.msra.gmra.mrb[16].mxu1 %vm596_vm3, %v565_v20 }
 0x33b   :  { %5068 = vmatpush3.bf16.msra.mxu1 %v1081_v22  ;;  %5069 = vmatprep.mubr.msk.bf16.mxu1 %vm5755_vm0, %v5754_v0 }
 0x33c   :  { %5079 = vmatprep.subr.bf16.mxu1 %v5754_v0 }
 0x33e   :  { %5064 = vmatmul.mubr.msk.bf16.vlgmr.msra.gmra.mrb[20].mxu0 %vm596_vm3, %v567_v23 }
 0x33f   :  { %5074 = vmatpush3.bf16.msra.mxu0 %v1127_v24  ;;  %5075 = vmatprep.mubr.msk.bf16.mxu0 %vm5755_vm0, %v5754_v0 }
 0x340   :  { %5085 = vmatprep.subr.bf16.mxu0 %v5754_v0 }
 0x38a   :  { %v637_v26 = vpop.f32.mrb[4].mxu1 }
 0x38b   :  { %v965_v30 = vmul.f32 0.17677669, %v637_v26  ;;  %v5023_v31 = vpop.f32.mrb[5].mxu1 }
 0x38c   :  { %v640_v32 = vpop.f32.mrb[6].mxu1  ;;  %v683_v35 = vpop.f32.mrb[8].mxu0 }
 0x38d   :  { %v966_v36 = vmul.f32 0.17677669, %v683_v35  ;;  %v5024_v40 = vpop.f32.mrb[7].mxu1  ;;  %v5029_v42 = vpop.f32.mrb[9].mxu0  ;;  %v6145_v43 = vadd.f32 %v965_v30, %v553_v29 }
 0x38e   :  { %v686_v44 = vpop.f32.mrb[10].mxu0 }
 0x38f   :  { %v5030_v45 = vpop.f32.mrb[11].mxu0  ;;  %v981_v46 = vsel %vm231_vm2, %v6145_v43, -inf  ;;  %v974_v37 = vadd.f32 %v966_v36, %v553_v29 }
 0x390   :  { %982 = vmax.xlane.f32.xlu0 %v981_v46 }
 0x391   :  { %v984_v47 = vsel %vm231_vm2, %v974_v37, -inf }
 0x392   :  { %985 = vmax.xlane.f32.xlu1 %v984_v47 }
 0x3fd   :  { %v729_v48 = vpop.f32.mrb[8].mxu1 }
 0x3fe   :  { %v967_v49 = vmul.f32 0.17677669, %v729_v48  ;;  %v5035_v50 = vpop.f32.mrb[9].mxu1 }
 0x3ff   :  { %v732_v51 = vpop.f32.mrb[10].mxu1 }
 0x400   :  { %v5036_v52 = vpop.f32.mrb[11].mxu1  ;;  %v975_v53 = vadd.f32 %v967_v49, %v553_v29 }
 0x401   :  { %v775_v54 = vpop.f32.mrb[12].mxu0 }
 0x402   :  { %v968_v55 = vmul.f32 0.17677669, %v775_v54  ;;  %v5041_v56 = vpop.f32.mrb[13].mxu0  ;;  %v987_v57 = vsel %vm231_vm2, %v975_v53, -inf }
 0x403   :  { %988 = vmax.xlane.f32.xlu0 %v987_v57  ;;  %v778_v58 = vpop.f32.mrb[14].mxu0 }
 0x404   :  { %v5042_v59 = vpop.f32.mrb[15].mxu0  ;;  %v976_v60 = vadd.f32 %v968_v55, %v553_v29 }
 0x405   :  { %v821_v61 = vpop.f32.mrb[12].mxu1 }
 0x406   :  { %v969_v62 = vmul.f32 0.17677669, %v821_v61  ;;  %v5047_v63 = vpop.f32.mrb[13].mxu1  ;;  %v990_v1 = vsel %vm231_vm2, %v976_v60, -inf }
 0x407   :  { %v824_v2 = vpop.f32.mrb[14].mxu1  ;;  %991 = vmax.xlane.f32.xlu0 %v990_v1 }
 0x408   :  { %v5048_v3 = vpop.f32.mrb[15].mxu1  ;;  %v6152_v4 = vadd.f32 %v969_v62, %v553_v29 }
 0x409   :  { %v867_v5 = vpop.f32.mrb[16].mxu0 }
 0x40a   :  { %v970_v6 = vmul.f32 0.17677669, %v867_v5  ;;  %v5053_v8 = vpop.f32.mrb[17].mxu0  ;;  %v993_v9 = vsel %vm231_vm2, %v6152_v4, -inf }
 0x40b   :  { %994 = vmax.xlane.f32.xlu1 %v993_v9  ;;  %v870_v10 = vpop.f32.mrb[18].mxu0 }
 0x40c   :  { %v5054_v11 = vpop.f32.mrb[19].mxu0  ;;  %v978_v12 = vadd.f32 %v970_v6, %v553_v29 }
 0x40d   :  { %v913_v13 = vpop.f32.mrb[16].mxu1 }
 0x40e   :  { %v971_v14 = vmul.f32 0.17677669, %v913_v13  ;;  %v5059_v15 = vpop.f32.mrb[17].mxu1  ;;  %v996_v16 = vsel %vm231_vm2, %v978_v12, -inf }
 0x40f   :  { %v916_v18 = vpop.f32.mrb[18].mxu1  ;;  %997 = vmax.xlane.f32.xlu0 %v996_v16 }
 0x410   :  { %v5060_v19 = vpop.f32.mrb[19].mxu1  ;;  %v979_v20 = vadd.f32 %v971_v14, %v553_v29 }
 0x411   :  { %v959_v22 = vpop.f32.mrb[20].mxu0 }
 0x412   :  { %v972_v23 = vmul.f32 0.17677669, %v959_v22  ;;  %v5065_v24 = vpop.f32.mrb[21].mxu0  ;;  %v999_v25 = vsel %vm231_vm2, %v979_v20, -inf }
 0x413   :  { %1000 = vmax.xlane.f32.xlu1 %v999_v25  ;;  %v962_v26 = vpop.f32.mrb[22].mxu0 }
 0x414   :  { %v5066_v27 = vpop.f32.mrb[23].mxu0  ;;  %v980_v30 = vadd.f32 %v972_v23, %v553_v29 }
 0x416   :  { %v1002_v31 = vsel %vm231_vm2, %v980_v30, -inf }
 0x417   :  { %1003 = vmax.xlane.f32.xlu0 %v1002_v31 }
 0x41d   :  { %v983_v42 = vpop.xlane.xlu0 %982 }
 0x41e   :  { %v1005_v45 = vsub.f32 %v6145_v43, %v983_v42 }
 0x41f   :  { %v986_v32 = vpop.xlane.xlu1 %985 }
 0x420   :  { %v1006_v35 = vsub.f32 %v974_v37, %v986_v32  ;;  %v1013_v46 = vmul.f32 1.442695, %v1005_v45 }
 0x422   :  { %v1015_v36 = vmul.f32 1.442695, %v1006_v35 }
 0x424   :  { %5372 = vpow2.f32 %v1015_v36  ;;  %584 = vrot.lane.b32.xlu1 %v6121_v17, %s5757_s26 }
 0x425   :  { %5374 = vpow2.f32 %v1013_v46 }
 0x42e   :  { %v5373_v40 = vpop.eup %5372 }
 0x42f   :  { %v1032_v44 = vsel %vm231_vm2, %v5373_v40, 0.0  ;;  %v5375_v29 = vpop.eup %5374 }
 0x430   :  { %1033 = vadd.xlane.f32.xlu0 %v1032_v44  ;;  %v1029_v47 = vsel %vm231_vm2, %v5375_v29, 0.0 }
 0x448   :  { %1030 = vadd.xlane.f32.xlu1 %v1029_v47 }
 0x490   :  { %v989_v48 = vpop.xlane.xlu0 %988 }
 0x491   :  { %v1007_v37 = vsub.f32 %v975_v53, %v989_v48 }
 0x493   :  { %v1017_v49 = vmul.f32 1.442695, %v1007_v37 }
 0x494   :  { %v992_v50 = vpop.xlane.xlu0 %991 }
 0x495   :  { %5376 = vpow2.f32 %v1017_v49  ;;  %v1008_v51 = vsub.f32 %v976_v60, %v992_v50 }
 0x497   :  { %v1019_v52 = vmul.f32 1.442695, %v1008_v51 }
 0x498   :  { %v995_v59 = vpop.xlane.xlu1 %994 }
 0x499   :  { %5378 = vpow2.f32 %v1019_v52  ;;  %v1009_v60 = vsub.f32 %v6152_v4, %v995_v59 }
 0x49b   :  { %v1021_v63 = vmul.f32 1.442695, %v1009_v60 }
 0x49c   :  { %v998_v53 = vpop.xlane.xlu0 %997 }
 0x49d   :  { %v1010_v61 = vsub.f32 %v978_v12, %v998_v53 }
 0x49f   :  { %v6164_v54 = vpop.eup %5376  ;;  %v1023_v3 = vmul.f32 1.442695, %v1010_v61 }
 0x4a0   :  { %v1035_v55 = vsel %vm231_vm2, %v6164_v54, 0.0  ;;  %v1001_v62 = vpop.xlane.xlu1 %1000 }
 0x4a1   :  { %1036 = vadd.xlane.f32.xlu1 %v1035_v55  ;;  %v1011_v1 = vsub.f32 %v979_v20, %v1001_v62 }
 0x4a3   :  { %v6168_v43 = vpop.eup %5378  ;;  %v1025_v8 = vmul.f32 1.442695, %v1011_v1 }
 0x4a4   :  { %v1038_v56 = vsel %vm231_vm2, %v6168_v43, 0.0  ;;  %v1004_v57 = vpop.xlane.xlu0 %1003  ;;  %v585_v4 = vpop.permute.xlu1 %584 }
 0x4a5   :  { %1039 = vadd.xlane.f32.xlu0 %v1038_v56  ;;  %v1012_v5 = vsub.f32 %v980_v30, %v1004_v57  ;;  %v1173_v25 = vsel %vm235_vm1, %v585_v4, 0  ;;  %v5228_v4 = vld [vmem:[#allocation8] sm:$0xff]  }
 0x4a7   :  { %v1027_v10 = vmul.f32 1.442695, %v1012_v5 }
 0x4b2   :  { %588 = vrot.lane.b32.xlu1 %v6121_v17, %s5740_s3 }
 0x4b6   :  { %590 = vrot.lane.b32.xlu1 %v6129_v21, %s5740_s3 }
 0x4bb   :  { %586 = vrot.lane.b32.xlu0 %v6129_v21, %s5757_s26 }
 0x4bd   :  { %v1034_v58 = vpop.xlane.xlu0 %1033 }
 0x4be   :  { %5380 = vrcp.f32 %v1034_v58 }
 0x4bf   :  { %5382 = vpow2.f32 %v1021_v63 }
 0x4c0   :  { %5384 = vpow2.f32 %v1023_v3 }
 0x4c1   :  { %5386 = vpow2.f32 %v1025_v8 }
 0x4c2   :  { %5388 = vpow2.f32 %v1027_v10 }
 0x4c8   :  { %v5381_v2 = vpop.eup %5380 }
 0x4c9   :  { %v1062_v6 = vmul.f32 %v5381_v2, %v5373_v40  ;;  %v5383_v11 = vpop.eup %5382 }
 0x4ca   :  { %v5385_v13 = vpop.eup %5384  ;;  %v1041_v15 = vsel %vm231_vm2, %v5383_v11, 0.0 }
 0x4cb   :  { %v1070_v9 = vpack.c.bf16 %v1062_v6, %v1062_v6  ;;  %v6182_v14 = vpop.eup %5386  ;;  %v1044_v16 = vsel %vm231_vm2, %v5385_v13, 0.0 }
 0x4cc   :  { %v6186_v18 = vpop.eup %5388  ;;  %v1047_v19 = vsel %vm231_vm2, %v6182_v14, 0.0 }
 0x4cd   :  { %5076 = vmatmul.mubr.msk.bf16.vlgmr.msra.gmra.mrb[24].mxu0 %vm231_vm2, %v1070_v9  ;;  %v1050_v20 = vsel %vm231_vm2, %v6186_v18, 0.0 }
 0x4ce   :  { %5087 = vmatprep.mubr.msk.bf16.mxu0 %vm5755_vm0, %v5754_v0 }
 0x4d5   :  { %v1031_v12 = vpop.xlane.xlu1 %1030 }
 0x4d6   :  { %5390 = vrcp.f32 %v1031_v12 }
 0x4da   :  { %1042 = vadd.xlane.f32.xlu1 %v1041_v15  ;;  %1045 = vadd.xlane.f32.xlu0 %v1044_v16  ;;  %v5230_v15 = vld [vmem:[#allocation8 + $0x10] sm:$0xff]  }
 0x4de   :  { %1048 = vadd.xlane.f32.xlu1 %v1047_v19  ;;  %1051 = vadd.xlane.f32.xlu0 %v1050_v20 }
 0x4e0   :  { %v5391_v22 = vpop.eup %5390 }
 0x4e1   :  { %v1061_v23 = vmul.f32 %v5391_v22, %v5375_v29 }
 0x4e3   :  { %v1069_v24 = vpack.c.bf16 %v1061_v23, %v1061_v23  ;;  %v5231_v23 = vld [vmem:[#allocation8 + $0x18] sm:$0xff]  }
 0x4e5   :  { %5070 = vmatmul.mubr.msk.bf16.vlgmr.msra.gmra.mrb[20].mxu1 %vm231_vm2, %v1069_v24 }
 0x4e6   :  { %5080 = vmatpush3.bf16.msra.mxu1 %v1173_v25  ;;  %5081 = vmatprep.mubr.msk.bf16.mxu1 %vm5755_vm0, %v5754_v0  ;;  %v5232_v25 = vld [vmem:[#allocation8 + $0x20] sm:$0xff]  }
 0x4e7   :  { %5091 = vmatprep.subr.bf16.mxu1 %v5754_v0 }
 0x4ef   :  { %594 = vrot.lane.b32.xlu1 %v6129_v21, %s5758_s2 }
 0x4f4   :  { %592 = vrot.lane.b32.xlu0 %v6121_v17, %s5758_s2 }
 0x52e   :  { %v1037_v26 = vpop.xlane.xlu1 %1036 }
 0x52f   :  { %5392 = vrcp.f32 %v1037_v26  ;;  %v5233_v26 = vld [vmem:[#allocation8 + $0x28] sm:$0xff]  }
 0x532   :  { %v1040_v27 = vpop.xlane.xlu0 %1039  ;;  %v589_v35 = vpop.permute.xlu1 %588 }
 0x533   :  { %5394 = vrcp.f32 %v1040_v27  ;;  %v1265_v21 = vsel %vm235_vm1, %v589_v35, 0  ;;  %v5234_v27 = vld [vmem:[#allocation8 + $0x30] sm:$0xff]  }
 0x536   :  { %v587_v30 = vpop.permute.xlu0 %586  ;;  %v591_v44 = vpop.permute.xlu1 %590 }
 0x537   :  { %v1219_v31 = vsel %vm235_vm1, %v587_v30, 0  ;;  %v1311_v46 = vsel %vm235_vm1, %v591_v44, 0 }
 0x538   :  { %5086 = vmatpush3.bf16.msra.mxu0 %v1219_v31  ;;  %v5235_v31 = vld [vmem:[#allocation8 + $0x38] sm:$0xff]  }
 0x539   :  { %v5393_v32 = vpop.eup %5392  ;;  %5097 = vmatprep.subr.bf16.mxu0 %v5754_v0 }
 0x53a   :  { %v1063_v36 = vmul.f32 %v5393_v32, %v6164_v54 }
 0x53c   :  { %v1071_v40 = vpack.c.bf16 %v1063_v36, %v1063_v36 }
 0x53d   :  { %v5395_v42 = vpop.eup %5394 }
 0x53e   :  { %v1064_v17 = vmul.f32 %v5395_v42, %v6168_v43  ;;  %5082 = vmatmul.mubr.msk.bf16.vlgmr.msra.gmra.mrb[24].mxu1 %vm231_vm2, %v1071_v40 }
 0x53f   :  { %5092 = vmatpush3.bf16.msra.mxu1 %v1265_v21  ;;  %5093 = vmatprep.mubr.msk.bf16.mxu1 %vm5755_vm0, %v5754_v0 }
 0x540   :  { %v1072_v45 = vpack.c.bf16 %v1064_v17, %v1064_v17  ;;  %5103 = vmatprep.subr.bf16.mxu1 %v5754_v0 }
 0x542   :  { %5088 = vmatmul.mubr.msk.bf16.vlgmr.msra.gmra.mrb[28].mxu0 %vm231_vm2, %v1072_v45 }
 0x543   :  { %5098 = vmatpush3.bf16.msra.mxu0 %v1311_v46  ;;  %5099 = vmatprep.mubr.msk.bf16.mxu0 %vm5755_vm0, %v5754_v0 }
 0x544   :  { %5109 = vmatprep.subr.bf16.mxu0 %v5754_v0 }
 0x567   :  { %v1043_v29 = vpop.xlane.xlu1 %1042  ;;  %v1046_v47 = vpop.xlane.xlu0 %1045 }
 0x568   :  { %5396 = vrcp.f32 %v1043_v29 }
 0x569   :  { %5398 = vrcp.f32 %v1046_v47 }
 0x56b   :  { %v1049_v48 = vpop.xlane.xlu1 %1048  ;;  %v1052_v37 = vpop.xlane.xlu0 %1051 }
 0x56c   :  { %5400 = vrcp.f32 %v1049_v48 }
 0x56d   :  { %5402 = vrcp.f32 %v1052_v37 }
 0x56f   :  { %v593_v54 = vpop.permute.xlu0 %592  ;;  %v595_v55 = vpop.permute.xlu1 %594 }
 0x570   :  { %v1357_v58 = vsel %vm235_vm1, %v593_v54, 0  ;;  %v1403_v59 = vsel %vm235_vm1, %v595_v55, 0 }
 0x572   :  { %v5397_v49 = vpop.eup %5396 }
 0x573   :  { %v5399_v50 = vpop.eup %5398  ;;  %v1065_v51 = vmul.f32 %v5397_v49, %v5383_v11  ;;  %v5229_v11 = vld [vmem:[#allocation8 + $0x8] sm:$0xff]  }
 0x574   :  { %v1066_v52 = vmul.f32 %v5399_v50, %v5385_v13 }
 0x575   :  { %v1073_v43 = vpack.c.bf16 %v1065_v51, %v1065_v51 }
 0x576   :  { %v5401_v56 = vpop.eup %5400  ;;  %v1074_v53 = vpack.c.bf16 %v1066_v52, %v1066_v52 }
 0x577   :  { %v5403_v57 = vpop.eup %5402  ;;  %5094 = vmatmul.mubr.msk.bf16.vlgmr.msra.gmra.mrb[28].mxu1 %vm231_vm2, %v1073_v43  ;;  %v1067_v60 = vmul.f32 %v5401_v56, %v6182_v14 }
 0x578   :  { %5100 = vmatmul.mubr.msk.bf16.vlgmr.msra.gmra.mrb[32].mxu0 %vm231_vm2, %v1074_v53  ;;  %5104 = vmatpush3.bf16.msra.mxu1 %v1357_v58  ;;  %v1068_v61 = vmul.f32 %v5403_v57, %v6186_v18 }
 0x579   :  { %5110 = vmatpush3.bf16.msra.mxu0 %v1403_v59  ;;  %5105 = vmatprep.mubr.msk.bf16.mxu1 %vm5755_vm0, %v5754_v0  ;;  %v1075_v62 = vpack.c.bf16 %v1067_v60, %v1067_v60 }
 0x57a   :  { %5111 = vmatprep.mubr.msk.bf16.mxu0 %vm5755_vm0, %v5754_v0  ;;  %5115 = vmatprep.subr.bf16.mxu1 %v5754_v0  ;;  %v1076_v63 = vpack.c.bf16 %v1068_v61, %v1068_v61 }
 0x57f   :  { %5106 = vmatmul.mubr.msk.bf16.vlgmr.msra.gmra.mrb[32].mxu1 %vm231_vm2, %v1075_v62 }
 0x580   :  { %5112 = vmatmul.mubr.msk.bf16.vlgmr.msra.gmra.mrb[36].mxu0 %vm231_vm2, %v1076_v63  ;;  %5131 = vmatprep.mubr.msk.bf16.mxu1 %vm5755_vm0, %v5754_v0 }
 0x581   :  { %1880 = vmatprep.mubr.bf16.mxu0 %v5756_v28  ;;  %5116 = vmatpush3.bf16.msra.mxu1 %v5228_v4 }
 0x582   :  { %5117 = vmatprep.subr.bf16.mxu1 %v5754_v0 }
 0x585   :  { %5118 = vmatpush3.bf16.msra.mxu1 %v5229_v11 }
 0x586   :  { %5119 = vmatprep.subr.bf16.mxu1 %v5754_v0 }
 0x589   :  { %5120 = vmatpush3.bf16.msra.mxu1 %v5230_v15  ;;  %v1636_v15 = vld [vmem:[#allocation14 + $0x40] sm:$0xff] }
 0x58a   :  { %5121 = vmatprep.subr.bf16.mxu1 %v5754_v0 }
 0x58d   :  { %5122 = vmatpush3.bf16.msra.mxu1 %v5231_v23  ;;  %v1640_v23 = vld [vmem:[#allocation14 + $0xc0] sm:$0xff] }
 0x58e   :  { %5123 = vmatprep.subr.bf16.mxu1 %v5754_v0 }
 0x591   :  { %5124 = vmatpush3.bf16.msra.mxu1 %v5232_v25 }
 0x592   :  { %5125 = vmatprep.subr.bf16.mxu1 %v5754_v0 }
 0x595   :  { %5126 = vmatpush3.bf16.msra.mxu1 %v5233_v26 }
 0x596   :  { %5127 = vmatprep.subr.bf16.mxu1 %v5754_v0 }
 0x599   :  { %5128 = vmatpush3.bf16.msra.mxu1 %v5234_v27  ;;  %v1639_v27 = vld [vmem:[#allocation14 + $0x88] sm:$0xff] }
 0x59a   :  { %5129 = vmatprep.subr.bf16.mxu1 %v5754_v0 }
 0x59d   :  { %5130 = vmatpush3.bf16.msra.mxu1 %v5235_v31 }
 0x5a0   :  { %v6231_v1 = vpop.f32.mrb[24].mxu0 }
 0x5a1   :  { %v5077_v2 = vpop.f32.mrb[25].mxu0 }
 0x5a2   :  { %v1166_v3 = vpop.f32.mrb[26].mxu0 }
 0x5a3   :  { %v5078_v5 = vpop.f32.mrb[27].mxu0 }
 0x5b8   :  { %v6233_v6 = vpop.f32.mrb[20].mxu1 }
 0x5b9   :  { %v5071_v8 = vpop.f32.mrb[21].mxu1 }
 0x5ba   :  { %v1120_v9 = vpop.f32.mrb[22].mxu1  ;;  %v4477_v8 = vld [vmem:[#allocation10] ss:$0 sm:$0xff] }
 0x5bb   :  { %v5072_v10 = vpop.f32.mrb[23].mxu1 }
 0x611   :  { %v1209_v12 = vpop.f32.mrb[24].mxu1 }
 0x612   :  { %v5083_v13 = vpop.f32.mrb[25].mxu1 }
 0x613   :  { %v1212_v14 = vpop.f32.mrb[26].mxu1 }
 0x614   :  { %v5084_v16 = vpop.f32.mrb[27].mxu1  ;;  %v1634_v14 = vld [vmem:[#allocation14] sm:$0xff] }
 0x615   :  { %v1255_v18 = vpop.f32.mrb[28].mxu0  ;;  %v1635_v16 = vld [vmem:[#allocation14 + $0x8] sm:$0xff] }
 0x616   :  { %v5180_v19 = vpack.i.bf16 %v1255_v18, %v1209_v12  ;;  %v5089_v20 = vpop.f32.mrb[29].mxu0  ;;  %v4488_v18 = vcombine.low %v1634_v14, %v1636_v15 }
 0x617   :  { %v1258_v22 = vpop.f32.mrb[30].mxu0  ;;  %v1637_v20 = vld [vmem:[#allocation14 + $0x48] sm:$0xff] }
 0x618   :  { %5181 = vrot.lane.b32.xlu0 %v5180_v19, %s5758_s2  ;;  %v5090_v24 = vpop.f32.mrb[31].mxu0  ;;  %v4489_v19 = vcombine.high %v1634_v14, %v1636_v15  ;;  %v1638_v22 = vld [vmem:[#allocation14 + $0x80] sm:$0xff]  ;;  %v4491_v25 = vcombine.high %v1635_v16, %v1637_v20  ;;  %v1659_v14 = vld [vmem:[#allocation14 + $0x308] sm:$0xff] }
 0x619   :  { %v4490_v24 = vcombine.low %v1635_v16, %v1637_v20  ;;  %v4493_v26 = vcombine.high %v1638_v22, %v1640_v23  ;;  %v1661_v16 = vld [vmem:[#allocation14 + $0x348] sm:$0xff] }
 0x61a   :  { %1848 = vmatprep.subr.bf16.mxu0 %v4489_v19  ;;  %1891 = vmatprep.subr.bf16.mxu1 %v4491_v25  ;;  %v4514_v19 = vcombine.low %v1659_v14, %v1661_v16  ;;  %v4515_v20 = vcombine.high %v1659_v14, %v1661_v16 }
 0x61b   :  { %1849 = vmatpush1.bf16.msra.mxu0 %v4488_v18 }
 0x61c   :  { %1850 = vmatprep.subr.bf16.mxu0 %v4493_v26  ;;  %v1665_v26 = vld [vmem:[#allocation14 + $0x3c8] sm:$0xff] }
 0x64a   :  { %v1301_v30 = vpop.f32.mrb[28].mxu1 }
 0x64b   :  { %v1347_v32 = vpop.f32.mrb[32].mxu0  ;;  %v5095_v35 = vpop.f32.mrb[29].mxu1 }
 0x64c   :  { %v5185_v36 = vpack.i.bf16 %v1347_v32, %v1301_v30  ;;  %v5101_v40 = vpop.f32.mrb[33].mxu0  ;;  %v1304_v42 = vpop.f32.mrb[30].mxu1  ;;  %v1641_v30 = vld [vmem:[#allocation14 + $0xc8] sm:$0xff] }
 0x64d   :  { %v1350_v21 = vpop.f32.mrb[34].mxu0  ;;  %v5096_v17 = vpop.f32.mrb[31].mxu1  ;;  %v4495_v31 = vcombine.high %v1639_v27, %v1641_v30 }
 0x64e   :  { %5186 = vrot.lane.b32.xlu1 %v5185_v36, %s5740_s3  ;;  %v5102_v44 = vpop.f32.mrb[35].mxu0 }
 0x652   :  { %v1393_v45 = vpop.f32.mrb[32].mxu1 }
 0x653   :  { %v1439_v46 = vpop.f32.mrb[36].mxu0  ;;  %v5107_v29 = vpop.f32.mrb[33].mxu1 }
 0x654   :  { %v5190_v47 = vpack.i.bf16 %v1439_v46, %v1393_v45  ;;  %v5113_v48 = vpop.f32.mrb[37].mxu0  ;;  %v1396_v37 = vpop.f32.mrb[34].mxu1  ;;  %v1642_v45 = vld [vmem:[#allocation14 + $0x100] sm:$0xff]  ;;  %v1643_v29 = vld [vmem:[#allocation14 + $0x108] sm:$0xff] }
 0x655   :  { %v1442_v49 = vpop.f32.mrb[38].mxu0  ;;  %v5108_v50 = vpop.f32.mrb[35].mxu1  ;;  %v1644_v46 = vld [vmem:[#allocation14 + $0x140] sm:$0xff]  ;;  %v1645_v48 = vld [vmem:[#allocation14 + $0x148] sm:$0xff] }
 0x656   :  { %5191 = vrot.lane.b32.xlu0 %v5190_v47, %s5757_s26  ;;  %v5114_v51 = vpop.f32.mrb[39].mxu0  ;;  %v4497_v47 = vcombine.high %v1642_v45, %v1644_v46  ;;  %v4496_v37 = vcombine.low %v1642_v45, %v1644_v46  ;;  %v4498_v49 = vcombine.low %v1643_v29, %v1645_v48  ;;  %v4499_v50 = vcombine.high %v1643_v29, %v1645_v48 }
 0x657   :  { %v1646_v51 = vld [vmem:[#allocation14 + $0x180] sm:$0xff] }
 0x68a   :  { %v5182_v52 = vpop.permute.xlu0 %5181 }
 0x68b   :  { %v5184_v55 = vunpack.i.h.bf16 %v5182_v52  ;;  %v5183_v43 = vunpack.i.l.bf16 %v5182_v52  ;;  %v1648_v52 = vld [vmem:[#allocation14 + $0x1c0] sm:$0xff] }
 0x68d   :  { %v1470_v58 = vsel %vm596_vm3, %v6231_v1, %v5184_v55  ;;  %v1469_v59 = vsel %vm596_vm3, %v6233_v6, %v5183_v43  ;;  %v4501_v55 = vcombine.high %v1646_v51, %v1648_v52  ;;  %v1649_v43 = vld [vmem:[#allocation14 + $0x1c8] sm:$0xff] }
 0x6c0   :  { %v5187_v54 = vpop.permute.xlu1 %5186 }
 0x6c1   :  { %v5189_v56 = vunpack.i.h.bf16 %v5187_v54  ;;  %v5188_v53 = vunpack.i.l.bf16 %v5187_v54  ;;  %v1647_v54 = vld [vmem:[#allocation14 + $0x188] sm:$0xff] }
 0x6c3   :  { %v1473_v62 = vsel %vm1471_vm5, %v1470_v58, %v5189_v56  ;;  %v1472_v63 = vsel %vm1471_vm5, %v1469_v59, %v5188_v53  ;;  %v4500_v56 = vcombine.low %v1646_v51, %v1648_v52  ;;  %v4502_v53 = vcombine.low %v1647_v54, %v1649_v43  ;;  %v1650_v58 = vld [vmem:[#allocation14 + $0x200] sm:$0xff] }
 0x6c4   :  { %v1652_v59 = vld [vmem:[#allocation14 + $0x240] sm:$0xff] }
 0x6c8   :  { %v5192_v57 = vpop.permute.xlu0 %5191 }
 0x6c9   :  { %v5194_v60 = vunpack.i.h.bf16 %v5192_v57  ;;  %v5193_v61 = vunpack.i.l.bf16 %v5192_v57  ;;  %v4503_v57 = vcombine.high %v1647_v54, %v1649_v43  ;;  %v4487_v43 = vld [vmem:[#allocation13] ss:$0 sm:$0xff] }
 0x6cb   :  { %v1476_v2 = vsel %vm1474_vm6, %v1473_v62, %v5194_v60  ;;  %v1475_v3 = vsel %vm1474_vm6, %v1472_v63, %v5193_v61  ;;  %v1651_v60 = vld [vmem:[#allocation14 + $0x208] sm:$0xff]  ;;  %v4505_v61 = vcombine.high %v1650_v58, %v1652_v59  ;;  %v4504_v63 = vcombine.low %v1650_v58, %v1652_v59  ;;  %v2015_v58 = vld [vmem:[#allocation14 + $0x98] sm:$0xff] }
 0x6cc   :  { %v1477_v5 = vpack.c.bf16 %v1476_v2, %v1475_v3  ;;  %v1653_v62 = vld [vmem:[#allocation14 + $0x248] sm:$0xff]  ;;  %v2017_v59 = vld [vmem:[#allocation14 + $0xd8] sm:$0xff] }
 0x6cd   :  { %v4506_v2 = vcombine.low %v1651_v60, %v1653_v62  ;;  %v4507_v3 = vcombine.high %v1651_v60, %v1653_v62 }
 0x6ce   :  { %5132 = vmatmul.mubr.bf16.vlgmr.msra.gmra.mrb[36].mxu1 %v1477_v5  ;;  %v1654_v5 = vld [vmem:[#allocation14 + $0x280] sm:$0xff] }
 0x6cf   :  { %1923 = vmatprep.mubr.bf16.mxu1 %v5756_v28  ;;  %1892 = vmatpush1.bf16.msra.mxu1 %v4490_v24  ;;  %v1663_v24 = vld [vmem:[#allocation14 + $0x388] sm:$0xff] }
 0x6d0   :  { %1893 = vmatprep.subr.bf16.mxu1 %v4495_v31  ;;  %v4519_v31 = vcombine.high %v1663_v24, %v1665_v26 }
 0x7a1   :  { %v1583_v9 = vpop.f32.mrb[36].mxu1 }
 0x7a2   :  { %v1584_v10 = vadd.f32 %v4477_v8, %v1583_v9  ;;  %v5133_v4 = vpop.f32.mrb[37].mxu1  ;;  %v1655_v9 = vld [vmem:[#allocation14 + $0x288] sm:$0xff] }
 0x7a3   :  { %v1586_v11 = vpop.f32.mrb[38].mxu1  ;;  %v1657_v4 = vld [vmem:[#allocation14 + $0x2c8] sm:$0xff] }
 0x7a4   :  { %v1587_v12 = vadd.f32 %v4477_v8, %v1586_v11  ;;  %v5134_v1 = vpop.f32.mrb[39].mxu1  ;;  %v1590_v13 = vadd.f32 %v1584_v10, %v6045_v33  ;;  %v4492_v33 = vcombine.low %v1638_v22, %v1640_v23  ;;  %v1656_v8 = vld [vmem:[#allocation14 + $0x2c0] sm:$0xff] }
 0x7a5   :  { %v4509_v10 = vcombine.high %v1654_v5, %v1656_v8  ;;  %v4508_v11 = vcombine.low %v1654_v5, %v1656_v8  ;;  %v4511_v1 = vcombine.high %v1655_v9, %v1657_v4  ;;  %v1662_v22 = vld [vmem:[#allocation14 + $0x380] sm:$0xff]  ;;  %v2019_v5 = vld [vmem:[#allocation14 + $0x118] sm:$0xff] }
 0x7a6   :  { %1594 = vadd.xlane.f32.xlu1 %v1590_v13  ;;  %v1591_v6 = vadd.f32 %v1587_v12, %v6047_v34  ;;  %v4494_v34 = vcombine.low %v1639_v27, %v1641_v30  ;;  %1851 = vmatpush1.bf16.msra.mxu0 %v4492_v33  ;;  %v4510_v12 = vcombine.low %v1655_v9, %v1657_v4  ;;  %v1664_v23 = vld [vmem:[#allocation14 + $0x3c0] sm:$0xff]  ;;  %v2010_v33 = vld [vmem:[#allocation14 + $0x10] sm:$0xff] }
 0x7a7   :  { %1852 = vmatprep.subr.bf16.mxu0 %v4497_v47  ;;  %v4517_v25 = vcombine.high %v1662_v22, %v1664_v23  ;;  %v4516_v27 = vcombine.low %v1662_v22, %v1664_v23  ;;  %v4518_v30 = vcombine.low %v1663_v24, %v1665_v26  ;;  %v4526_v9 = vcombine.low %v2015_v58, %v2017_v59  ;;  %v2029_v22 = vld [vmem:[#allocation14 + $0x258] sm:$0xff] }
 0x7a8   :  { %1596 = vadd.xlane.f32.xlu0 %v1591_v6  ;;  %1894 = vmatpush1.bf16.msra.mxu1 %v4494_v34  ;;  %v2012_v34 = vld [vmem:[#allocation14 + $0x50] sm:$0xff] }
 0x7a9   :  { %1895 = vmatprep.subr.bf16.mxu1 %v4499_v50  ;;  %v4486_v50 = vld [vmem:[#allocation11] ss:$0 sm:$0xff] }
 0x7aa   :  { %1853 = vmatpush1.bf16.msra.mxu0 %v4496_v37 }
 0x7ab   :  { %1854 = vmatprep.subr.bf16.mxu0 %v4501_v55 }
 0x7ac   :  { %1896 = vmatpush1.bf16.msra.mxu1 %v4498_v49 }
 0x7ad   :  { %1897 = vmatprep.subr.bf16.mxu1 %v4503_v57  ;;  %v2016_v57 = vld [vmem:[#allocation14 + $0xd0] sm:$0xff] }
 0x7ae   :  { %1855 = vmatpush1.bf16.msra.mxu0 %v4500_v56 }
 0x7af   :  { %1856 = vmatprep.subr.bf16.mxu0 %v4505_v61 }
 0x7b0   :  { %1898 = vmatpush1.bf16.msra.mxu1 %v4502_v53  ;;  %v2014_v53 = vld [vmem:[#allocation14 + $0x90] sm:$0xff] }
 0x7b1   :  { %1899 = vmatprep.subr.bf16.mxu1 %v4507_v3  ;;  %v2020_v3 = vld [vmem:[#allocation14 + $0x150] sm:$0xff]  ;;  %v4524_v8 = vcombine.low %v2014_v53, %v2016_v57 }
 0x7b2   :  { %1857 = vmatpush1.bf16.msra.mxu0 %v4504_v63  ;;  %v4525_v63 = vcombine.high %v2014_v53, %v2016_v57  ;;  %v5236_v57 = vld [vmem:[#allocation17 + $0x140] sm:$0xff]  }
 0x7b3   :  { %1858 = vmatprep.subr.bf16.mxu0 %v4509_v10 }
 0x7b4   :  { %1900 = vmatpush1.bf16.msra.mxu1 %v4506_v2  ;;  %v2018_v2 = vld [vmem:[#allocation14 + $0x110] sm:$0xff] }
 0x7b5   :  { %1901 = vmatprep.subr.bf16.mxu1 %v4511_v1  ;;  %v4529_v10 = vcombine.high %v2018_v2, %v2020_v3  ;;  %v2023_v1 = vld [vmem:[#allocation14 + $0x198] sm:$0xff] }
 0x7b6   :  { %1859 = vmatpush1.bf16.msra.mxu0 %v4508_v11  ;;  %v2022_v11 = vld [vmem:[#allocation14 + $0x190] sm:$0xff] }
 0x7b8   :  { %1902 = vmatpush1.bf16.msra.mxu1 %v4510_v12  ;;  %v2024_v12 = vld [vmem:[#allocation14 + $0x1d0] sm:$0xff] }
 0x7b9   :  { %1903 = vmatprep.subr.bf16.mxu1 %v4515_v20  ;;  %v2027_v20 = vld [vmem:[#allocation14 + $0x218] sm:$0xff]  ;;  %v4532_v23 = vcombine.low %v2022_v11, %v2024_v12 }
 0x7ba   :  { %v4539_v26 = vcombine.high %v2027_v20, %v2029_v22 }
 0x7bc   :  { %1904 = vmatpush1.bf16.msra.mxu1 %v4514_v19  ;;  %v2028_v19 = vld [vmem:[#allocation14 + $0x250] sm:$0xff] }
 0x7bd   :  { %1905 = vmatprep.subr.bf16.mxu1 %v4519_v31  ;;  %v2031_v31 = vld [vmem:[#allocation14 + $0x298] sm:$0xff] }
 0x7c0   :  { %1906 = vmatpush1.bf16.msra.mxu1 %v4518_v30  ;;  %v2032_v30 = vld [vmem:[#allocation14 + $0x2d0] sm:$0xff] }
 0x833   :  { %v1595_v32 = vpop.xlane.xlu1 %1594 }
 0x834   :  { %v1599_v35 = vmul.f32 0.0078125, %v1595_v32  ;;  %v2011_v32 = vld [vmem:[#allocation14 + $0x18] sm:$0xff] }
 0x835   :  { %v1597_v36 = vpop.xlane.xlu0 %1596 }
 0x836   :  { %v6252_v40 = vsub.f32 %v1590_v13, %v1599_v35  ;;  %v1600_v42 = vmul.f32 0.0078125, %v1597_v36  ;;  %v1658_v13 = vld [vmem:[#allocation14 + $0x300] sm:$0xff]  ;;  %v4520_v35 = vcombine.low %v2010_v33, %v2012_v34  ;;  %v4521_v36 = vcombine.high %v2010_v33, %v2012_v34  ;;  %v2033_v33 = vld [vmem:[#allocation14 + $0x2d8] sm:$0xff] }
 0x838   :  { %v6254_v21 = vsub.f32 %v1591_v6, %v1600_v42  ;;  %v1603_v17 = vmul.f32 %v6252_v40, %v6252_v40  ;;  %v1660_v6 = vld [vmem:[#allocation14 + $0x340] sm:$0xff]  ;;  %v2013_v42 = vld [vmem:[#allocation14 + $0x58] sm:$0xff] }
 0x839   :  { %v4513_v15 = vcombine.high %v1658_v13, %v1660_v6  ;;  %v4512_v18 = vcombine.low %v1658_v13, %v1660_v6  ;;  %v2025_v13 = vld [vmem:[#allocation14 + $0x1d8] sm:$0xff]  ;;  %v4528_v6 = vcombine.low %v2018_v2, %v2020_v3 }
 0x83a   :  { %1605 = vadd.xlane.f32.xlu0 %v1603_v17  ;;  %v1604_v44 = vmul.f32 %v6254_v21, %v6254_v21  ;;  %v4522_v17 = vcombine.low %v2011_v32, %v2013_v42  ;;  %v4535_v16 = vcombine.high %v2023_v1, %v2025_v13  ;;  %v4534_v24 = vcombine.low %v2023_v1, %v2025_v13  ;;  %v5241_v2 = vld [vmem:[#allocation17 + $0x1c8] sm:$0xff]   ;;  %v5251_v1 = vld [vmem:[#allocation17 + $0x198] sm:$0xff]   ;;  %v5252_v13 = vld [vmem:[#allocation17 + $0x160] sm:$0xff]  }
 0x83b   :  { %1860 = vmatprep.subr.bf16.mxu0 %v4513_v15  ;;  %v4533_v15 = vcombine.high %v2022_v11, %v2024_v12  ;;  %v5242_v3 = vld [vmem:[#allocation17 + $0x108] sm:$0xff]   ;;  %v5249_v11 = vld [vmem:[#allocation17 + $0x1d8] sm:$0xff]  }
 0x83c   :  { %1607 = vadd.xlane.f32.xlu1 %v1604_v44  ;;  %1861 = vmatpush1.bf16.msra.mxu0 %v4512_v18  ;;  %v4523_v44 = vcombine.high %v2011_v32, %v2013_v42  ;;  %v2026_v18 = vld [vmem:[#allocation14 + $0x210] sm:$0xff]  ;;  %v4538_v32 = vcombine.low %v2027_v20, %v2029_v22  ;;  %v5250_v12 = vld [vmem:[#allocation17 + $0x118] sm:$0xff]   ;;  %v5259_v20 = vld [vmem:[#allocation17 + $0x1a8] sm:$0xff]  }
 0x83d   :  { %1862 = vmatprep.subr.bf16.mxu0 %v4517_v25  ;;  %v4537_v25 = vcombine.high %v2026_v18, %v2028_v19  ;;  %v4536_v34 = vcombine.low %v2026_v18, %v2028_v19  ;;  %v2034_v42 = vld [vmem:[#allocation14 + $0x310] sm:$0xff]  ;;  %v5257_v18 = vld [vmem:[#allocation17 + $0x1e8] sm:$0xff]   ;;  %v5260_v22 = vld [vmem:[#allocation17 + $0x170] sm:$0xff]  }
 0x83e   :  { %2267 = vmatprep.subr.bf16.mxu1 %v4523_v44  ;;  %v2035_v44 = vld [vmem:[#allocation14 + $0x318] sm:$0xff] }
 0x83f   :  { %v5258_v19 = vld [vmem:[#allocation17 + $0x128] sm:$0xff]  }
 0x840   :  { %1863 = vmatpush1.bf16.msra.mxu0 %v4516_v27  ;;  %v2030_v27 = vld [vmem:[#allocation14 + $0x290] sm:$0xff] }
 0x841   :  { %2224 = vmatprep.subr.bf16.mxu0 %v4521_v36  ;;  %v4543_v36 = vcombine.high %v2031_v31, %v2033_v33 }
 0x8c7   :  { %v1606_v45 = vpop.xlane.xlu0 %1605 }
 0x8c8   :  { %v1609_v46 = vmul.f32 0.0078125, %v1606_v45  ;;  %v2037_v45 = vld [vmem:[#allocation14 + $0x358] sm:$0xff] }
 0x8c9   :  { %v1608_v29 = vpop.xlane.xlu1 %1607 }
 0x8ca   :  { %v1611_v47 = vadd.f32 1e-05, %v1609_v46  ;;  %v1610_v48 = vmul.f32 0.0078125, %v1608_v29  ;;  %v4540_v46 = vcombine.low %v2030_v27, %v2032_v30  ;;  %v4542_v29 = vcombine.low %v2031_v31, %v2033_v33  ;;  %v5267_v31 = vld [vmem:[#allocation17 + $0x1b8] sm:$0xff]   ;;  %v5268_v33 = vld [vmem:[#allocation17 + $0x40] sm:$0xff]  }
 0x8cc   :  { %5404 = vrsqrt.f32 %v1611_v47  ;;  %v1612_v37 = vadd.f32 1e-05, %v1610_v48  ;;  %v4547_v48 = vcombine.high %v2035_v44, %v2037_v45 }
 0x8ce   :  { %5406 = vrsqrt.f32 %v1612_v37  ;;  %v2038_v37 = vld [vmem:[#allocation14 + $0x390] sm:$0xff] }
 0x8d6   :  { %v5405_v49 = vpop.eup %5404 }
 0x8d7   :  { %v1615_v51 = vmul.f32 %v5405_v49, %v6252_v40  ;;  %v4527_v40 = vcombine.high %v2015_v58, %v2017_v59  ;;  %v2040_v49 = vld [vmem:[#allocation14 + $0x3d0] sm:$0xff] }
 0x8d8   :  { %v5407_v52 = vpop.eup %5406  ;;  %v5237_v58 = vld [vmem:[#allocation17 + $0x1c0] sm:$0xff]  }
 0x8d9   :  { %v1623_v54 = vmul.f32 %v4486_v50, %v1615_v51  ;;  %v1616_v55 = vmul.f32 %v5407_v52, %v6254_v21  ;;  %v2021_v21 = vld [vmem:[#allocation14 + $0x158] sm:$0xff]  ;;  %v5238_v59 = vld [vmem:[#allocation17 + $0x100] sm:$0xff]  }
 0x8da   :  { %v4531_v4 = vcombine.high %v2019_v5, %v2021_v21  ;;  %v4530_v14 = vcombine.low %v2019_v5, %v2021_v21  ;;  %v2041_v51 = vld [vmem:[#allocation14 + $0x3d8] sm:$0xff]  ;;  %v5244_v21 = vld [vmem:[#allocation17 + $0x150] sm:$0xff]  }
 0x8db   :  { %v1624_v56 = vmul.f32 %v4486_v50, %v1616_v55  ;;  %v6262_v60 = vadd.f32 %v4487_v43, %v1623_v54  ;;  %v2039_v50 = vld [vmem:[#allocation14 + $0x398] sm:$0xff]  ;;  %v4546_v54 = vcombine.low %v2035_v44, %v2037_v45  ;;  %v4549_v55 = vcombine.high %v2038_v37, %v2040_v49 }
 0x8dc   :  { %v4550_v53 = vcombine.low %v2039_v50, %v2041_v51  ;;  %v5243_v5 = vld [vmem:[#allocation17 + $0x188] sm:$0xff]  }
 0x8dd   :  { %v6264_v61 = vadd.f32 %v4487_v43, %v1624_v56  ;;  %v4551_v43 = vcombine.high %v2039_v50, %v2041_v51  ;;  %v4548_v56 = vcombine.low %v2038_v37, %v2040_v49 }
 0x8df   :  { %v6268_v62 = vpack.c.bf16 %v6264_v61, %v6262_v60 }
 0x8e1   :  { %1881 = vmatmul.mubr.bf16.vlgmr.msra.gmra.mrb[40].mxu0 %v6268_v62  ;;  %1924 = vmatmul.mubr.bf16.vlgmr.msra.gmra.mrb[40].mxu1 %v6268_v62 }
 0x8e2   :  { %2225 = vmatpush1.bf16.msra.mxu0 %v4520_v35  ;;  %2268 = vmatpush1.bf16.msra.mxu1 %v4522_v17  ;;  %v4541_v35 = vcombine.high %v2030_v27, %v2032_v30  ;;  %v2036_v17 = vld [vmem:[#allocation14 + $0x350] sm:$0xff]  ;;  %v5265_v27 = vld [vmem:[#allocation17 + $0x1f8] sm:$0xff]  }
 0x8e3   :  { %2226 = vmatprep.subr.bf16.mxu0 %v4525_v63  ;;  %2269 = vmatprep.subr.bf16.mxu1 %v4527_v40  ;;  %v4545_v47 = vcombine.high %v2034_v42, %v2036_v17  ;;  %v4544_v52 = vcombine.low %v2034_v42, %v2036_v17  ;;  %v5239_v63 = vld [vmem:[#allocation17 + $0x180] sm:$0xff]   ;;  %v5240_v40 = vld [vmem:[#allocation17 + $0x148] sm:$0xff]   ;;  %v5266_v30 = vld [vmem:[#allocation17 + $0x138] sm:$0xff]  }
 0x8e4   :  { %2256 = vmatprep.mubr.bf16.mxu0 %v5756_v28  ;;  %2299 = vmatprep.mubr.bf16.mxu1 %v5756_v28 }
 0x8e6   :  { %2227 = vmatpush1.bf16.msra.mxu0 %v4524_v8  ;;  %2270 = vmatpush1.bf16.msra.mxu1 %v4526_v9  ;;  %v5245_v8 = vld [vmem:[#allocation17 + $0x1d0] sm:$0xff]  }
 0x8e7   :  { %2228 = vmatprep.subr.bf16.mxu0 %v4529_v10  ;;  %2271 = vmatprep.subr.bf16.mxu1 %v4531_v4  ;;  %v5246_v9 = vld [vmem:[#allocation17 + $0x110] sm:$0xff]   ;;  %v5248_v4 = vld [vmem:[#allocation17 + $0x158] sm:$0xff]  }
 0x8e8   :  { %v5247_v10 = vld [vmem:[#allocation17 + $0x190] sm:$0xff]  }
 0x8ea   :  { %2229 = vmatpush1.bf16.msra.mxu0 %v4528_v6  ;;  %2272 = vmatpush1.bf16.msra.mxu1 %v4530_v14  ;;  %v5253_v6 = vld [vmem:[#allocation17 + $0x1e0] sm:$0xff]  }
 0x8eb   :  { %2230 = vmatprep.subr.bf16.mxu0 %v4533_v15  ;;  %2273 = vmatprep.subr.bf16.mxu1 %v4535_v16  ;;  %v5254_v14 = vld [vmem:[#allocation17 + $0x120] sm:$0xff]   ;;  %v5256_v16 = vld [vmem:[#allocation17 + $0x168] sm:$0xff]  }
 0x8ec   :  { %v5255_v15 = vld [vmem:[#allocation17 + $0x1a0] sm:$0xff]  }
 0x8ee   :  { %2231 = vmatpush1.bf16.msra.mxu0 %v4532_v23  ;;  %2274 = vmatpush1.bf16.msra.mxu1 %v4534_v24  ;;  %v5261_v23 = vld [vmem:[#allocation17 + $0x1f0] sm:$0xff]  }
 0x8ef   :  { %2232 = vmatprep.subr.bf16.mxu0 %v4537_v25  ;;  %2275 = vmatprep.subr.bf16.mxu1 %v4539_v26  ;;  %v5262_v24 = vld [vmem:[#allocation17 + $0x130] sm:$0xff]   ;;  %v5264_v26 = vld [vmem:[#allocation17 + $0x178] sm:$0xff]  }
 0x8f0   :  { %v5263_v25 = vld [vmem:[#allocation17 + $0x1b0] sm:$0xff]  }
 0x8f2   :  { %2233 = vmatpush1.bf16.msra.mxu0 %v4536_v34  ;;  %2276 = vmatpush1.bf16.msra.mxu1 %v4538_v32  ;;  %v5269_v34 = vld [vmem:[#allocation17 + $0xc0] sm:$0xff]   ;;  %v1666_v32 = vld [vmem:[#allocation16] sm:$0xf] }
 0x8f3   :  { %2234 = vmatprep.subr.bf16.mxu0 %v4541_v35  ;;  %2277 = vmatprep.subr.bf16.mxu1 %v4543_v36  ;;  %v6277_v35 = vsub.s32 3, %v6056_v38  ;;  %v1671_v36 = vrot.slane %v1666_v32, %v6059_v39  ;;  %v1679_v42 = vrot.slane %v1666_v32, %v6101_v7  ;;  %v1675_v17 = vrot.slane %v1666_v32, %v6064_v41 }
 0x8f5   :  { %v1683_v44 = vrot.slane %v1666_v32, %v6277_v35 }
 0x8f6   :  { %2235 = vmatpush1.bf16.msra.mxu0 %v4540_v46  ;;  %2278 = vmatpush1.bf16.msra.mxu1 %v4542_v29 }
 0x8f7   :  { %2236 = vmatprep.subr.bf16.mxu0 %v4545_v47  ;;  %2279 = vmatprep.subr.bf16.mxu1 %v4547_v48 }
 0x8fa   :  { %2237 = vmatpush1.bf16.msra.mxu0 %v4544_v52  ;;  %2280 = vmatpush1.bf16.msra.mxu1 %v4546_v54 }
 0x8fb   :  { %2238 = vmatprep.subr.bf16.mxu0 %v4549_v55  ;;  %2281 = vmatprep.subr.bf16.mxu1 %v4551_v43 }
 0x8fe   :  { %2239 = vmatpush1.bf16.msra.mxu0 %v4548_v56  ;;  %2282 = vmatpush1.bf16.msra.mxu1 %v4550_v53 }
 0x8ff   :  { %4808 = vmatprep.subr.bf16.mxu0 %v5236_v57  ;;  %4830 = vmatprep.subr.bf16.mxu1 %v5237_v58 }
 0x901   :  { %2257 = vmatmul.mubr.bf16.vlgmr.msra.gmra.mrb[44].mxu0 %v6268_v62  ;;  %2300 = vmatmul.mubr.bf16.vlgmr.msra.gmra.mrb[44].mxu1 %v6268_v62 }
 0x902   :  { %4809 = vmatpush3.bf16.msra.mxu0 %v5238_v59  ;;  %4831 = vmatpush3.bf16.msra.mxu1 %v5239_v63 }
 0x903   :  { %4810 = vmatprep.subr.bf16.mxu0 %v5240_v40  ;;  %4832 = vmatprep.subr.bf16.mxu1 %v5241_v2 }
 0x906   :  { %4811 = vmatpush3.bf16.msra.mxu0 %v5242_v3  ;;  %4833 = vmatpush3.bf16.msra.mxu1 %v5243_v5 }
 0x907   :  { %4812 = vmatprep.subr.bf16.mxu0 %v5244_v21  ;;  %4834 = vmatprep.subr.bf16.mxu1 %v5245_v8 }
 0x90a   :  { %4813 = vmatpush3.bf16.msra.mxu0 %v5246_v9  ;;  %4835 = vmatpush3.bf16.msra.mxu1 %v5247_v10 }
 0x90b   :  { %4814 = vmatprep.subr.bf16.mxu0 %v5248_v4  ;;  %4836 = vmatprep.subr.bf16.mxu1 %v5249_v11  ;;  %v2042_v4 = vld [vmem:[#allocation16 + $0x4] sm:$0xf] }
 0x90c   :  { %v2047_v11 = vrot.slane %v2042_v4, %v6059_v39 }
 0x90e   :  { %4815 = vmatpush3.bf16.msra.mxu0 %v5250_v12  ;;  %4837 = vmatpush3.bf16.msra.mxu1 %v5251_v1  ;;  %v2055_v12 = vrot.slane %v2042_v4, %v6101_v7  ;;  %v2051_v1 = vrot.slane %v2042_v4, %v6064_v41 }
 0x90f   :  { %4816 = vmatprep.subr.bf16.mxu0 %v5252_v13  ;;  %4838 = vmatprep.subr.bf16.mxu1 %v5253_v6  ;;  %v2059_v13 = vrot.slane %v2042_v4, %v6277_v35  ;;  %v5290_v4 = vld [vmem:[#allocation17 + $0x28] sm:$0xff]  }
 0x912   :  { %4817 = vmatpush3.bf16.msra.mxu0 %v5254_v14  ;;  %4839 = vmatpush3.bf16.msra.mxu1 %v5255_v15 }
 0x913   :  { %4818 = vmatprep.subr.bf16.mxu0 %v5256_v16  ;;  %4840 = vmatprep.subr.bf16.mxu1 %v5257_v18 }
 0x916   :  { %4819 = vmatpush3.bf16.msra.mxu0 %v5258_v19  ;;  %4841 = vmatpush3.bf16.msra.mxu1 %v5259_v20 }
 0x917   :  { %4820 = vmatprep.subr.bf16.mxu0 %v5260_v22  ;;  %4842 = vmatprep.subr.bf16.mxu1 %v5261_v23 }
 0x91a   :  { %4821 = vmatpush3.bf16.msra.mxu0 %v5262_v24  ;;  %4843 = vmatpush3.bf16.msra.mxu1 %v5263_v25 }
 0x91b   :  { %4822 = vmatprep.subr.bf16.mxu0 %v5264_v26  ;;  %4844 = vmatprep.subr.bf16.mxu1 %v5265_v27 }
 0x91e   :  { %4823 = vmatpush3.bf16.msra.mxu0 %v5266_v30  ;;  %4845 = vmatpush3.bf16.msra.mxu1 %v5267_v31 }
 0x91f   :  { %4852 = vmatprep.subr.bf16.mxu0 %v5268_v33  ;;  %4874 = vmatprep.subr.bf16.mxu1 %v5269_v34 }
 0x9b4   :  { %v1882_v45 = vpop.f32.mrb[40].mxu0  ;;  %v1925_v46 = vpop.f32.mrb[40].mxu1 }
 0x9b5   :  { %v1883_v29 = vadd.f32 %v1882_v45, %v1671_v36  ;;  %v1926_v47 = vadd.f32 %v1925_v46, %v1679_v42  ;;  %v1884_v48 = vpop.f32.mrb[41].mxu0  ;;  %v1927_v37 = vpop.f32.mrb[41].mxu1 }
 0x9b6   :  { %v1885_v49 = vadd.f32 %v1884_v48, %v1675_v17  ;;  %v1928_v50 = vadd.f32 %v1927_v37, %v1683_v44  ;;  %v1886_v51 = vpop.f32.mrb[42].mxu0  ;;  %v1929_v52 = vpop.f32.mrb[42].mxu1 }
 0x9b7   :  { %v1887_v38 = vadd.f32 %v1886_v51, %v1671_v36  ;;  %v1930_v54 = vadd.f32 %v1929_v52, %v1679_v42  ;;  %v1888_v55 = vpop.f32.mrb[43].mxu0  ;;  %v1931_v43 = vpop.f32.mrb[43].mxu1  ;;  %v1934_v57 = vmax.f32 %v1883_v29, 0.0  ;;  %v1936_v58 = vmax.f32 %v1926_v47, 0.0  ;;  %v5272_v51 = vld [vmem:[#allocation17 + $0x48] sm:$0xff]  }
 0x9b8   :  { %v1889_v56 = vadd.f32 %v1888_v55, %v1675_v17  ;;  %v1932_v53 = vadd.f32 %v1931_v43, %v1683_v44  ;;  %v1935_v40 = vmax.f32 %v1885_v49, 0.0  ;;  %v1937_v2 = vmax.f32 %v1928_v50, 0.0  ;;  %v5270_v49 = vld [vmem:[#allocation17] sm:$0xff]   ;;  %v5273_v52 = vld [vmem:[#allocation17 + $0xc8] sm:$0xff]   ;;  %v5276_v55 = vld [vmem:[#allocation17 + $0x50] sm:$0xff]  }
 0x9b9   :  { %v1938_v59 = vmax.f32 %v1887_v38, 0.0  ;;  %v1940_v63 = vmax.f32 %v1930_v54, 0.0  ;;  %v5271_v50 = vld [vmem:[#allocation17 + $0x80] sm:$0xff]   ;;  %v5274_v38 = vld [vmem:[#allocation17 + $0x8] sm:$0xff]   ;;  %v5277_v43 = vld [vmem:[#allocation17 + $0xd0] sm:$0xff]  }
 0x9ba   :  { %v1939_v3 = vmax.f32 %v1889_v56, 0.0  ;;  %v1941_v5 = vmax.f32 %v1932_v53, 0.0  ;;  %v5275_v54 = vld [vmem:[#allocation17 + $0x88] sm:$0xff]   ;;  %v5278_v56 = vld [vmem:[#allocation17 + $0x10] sm:$0xff]  }
 0x9bb   :  { %v6283_v21 = vpack.c.bf16 %v1938_v59, %v1934_v57  ;;  %v6285_v8 = vpack.c.bf16 %v1940_v63, %v1936_v58  ;;  %v5279_v53 = vld [vmem:[#allocation17 + $0x90] sm:$0xff]   ;;  %v5280_v57 = vld [vmem:[#allocation17 + $0x58] sm:$0xff]  }
 0x9bc   :  { %v1943_v9 = vpack.c.bf16 %v1939_v3, %v1935_v40  ;;  %v1945_v10 = vpack.c.bf16 %v1941_v5, %v1937_v2  ;;  %v5281_v58 = vld [vmem:[#allocation17 + $0xd8] sm:$0xff]   ;;  %v5284_v40 = vld [vmem:[#allocation17 + $0x60] sm:$0xff]  }
 0x9bd   :  { %v5282_v59 = vld [vmem:[#allocation17 + $0x18] sm:$0xff]   ;;  %v5285_v2 = vld [vmem:[#allocation17 + $0xe0] sm:$0xff]  }
 0x9be   :  { %v5283_v63 = vld [vmem:[#allocation17 + $0x98] sm:$0xff]   ;;  %v5286_v3 = vld [vmem:[#allocation17 + $0x20] sm:$0xff]  }
 0x9bf   :  { %v5287_v5 = vld [vmem:[#allocation17 + $0xa0] sm:$0xff]  }
 0x9d4   :  { %v2258_v6 = vpop.f32.mrb[44].mxu0  ;;  %v2301_v14 = vpop.f32.mrb[44].mxu1 }
 0x9d5   :  { %v2259_v15 = vadd.f32 %v2258_v6, %v2047_v11  ;;  %v2302_v16 = vadd.f32 %v2301_v14, %v2055_v12  ;;  %v2260_v18 = vpop.f32.mrb[45].mxu0  ;;  %v2303_v19 = vpop.f32.mrb[45].mxu1  ;;  %v5295_v6 = vld [vmem:[#allocation17 + $0xb0] sm:$0xff]   ;;  %v5296_v14 = vld [vmem:[#allocation17 + $0x78] sm:$0xff]  }
 0x9d6   :  { %v2261_v20 = vadd.f32 %v2260_v18, %v2051_v1  ;;  %v2304_v22 = vadd.f32 %v2303_v19, %v2059_v13  ;;  %v2262_v23 = vpop.f32.mrb[46].mxu0  ;;  %v2305_v24 = vpop.f32.mrb[46].mxu1  ;;  %v2936_v18 = vld [vmem:[#allocation14 + $0x60] sm:$0xff]  ;;  %v2935_v19 = vld [vmem:[#allocation14 + $0x28] sm:$0xff] }
 0x9d7   :  { %v2263_v25 = vadd.f32 %v2262_v23, %v2047_v11  ;;  %v2306_v26 = vadd.f32 %v2305_v24, %v2055_v12  ;;  %v2264_v27 = vpop.f32.mrb[47].mxu0  ;;  %v2307_v30 = vpop.f32.mrb[47].mxu1  ;;  %v2310_v34 = vmax.f32 %v2259_v15, 0.0  ;;  %v2312_v32 = vmax.f32 %v2302_v16, 0.0  ;;  %v5291_v11 = vld [vmem:[#allocation17 + $0xa8] sm:$0xff]   ;;  %v5292_v12 = vld [vmem:[#allocation17 + $0x70] sm:$0xff]  }
 0x9d8   :  { %v2265_v31 = vadd.f32 %v2264_v27, %v2051_v1  ;;  %v2308_v33 = vadd.f32 %v2307_v30, %v2059_v13  ;;  %v2311_v17 = vmax.f32 %v2261_v20, 0.0  ;;  %v2313_v44 = vmax.f32 %v2304_v22, 0.0  ;;  %v5293_v1 = vld [vmem:[#allocation17 + $0xf0] sm:$0xff]   ;;  %v5297_v15 = vld [vmem:[#allocation17 + $0xf8] sm:$0xff]  }
 0x9d9   :  { %v2314_v36 = vmax.f32 %v2263_v25, 0.0  ;;  %v2316_v42 = vmax.f32 %v2306_v26, 0.0  ;;  %v5294_v13 = vld [vmem:[#allocation17 + $0x30] sm:$0xff]   ;;  %v2937_v20 = vld [vmem:[#allocation14 + $0x68] sm:$0xff] }
 0x9da   :  { %v2315_v45 = vmax.f32 %v2265_v31, 0.0  ;;  %v2317_v46 = vmax.f32 %v2308_v33, 0.0  ;;  %v2934_v16 = vld [vmem:[#allocation14 + $0x20] sm:$0xff]  ;;  %v5298_v22 = vld [vmem:[#allocation17 + $0x38] sm:$0xff]   ;;  %v4619_v25 = vcombine.high %v2935_v19, %v2937_v20 }
 0x9db   :  { %v2318_v29 = vpack.c.bf16 %v2314_v36, %v2310_v34  ;;  %v2320_v47 = vpack.c.bf16 %v2316_v42, %v2312_v32  ;;  %v5299_v23 = vld [vmem:[#allocation17 + $0xb8] sm:$0xff]   ;;  %v4617_v24 = vcombine.high %v2934_v16, %v2936_v18  ;;  %v2938_v26 = vld [vmem:[#allocation14 + $0xa0] sm:$0xff]  ;;  %v4616_v33 = vcombine.low %v2934_v16, %v2936_v18 }
 0x9dc   :  { %v2319_v48 = vpack.c.bf16 %v2315_v45, %v2311_v17  ;;  %v2321_v37 = vpack.c.bf16 %v2317_v46, %v2313_v44  ;;  %v2940_v27 = vld [vmem:[#allocation14 + $0xe0] sm:$0xff]  ;;  %v2939_v30 = vld [vmem:[#allocation14 + $0xa8] sm:$0xff]  ;;  %v4618_v34 = vcombine.low %v2935_v19, %v2937_v20 }
 0x9dd   :  { %v2941_v31 = vld [vmem:[#allocation14 + $0xe8] sm:$0xff]  ;;  %v4621_v32 = vcombine.high %v2938_v26, %v2940_v27  ;;  %v2942_v42 = vld [vmem:[#allocation14 + $0x120] sm:$0xff]  ;;  %v4620_v46 = vcombine.low %v2938_v26, %v2940_v27 }
 0x9de   :  { %2610 = vmatprep.mubr.bf16.mxu0 %v2319_v48  ;;  %2651 = vmatprep.mubr.bf16.mxu1 %v2321_v37  ;;  %v4623_v36 = vcombine.high %v2939_v30, %v2941_v31  ;;  %v2944_v17 = vld [vmem:[#allocation14 + $0x160] sm:$0xff]  ;;  %v2943_v44 = vld [vmem:[#allocation14 + $0x128] sm:$0xff] }
 0x9df   :  { %2611 = vmatmul.mubr.bf16.vlgmr.msra.gmra.mrb[48].mxu0 %v2318_v29  ;;  %2652 = vmatmul.mubr.bf16.vlgmr.msra.gmra.mrb[48].mxu1 %v2320_v47  ;;  %v2945_v45 = vld [vmem:[#allocation14 + $0x168] sm:$0xff]  ;;  %v4622_v29 = vcombine.low %v2939_v30, %v2941_v31  ;;  %v4625_v47 = vcombine.high %v2942_v42, %v2944_v17  ;;  %v2946_v37 = vld [vmem:[#allocation14 + $0x1a0] sm:$0xff]  ;;  %v5300_v31 = vld [vmem:[#allocation17 + $0x240] sm:$0xff]  }
 0x9e0   :  { %4853 = vmatpush3.bf16.msra.mxu0 %v5270_v49  ;;  %4875 = vmatpush3.bf16.msra.mxu1 %v5271_v50  ;;  %v4627_v48 = vcombine.high %v2943_v44, %v2945_v45  ;;  %v2948_v49 = vld [vmem:[#allocation14 + $0x1e0] sm:$0xff]  ;;  %v2947_v50 = vld [vmem:[#allocation14 + $0x1a8] sm:$0xff] }
 0x9e1   :  { %2884 = vmatprep.mubr.bf16.mxu0 %v1943_v9  ;;  %2925 = vmatprep.mubr.bf16.mxu1 %v1945_v10  ;;  %v5288_v9 = vld [vmem:[#allocation17 + $0x68] sm:$0xff]   ;;  %v2962_v18 = vld [vmem:[#allocation14 + $0x3a0] sm:$0xff]  ;;  %v2963_v20 = vld [vmem:[#allocation14 + $0x3a8] sm:$0xff] }
 0x9e2   :  { %4854 = vmatprep.subr.bf16.mxu0 %v5272_v51  ;;  %4876 = vmatprep.subr.bf16.mxu1 %v5273_v52  ;;  %v5289_v10 = vld [vmem:[#allocation17 + $0xe8] sm:$0xff]   ;;  %v2949_v51 = vld [vmem:[#allocation14 + $0x1e8] sm:$0xff]  ;;  %v4629_v52 = vcombine.high %v2946_v37, %v2948_v49  ;;  %v2964_v19 = vld [vmem:[#allocation14 + $0x3e0] sm:$0xff] }
 0x9e3   :  { %v4644_v27 = vcombine.low %v2962_v18, %v2964_v19 }
 0x9e4   :  { %4855 = vmatpush3.bf16.msra.mxu0 %v5274_v38  ;;  %4877 = vmatpush3.bf16.msra.mxu1 %v5275_v54  ;;  %v4631_v38 = vcombine.high %v2947_v50, %v2949_v51  ;;  %v2950_v54 = vld [vmem:[#allocation14 + $0x220] sm:$0xff] }
 0x9e5   :  { %4856 = vmatprep.subr.bf16.mxu0 %v5276_v55  ;;  %4878 = vmatprep.subr.bf16.mxu1 %v5277_v43  ;;  %v2952_v55 = vld [vmem:[#allocation14 + $0x260] sm:$0xff]  ;;  %v2951_v43 = vld [vmem:[#allocation14 + $0x228] sm:$0xff] }
 0x9e8   :  { %4857 = vmatpush3.bf16.msra.mxu0 %v5278_v56  ;;  %4879 = vmatpush3.bf16.msra.mxu1 %v5279_v53  ;;  %v2953_v56 = vld [vmem:[#allocation14 + $0x268] sm:$0xff]  ;;  %v4628_v53 = vcombine.low %v2946_v37, %v2948_v49 }
 0x9e9   :  { %4858 = vmatprep.subr.bf16.mxu0 %v5280_v57  ;;  %4880 = vmatprep.subr.bf16.mxu1 %v5281_v58  ;;  %v4630_v57 = vcombine.low %v2947_v50, %v2949_v51  ;;  %v4633_v58 = vcombine.high %v2950_v54, %v2952_v55  ;;  %v5313_v37 = vld [vmem:[#allocation17 + $0x2d8] sm:$0xff]   ;;  %v5316_v51 = vld [vmem:[#allocation17 + $0x260] sm:$0xff]  }
 0x9ea   :  { %v5314_v49 = vld [vmem:[#allocation17 + $0x218] sm:$0xff]  }
 0x9eb   :  { %v5315_v50 = vld [vmem:[#allocation17 + $0x298] sm:$0xff]  }
 0x9ec   :  { %4859 = vmatpush3.bf16.msra.mxu0 %v5282_v59  ;;  %4881 = vmatpush3.bf16.msra.mxu1 %v5283_v63  ;;  %v4635_v59 = vcombine.high %v2951_v43, %v2953_v56  ;;  %v2954_v63 = vld [vmem:[#allocation14 + $0x2a0] sm:$0xff] }
 0x9ed   :  { %4860 = vmatprep.subr.bf16.mxu0 %v5284_v40  ;;  %4882 = vmatprep.subr.bf16.mxu1 %v5285_v2  ;;  %v2956_v40 = vld [vmem:[#allocation14 + $0x2e0] sm:$0xff]  ;;  %v2955_v2 = vld [vmem:[#allocation14 + $0x2a8] sm:$0xff] }
 0x9f0   :  { %4861 = vmatpush3.bf16.msra.mxu0 %v5286_v3  ;;  %4883 = vmatpush3.bf16.msra.mxu1 %v5287_v5  ;;  %v2957_v3 = vld [vmem:[#allocation14 + $0x2e8] sm:$0xff]  ;;  %v4632_v5 = vcombine.low %v2950_v54, %v2952_v55  ;;  %v5321_v54 = vld [vmem:[#allocation17 + $0x2e8] sm:$0xff]  }
 0x9f1   :  { %4862 = vmatprep.subr.bf16.mxu0 %v5288_v9  ;;  %4884 = vmatprep.subr.bf16.mxu1 %v5289_v10  ;;  %v4634_v9 = vcombine.low %v2951_v43, %v2953_v56  ;;  %v4637_v10 = vcombine.high %v2954_v63, %v2956_v40  ;;  %v5322_v55 = vld [vmem:[#allocation17 + $0x228] sm:$0xff]   ;;  %v5324_v56 = vld [vmem:[#allocation17 + $0x270] sm:$0xff]  }
 0x9f2   :  { %v5323_v43 = vld [vmem:[#allocation17 + $0x2a8] sm:$0xff]  }
 0x9f4   :  { %4863 = vmatpush3.bf16.msra.mxu0 %v5290_v4  ;;  %4885 = vmatpush3.bf16.msra.mxu1 %v5291_v11  ;;  %v4639_v4 = vcombine.high %v2955_v2, %v2957_v3  ;;  %v2958_v11 = vld [vmem:[#allocation14 + $0x320] sm:$0xff] }
 0x9f5   :  { %4864 = vmatprep.subr.bf16.mxu0 %v5292_v12  ;;  %4886 = vmatprep.subr.bf16.mxu1 %v5293_v1  ;;  %v2960_v12 = vld [vmem:[#allocation14 + $0x360] sm:$0xff]  ;;  %v2959_v1 = vld [vmem:[#allocation14 + $0x328] sm:$0xff] }
 0x9f8   :  { %4865 = vmatpush3.bf16.msra.mxu0 %v5294_v13  ;;  %4887 = vmatpush3.bf16.msra.mxu1 %v5295_v6  ;;  %v2961_v13 = vld [vmem:[#allocation14 + $0x368] sm:$0xff]  ;;  %v4636_v6 = vcombine.low %v2954_v63, %v2956_v40 }
 0x9f9   :  { %4866 = vmatprep.subr.bf16.mxu0 %v5296_v14  ;;  %4888 = vmatprep.subr.bf16.mxu1 %v5297_v15  ;;  %v4638_v14 = vcombine.low %v2955_v2, %v2957_v3  ;;  %v4641_v15 = vcombine.high %v2958_v11, %v2960_v12  ;;  %v4643_v16 = vcombine.high %v2959_v1, %v2961_v13  ;;  %v5329_v63 = vld [vmem:[#allocation17 + $0x2f8] sm:$0xff]   ;;  %v6297_v3 = vld [vmem:[#allocation14 + $0x30] sm:$0xff] }
 0x9fa   :  { %v5330_v40 = vld [vmem:[#allocation17 + $0x238] sm:$0xff]  }
 0x9fb   :  { %v5331_v2 = vld [vmem:[#allocation17 + $0x2b8] sm:$0xff]  }
 0x9fc   :  { %4867 = vmatpush3.bf16.msra.mxu0 %v5298_v22  ;;  %4889 = vmatpush3.bf16.msra.mxu1 %v5299_v23  ;;  %v2965_v22 = vld [vmem:[#allocation14 + $0x3e8] sm:$0xff]  ;;  %v4640_v23 = vcombine.low %v2958_v11, %v2960_v12 }
 0x9fd   :  { %3148 = vmatprep.subr.bf16.mxu0 %v4617_v24  ;;  %3191 = vmatprep.subr.bf16.mxu1 %v4619_v25  ;;  %v4642_v24 = vcombine.low %v2959_v1, %v2961_v13  ;;  %v4645_v25 = vcombine.high %v2962_v18, %v2964_v19  ;;  %v4647_v26 = vcombine.high %v2963_v20, %v2965_v22 }
 0x9fe   :  { %v4646_v30 = vcombine.low %v2963_v20, %v2965_v22 }
 0x9ff   :  { %2885 = vmatmul.mubr.bf16.vlgmr.msra.gmra.mrb[52].mxu0 %v6283_v21  ;;  %2926 = vmatmul.mubr.bf16.vlgmr.msra.gmra.mrb[52].mxu1 %v6285_v8  ;;  %v4624_v21 = vcombine.low %v2942_v42, %v2944_v17  ;;  %v4626_v8 = vcombine.low %v2943_v44, %v2945_v45  ;;  %v5305_v42 = vld [vmem:[#allocation17 + $0x2c8] sm:$0xff]   ;;  %v5308_v45 = vld [vmem:[#allocation17 + $0x250] sm:$0xff]  }
 0xa00   :  { %3149 = vmatpush1.bf16.msra.mxu0 %v4616_v33  ;;  %3192 = vmatpush1.bf16.msra.mxu1 %v4618_v34  ;;  %v5301_v33 = vld [vmem:[#allocation17 + $0x2c0] sm:$0xff]   ;;  %v5306_v17 = vld [vmem:[#allocation17 + $0x208] sm:$0xff]  }
 0xa01   :  { %3150 = vmatprep.subr.bf16.mxu0 %v4621_v32  ;;  %3193 = vmatprep.subr.bf16.mxu1 %v4623_v36  ;;  %v5302_v34 = vld [vmem:[#allocation17 + $0x200] sm:$0xff]   ;;  %v5304_v36 = vld [vmem:[#allocation17 + $0x248] sm:$0xff]  }
 0xa02   :  { %3180 = vmatprep.mubr.bf16.mxu0 %v5756_v28  ;;  %3223 = vmatprep.mubr.bf16.mxu1 %v5756_v28  ;;  %v5303_v32 = vld [vmem:[#allocation17 + $0x280] sm:$0xff]   ;;  %v5307_v44 = vld [vmem:[#allocation17 + $0x288] sm:$0xff]  }
 0xa04   :  { %3151 = vmatpush1.bf16.msra.mxu0 %v4620_v46  ;;  %3194 = vmatpush1.bf16.msra.mxu1 %v4622_v29  ;;  %v5309_v46 = vld [vmem:[#allocation17 + $0x2d0] sm:$0xff]  }
 0xa05   :  { %3152 = vmatprep.subr.bf16.mxu0 %v4625_v47  ;;  %3195 = vmatprep.subr.bf16.mxu1 %v4627_v48  ;;  %v5310_v29 = vld [vmem:[#allocation17 + $0x210] sm:$0xff]   ;;  %v5312_v48 = vld [vmem:[#allocation17 + $0x258] sm:$0xff]  }
 0xa06   :  { %v5311_v47 = vld [vmem:[#allocation17 + $0x290] sm:$0xff]  }
 0xa08   :  { %3153 = vmatpush1.bf16.msra.mxu0 %v4624_v21  ;;  %3196 = vmatpush1.bf16.msra.mxu1 %v4626_v8  ;;  %v5317_v21 = vld [vmem:[#allocation17 + $0x2e0] sm:$0xff]  }
 0xa09   :  { %3154 = vmatprep.subr.bf16.mxu0 %v4629_v52  ;;  %3197 = vmatprep.subr.bf16.mxu1 %v4631_v38  ;;  %v5318_v8 = vld [vmem:[#allocation17 + $0x220] sm:$0xff]   ;;  %v5320_v38 = vld [vmem:[#allocation17 + $0x268] sm:$0xff]  }
 0xa0a   :  { %v5319_v52 = vld [vmem:[#allocation17 + $0x2a0] sm:$0xff]  }
 0xa0c   :  { %3155 = vmatpush1.bf16.msra.mxu0 %v4628_v53  ;;  %3198 = vmatpush1.bf16.msra.mxu1 %v4630_v57  ;;  %v5325_v53 = vld [vmem:[#allocation17 + $0x2f0] sm:$0xff]  }
 0xa0d   :  { %3156 = vmatprep.subr.bf16.mxu0 %v4633_v58  ;;  %3199 = vmatprep.subr.bf16.mxu1 %v4635_v59  ;;  %v5326_v57 = vld [vmem:[#allocation17 + $0x230] sm:$0xff]   ;;  %v5328_v59 = vld [vmem:[#allocation17 + $0x278] sm:$0xff]  }
 0xa0e   :  { %v5327_v58 = vld [vmem:[#allocation17 + $0x2b0] sm:$0xff]  }
 0xa10   :  { %3157 = vmatpush1.bf16.msra.mxu0 %v4632_v5  ;;  %3200 = vmatpush1.bf16.msra.mxu1 %v4634_v9  ;;  %v6299_v5 = vld [vmem:[#allocation14 + $0x70] sm:$0xff]  ;;  %v6301_v9 = vld [vmem:[#allocation14 + $0x38] sm:$0xff] }
 0xa11   :  { %3158 = vmatprep.subr.bf16.mxu0 %v4637_v10  ;;  %3201 = vmatprep.subr.bf16.mxu1 %v4639_v4  ;;  %v4681_v10 = vcombine.high %v6297_v3, %v6299_v5  ;;  %v6305_v4 = vld [vmem:[#allocation14 + $0x78] sm:$0xff]  ;;  %v4680_v11 = vcombine.low %v6297_v3, %v6299_v5 }
 0xa12   :  { %v4682_v12 = vcombine.low %v6301_v9, %v6305_v4  ;;  %v4683_v1 = vcombine.high %v6301_v9, %v6305_v4 }
 0xa14   :  { %3159 = vmatpush1.bf16.msra.mxu0 %v4636_v6  ;;  %3202 = vmatpush1.bf16.msra.mxu1 %v4638_v14 }
 0xa15   :  { %3160 = vmatprep.subr.bf16.mxu0 %v4641_v15  ;;  %3203 = vmatprep.subr.bf16.mxu1 %v4643_v16 }
 0xa18   :  { %3161 = vmatpush1.bf16.msra.mxu0 %v4640_v23  ;;  %3204 = vmatpush1.bf16.msra.mxu1 %v4642_v24 }
 0xa19   :  { %3162 = vmatprep.subr.bf16.mxu0 %v4645_v25  ;;  %3205 = vmatprep.subr.bf16.mxu1 %v4647_v26 }
 0xa1c   :  { %3163 = vmatpush1.bf16.msra.mxu0 %v4644_v27  ;;  %3206 = vmatpush1.bf16.msra.mxu1 %v4646_v30 }
 0xa1d   :  { %4896 = vmatprep.subr.bf16.mxu0 %v5300_v31  ;;  %4918 = vmatprep.subr.bf16.mxu1 %v5301_v33 }
 0xa1f   :  { %3181 = vmatmul.mubr.bf16.vlgmr.msra.gmra.mrb[56].mxu0 %v6268_v62  ;;  %3224 = vmatmul.mubr.bf16.vlgmr.msra.gmra.mrb[56].mxu1 %v6268_v62 }
 0xa20   :  { %4897 = vmatpush3.bf16.msra.mxu0 %v5302_v34  ;;  %4919 = vmatpush3.bf16.msra.mxu1 %v5303_v32 }
 0xa21   :  { %4898 = vmatprep.subr.bf16.mxu0 %v5304_v36  ;;  %4920 = vmatprep.subr.bf16.mxu1 %v5305_v42 }
 0xa24   :  { %4899 = vmatpush3.bf16.msra.mxu0 %v5306_v17  ;;  %4921 = vmatpush3.bf16.msra.mxu1 %v5307_v44 }
 0xa25   :  { %4900 = vmatprep.subr.bf16.mxu0 %v5308_v45  ;;  %4922 = vmatprep.subr.bf16.mxu1 %v5309_v46 }
 0xa28   :  { %4901 = vmatpush3.bf16.msra.mxu0 %v5310_v29  ;;  %4923 = vmatpush3.bf16.msra.mxu1 %v5311_v47 }
 0xa29   :  { %4902 = vmatprep.subr.bf16.mxu0 %v5312_v48  ;;  %4924 = vmatprep.subr.bf16.mxu1 %v5313_v37 }
 0xa2c   :  { %4903 = vmatpush3.bf16.msra.mxu0 %v5314_v49  ;;  %4925 = vmatpush3.bf16.msra.mxu1 %v5315_v50  ;;  %v2966_v50 = vld [vmem:[#allocation16 + $0x8] sm:$0xf] }
 0xa2d   :  { %4904 = vmatprep.subr.bf16.mxu0 %v5316_v51  ;;  %4926 = vmatprep.subr.bf16.mxu1 %v5317_v21  ;;  %v2971_v51 = vrot.slane %v2966_v50, %v6059_v39  ;;  %v2979_v21 = vrot.slane %v2966_v50, %v6101_v7 }
 0xa30   :  { %4905 = vmatpush3.bf16.msra.mxu0 %v5318_v8  ;;  %4927 = vmatpush3.bf16.msra.mxu1 %v5319_v52  ;;  %v2975_v8 = vrot.slane %v2966_v50, %v6064_v41  ;;  %v2983_v52 = vrot.slane %v2966_v50, %v6277_v35  ;;  %v3598_v50 = vld [vmem:[#allocation14 + $0x1b0] sm:$0xff] }
 0xa31   :  { %4906 = vmatprep.subr.bf16.mxu0 %v5320_v38  ;;  %4928 = vmatprep.subr.bf16.mxu1 %v5321_v54 }
 0xa34   :  { %4907 = vmatpush3.bf16.msra.mxu0 %v5322_v55  ;;  %4929 = vmatpush3.bf16.msra.mxu1 %v5323_v43 }
 0xa35   :  { %4908 = vmatprep.subr.bf16.mxu0 %v5324_v56  ;;  %4930 = vmatprep.subr.bf16.mxu1 %v5325_v53 }
 0xa38   :  { %4909 = vmatpush3.bf16.msra.mxu0 %v5326_v57  ;;  %4931 = vmatpush3.bf16.msra.mxu1 %v5327_v58 }
 0xa39   :  { %4910 = vmatprep.subr.bf16.mxu0 %v5328_v59  ;;  %4932 = vmatprep.subr.bf16.mxu1 %v5329_v63 }
 0xa3c   :  { %4911 = vmatpush3.bf16.msra.mxu0 %v5330_v40  ;;  %4933 = vmatpush3.bf16.msra.mxu1 %v5331_v2 }
 0xa3d   :  { %3800 = vmatprep.subr.bf16.mxu0 %v4681_v10  ;;  %3843 = vmatprep.subr.bf16.mxu1 %v4683_v1 }
 0xab2   :  { %v4824_v13 = vpop.f32.mrb[48].mxu0  ;;  %v4846_v6 = vpop.f32.mrb[48].mxu1 }
 0xab3   :  { %v4825_v14 = vpop.f32.mrb[49].mxu0  ;;  %v4847_v15 = vpop.f32.mrb[49].mxu1 }
 0xab4   :  { %v4826_v16 = vadd.f32 %v4825_v14, %v4824_v13  ;;  %v4848_v18 = vadd.f32 %v4847_v15, %v4846_v6  ;;  %v4827_v19 = vpop.f32.mrb[50].mxu0  ;;  %v4849_v20 = vpop.f32.mrb[50].mxu1 }
 0xab5   :  { %v4828_v22 = vpop.f32.mrb[51].mxu0  ;;  %v4850_v23 = vpop.f32.mrb[51].mxu1 }
 0xab6   :  { %v2654_v24 = vadd.f32 %v4848_v18, %v4826_v16  ;;  %v4829_v25 = vadd.f32 %v4828_v22, %v4827_v19  ;;  %v4851_v26 = vadd.f32 %v4850_v23, %v4849_v20  ;;  %v3590_v19 = vld [vmem:[#allocation14 + $0xb0] sm:$0xff] }
 0xab7   :  { %v3592_v20 = vld [vmem:[#allocation14 + $0xf0] sm:$0xff] }
 0xab8   :  { %v2657_v27 = vadd.f32 %v4851_v26, %v4829_v25  ;;  %v3591_v26 = vld [vmem:[#allocation14 + $0xb8] sm:$0xff] }
 0xad2   :  { %v4868_v30 = vpop.f32.mrb[52].mxu0  ;;  %v4890_v31 = vpop.f32.mrb[52].mxu1 }
 0xad3   :  { %v4869_v33 = vpop.f32.mrb[53].mxu0  ;;  %v4891_v34 = vpop.f32.mrb[53].mxu1 }
 0xad4   :  { %v4870_v32 = vadd.f32 %v4869_v33, %v4868_v30  ;;  %v4892_v36 = vadd.f32 %v4891_v34, %v4890_v31  ;;  %v4871_v42 = vpop.f32.mrb[54].mxu0  ;;  %v4893_v17 = vpop.f32.mrb[54].mxu1 }
 0xad5   :  { %v4872_v44 = vpop.f32.mrb[55].mxu0  ;;  %v4894_v45 = vpop.f32.mrb[55].mxu1 }
 0xad6   :  { %v2887_v46 = vadd.f32 %v4870_v32, %v2654_v24  ;;  %v4873_v29 = vadd.f32 %v4872_v44, %v4871_v42  ;;  %v4895_v47 = vadd.f32 %v4894_v45, %v4893_v17  ;;  %v4685_v32 = vcombine.high %v3590_v19, %v3592_v20  ;;  %v3594_v42 = vld [vmem:[#allocation14 + $0x130] sm:$0xff]  ;;  %v3595_v44 = vld [vmem:[#allocation14 + $0x138] sm:$0xff] }
 0xad7   :  { %v3596_v17 = vld [vmem:[#allocation14 + $0x170] sm:$0xff]  ;;  %v3597_v45 = vld [vmem:[#allocation14 + $0x178] sm:$0xff] }
 0xad8   :  { %v6313_v48 = vadd.f32 %v4892_v36, %v2887_v46  ;;  %v2890_v37 = vadd.f32 %v4873_v29, %v2657_v27  ;;  %v3593_v27 = vld [vmem:[#allocation14 + $0xf8] sm:$0xff]  ;;  %v4684_v46 = vcombine.low %v3590_v19, %v3592_v20  ;;  %v4688_v3 = vcombine.low %v3594_v42, %v3596_v17  ;;  %v3614_v19 = vld [vmem:[#allocation14 + $0x3b0] sm:$0xff] }
 0xad9   :  { %v4687_v36 = vcombine.high %v3591_v26, %v3593_v27  ;;  %v4686_v29 = vcombine.low %v3591_v26, %v3593_v27  ;;  %v4690_v5 = vcombine.low %v3595_v44, %v3597_v45  ;;  %v3616_v20 = vld [vmem:[#allocation14 + $0x3f0] sm:$0xff] }
 0xada   :  { %v6315_v49 = vadd.f32 %v4895_v47, %v2890_v37  ;;  %v4689_v47 = vcombine.high %v3594_v42, %v3596_v17  ;;  %v4691_v37 = vcombine.high %v3595_v44, %v3597_v45  ;;  %v4709_v26 = vcombine.high %v3614_v19, %v3616_v20  ;;  %v5336_v42 = vld [vmem:[#allocation17 + $0x348] sm:$0xff]  }
 0xadb   :  { %v5337_v17 = vld [vmem:[#allocation17 + $0x3c8] sm:$0xff]  }
 0xadc   :  { %v5338_v44 = vld [vmem:[#allocation17 + $0x308] sm:$0xff]  }
 0xadd   :  { %v5339_v45 = vld [vmem:[#allocation17 + $0x388] sm:$0xff]  }
 0xaf2   :  { %v3182_v38 = vpop.f32.mrb[56].mxu0  ;;  %v3225_v54 = vpop.f32.mrb[56].mxu1 }
 0xaf3   :  { %v3183_v55 = vadd.f32 %v3182_v38, %v2971_v51  ;;  %v3226_v43 = vadd.f32 %v3225_v54, %v2979_v21  ;;  %v3184_v56 = vpop.f32.mrb[57].mxu0  ;;  %v3227_v53 = vpop.f32.mrb[57].mxu1  ;;  %v3605_v38 = vld [vmem:[#allocation14 + $0x278] sm:$0xff] }
 0xaf4   :  { %v3185_v57 = vadd.f32 %v3184_v56, %v2975_v8  ;;  %v3228_v58 = vadd.f32 %v3227_v53, %v2983_v52  ;;  %v3186_v59 = vpop.f32.mrb[58].mxu0  ;;  %v3229_v63 = vpop.f32.mrb[58].mxu1  ;;  %v3606_v56 = vld [vmem:[#allocation14 + $0x2b0] sm:$0xff] }
 0xaf5   :  { %v3187_v40 = vadd.f32 %v3186_v59, %v2971_v51  ;;  %v3230_v2 = vadd.f32 %v3229_v63, %v2979_v21  ;;  %v3188_v10 = vpop.f32.mrb[59].mxu0  ;;  %v3231_v1 = vpop.f32.mrb[59].mxu1  ;;  %v3234_v14 = vmax.f32 %v3183_v55, 0.0  ;;  %v3236_v15 = vmax.f32 %v3226_v43, 0.0  ;;  %v3600_v51 = vld [vmem:[#allocation14 + $0x1f0] sm:$0xff]  ;;  %v3599_v21 = vld [vmem:[#allocation14 + $0x1b8] sm:$0xff] }
 0xaf6   :  { %v3189_v13 = vadd.f32 %v3188_v10, %v2975_v8  ;;  %v3232_v6 = vadd.f32 %v3231_v1, %v2983_v52  ;;  %v3235_v22 = vmax.f32 %v3185_v57, 0.0  ;;  %v3237_v23 = vmax.f32 %v3228_v58, 0.0  ;;  %v3601_v8 = vld [vmem:[#allocation14 + $0x1f8] sm:$0xff]  ;;  %v3608_v53 = vld [vmem:[#allocation14 + $0x2f0] sm:$0xff] }
 0xaf7   :  { %v3238_v16 = vmax.f32 %v3187_v40, 0.0  ;;  %v3240_v18 = vmax.f32 %v3230_v2, 0.0  ;;  %v4693_v9 = vcombine.high %v3598_v50, %v3600_v51  ;;  %v4695_v4 = vcombine.high %v3599_v21, %v3601_v8  ;;  %v3603_v52 = vld [vmem:[#allocation14 + $0x238] sm:$0xff]  ;;  %v3610_v10 = vld [vmem:[#allocation14 + $0x330] sm:$0xff] }
 0xaf8   :  { %v3239_v24 = vmax.f32 %v3189_v13, 0.0  ;;  %v3241_v25 = vmax.f32 %v3232_v6, 0.0  ;;  %v4692_v54 = vcombine.low %v3598_v50, %v3600_v51  ;;  %v4694_v55 = vcombine.low %v3599_v21, %v3601_v8  ;;  %v3607_v57 = vld [vmem:[#allocation14 + $0x2b8] sm:$0xff]  ;;  %v3612_v1 = vld [vmem:[#allocation14 + $0x370] sm:$0xff]  ;;  %v5345_v50 = vld [vmem:[#allocation17 + $0x3d8] sm:$0xff]  }
 0xaf9   :  { %v3242_v30 = vpack.c.bf16 %v3238_v16, %v3234_v14  ;;  %v3244_v31 = vpack.c.bf16 %v3240_v18, %v3236_v15  ;;  %v3609_v58 = vld [vmem:[#allocation14 + $0x2f8] sm:$0xff]  ;;  %v4698_v63 = vcombine.low %v3603_v52, %v3605_v38  ;;  %v4701_v40 = vcombine.high %v3606_v56, %v3608_v53  ;;  %v5346_v51 = vld [vmem:[#allocation17 + $0x318] sm:$0xff]   ;;  %v5348_v8 = vld [vmem:[#allocation17 + $0x360] sm:$0xff]  }
 0xafa   :  { %v3243_v33 = vpack.c.bf16 %v3239_v24, %v3235_v22  ;;  %v3245_v34 = vpack.c.bf16 %v3241_v25, %v3237_v23  ;;  %v4703_v2 = vcombine.high %v3607_v57, %v3609_v58  ;;  %v3611_v13 = vld [vmem:[#allocation14 + $0x338] sm:$0xff]  ;;  %v4700_v14 = vcombine.low %v3606_v56, %v3608_v53  ;;  %v5347_v21 = vld [vmem:[#allocation17 + $0x398] sm:$0xff]  }
 0xafb   :  { %v3613_v6 = vld [vmem:[#allocation14 + $0x378] sm:$0xff]  ;;  %v4702_v15 = vcombine.low %v3607_v57, %v3609_v58  ;;  %v4705_v16 = vcombine.high %v3610_v10, %v3612_v1  ;;  %v4704_v24 = vcombine.low %v3610_v10, %v3612_v1  ;;  %v5361_v56 = vld [vmem:[#allocation17 + $0x3f8] sm:$0xff]  }
 0xafc   :  { %3534 = vmatprep.mubr.bf16.mxu0 %v3243_v33  ;;  %3575 = vmatprep.mubr.bf16.mxu1 %v3245_v34  ;;  %v4707_v18 = vcombine.high %v3611_v13, %v3613_v6  ;;  %v3615_v22 = vld [vmem:[#allocation14 + $0x3b8] sm:$0xff]  ;;  %v4706_v25 = vcombine.low %v3611_v13, %v3613_v6  ;;  %v5332_v33 = vld [vmem:[#allocation17 + $0x340] sm:$0xff]   ;;  %v5362_v53 = vld [vmem:[#allocation17 + $0x338] sm:$0xff]  }
 0xafd   :  { %3535 = vmatmul.mubr.bf16.vlgmr.msra.gmra.mrb[60].mxu0 %v3242_v30  ;;  %3576 = vmatmul.mubr.bf16.vlgmr.msra.gmra.mrb[60].mxu1 %v3244_v31  ;;  %v3617_v23 = vld [vmem:[#allocation14 + $0x3f8] sm:$0xff]  ;;  %v4708_v30 = vcombine.low %v3614_v19, %v3616_v20  ;;  %v5333_v34 = vld [vmem:[#allocation17 + $0x3c0] sm:$0xff]   ;;  %v5363_v57 = vld [vmem:[#allocation17 + $0x3b8] sm:$0xff]  }
 0xafe   :  { %3801 = vmatpush1.bf16.msra.mxu0 %v4680_v11  ;;  %3844 = vmatpush1.bf16.msra.mxu1 %v4682_v12  ;;  %v3602_v11 = vld [vmem:[#allocation14 + $0x230] sm:$0xff]  ;;  %v4711_v27 = vcombine.high %v3615_v22, %v3617_v23  ;;  %v4710_v31 = vcombine.low %v3615_v22, %v3617_v23  ;;  %v3618_v23 = vld [vmem:[#allocation16 + $0xc] sm:$0xf] }
 0xaff   :  { %3802 = vmatprep.subr.bf16.mxu0 %v4685_v32  ;;  %3845 = vmatprep.subr.bf16.mxu1 %v4687_v36  ;;  %v3604_v12 = vld [vmem:[#allocation14 + $0x270] sm:$0xff] }
 0xb00   :  { %3832 = vmatprep.mubr.bf16.mxu0 %v5756_v28  ;;  %3875 = vmatprep.mubr.bf16.mxu1 %v5756_v28  ;;  %v4697_v43 = vcombine.high %v3602_v11, %v3604_v12  ;;  %v4699_v28 = vcombine.high %v3603_v52, %v3605_v38  ;;  %v4696_v59 = vcombine.low %v3602_v11, %v3604_v12  ;;  %v5334_v32 = vld [vmem:[#allocation17 + $0x300] sm:$0xff]   ;;  %v5353_v11 = vld [vmem:[#allocation17 + $0x3e8] sm:$0xff]   ;;  %v5356_v38 = vld [vmem:[#allocation17 + $0x370] sm:$0xff]  }
 0xb01   :  { %v5335_v36 = vld [vmem:[#allocation17 + $0x380] sm:$0xff]   ;;  %v5354_v12 = vld [vmem:[#allocation17 + $0x328] sm:$0xff]  }
 0xb02   :  { %3803 = vmatpush1.bf16.msra.mxu0 %v4684_v46  ;;  %3846 = vmatpush1.bf16.msra.mxu1 %v4686_v29  ;;  %v5340_v46 = vld [vmem:[#allocation17 + $0x350] sm:$0xff]   ;;  %v5355_v52 = vld [vmem:[#allocation17 + $0x3a8] sm:$0xff]  }
 0xb03   :  { %3804 = vmatprep.subr.bf16.mxu0 %v4689_v47  ;;  %3847 = vmatprep.subr.bf16.mxu1 %v4691_v37  ;;  %v5341_v29 = vld [vmem:[#allocation17 + $0x3d0] sm:$0xff]   ;;  %v5344_v37 = vld [vmem:[#allocation17 + $0x358] sm:$0xff]  }
 0xb04   :  { %v5342_v47 = vld [vmem:[#allocation17 + $0x310] sm:$0xff]  }
 0xb06   :  { %3805 = vmatpush1.bf16.msra.mxu0 %v4688_v3  ;;  %3848 = vmatpush1.bf16.msra.mxu1 %v4690_v5  ;;  %v5349_v3 = vld [vmem:[#allocation17 + $0x3e0] sm:$0xff]  }
 0xb07   :  { %3806 = vmatprep.subr.bf16.mxu0 %v4693_v9  ;;  %3849 = vmatprep.subr.bf16.mxu1 %v4695_v4  ;;  %v5350_v5 = vld [vmem:[#allocation17 + $0x320] sm:$0xff]   ;;  %v5352_v4 = vld [vmem:[#allocation17 + $0x368] sm:$0xff]  }
 0xb08   :  { %v5351_v9 = vld [vmem:[#allocation17 + $0x3a0] sm:$0xff]  }
 0xb0a   :  { %3807 = vmatpush1.bf16.msra.mxu0 %v4692_v54  ;;  %3850 = vmatpush1.bf16.msra.mxu1 %v4694_v55  ;;  %v5357_v54 = vld [vmem:[#allocation17 + $0x3f0] sm:$0xff]  }
 0xb0b   :  { %3808 = vmatprep.subr.bf16.mxu0 %v4697_v43  ;;  %3851 = vmatprep.subr.bf16.mxu1 %v4699_v28  ;;  %v5358_v55 = vld [vmem:[#allocation17 + $0x330] sm:$0xff]   ;;  %v5360_v28 = vld [vmem:[#allocation17 + $0x378] sm:$0xff]  }
 0xb0c   :  { %v5359_v43 = vld [vmem:[#allocation17 + $0x3b0] sm:$0xff]  }
 0xb0e   :  { %3809 = vmatpush1.bf16.msra.mxu0 %v4696_v59  ;;  %3852 = vmatpush1.bf16.msra.mxu1 %v4698_v63 }
 0xb0f   :  { %3810 = vmatprep.subr.bf16.mxu0 %v4701_v40  ;;  %3853 = vmatprep.subr.bf16.mxu1 %v4703_v2 }
 0xb12   :  { %3811 = vmatpush1.bf16.msra.mxu0 %v4700_v14  ;;  %3854 = vmatpush1.bf16.msra.mxu1 %v4702_v15 }
 0xb13   :  { %3812 = vmatprep.subr.bf16.mxu0 %v4705_v16  ;;  %3855 = vmatprep.subr.bf16.mxu1 %v4707_v18 }
 0xb16   :  { %3813 = vmatpush1.bf16.msra.mxu0 %v4704_v24  ;;  %3856 = vmatpush1.bf16.msra.mxu1 %v4706_v25  ;;  %v3623_v24 = vrot.slane %v3618_v23, %v6059_v39  ;;  %v3631_v25 = vrot.slane %v3618_v23, %v6101_v7 }
 0xb17   :  { %3814 = vmatprep.subr.bf16.mxu0 %v4709_v26  ;;  %3857 = vmatprep.subr.bf16.mxu1 %v4711_v27  ;;  %v3627_v26 = vrot.slane %v3618_v23, %v6064_v41  ;;  %v3635_v27 = vrot.slane %v3618_v23, %v6277_v35 }
 0xb1a   :  { %3815 = vmatpush1.bf16.msra.mxu0 %v4708_v30  ;;  %3858 = vmatpush1.bf16.msra.mxu1 %v4710_v31 }
 0xb1b   :  { %4940 = vmatprep.subr.bf16.mxu0 %v5332_v33  ;;  %4962 = vmatprep.subr.bf16.mxu1 %v5333_v34 }
 0xb1d   :  { %3833 = vmatmul.mubr.bf16.vlgmr.msra.gmra.mrb[64].mxu0 %v6268_v62  ;;  %3876 = vmatmul.mubr.bf16.vlgmr.msra.gmra.mrb[64].mxu1 %v6268_v62  ;;  %v5343_v62 = vld [vmem:[#allocation17 + $0x390] sm:$0xff]  }
 0xb1e   :  { %4941 = vmatpush3.bf16.msra.mxu0 %v5334_v32  ;;  %4963 = vmatpush3.bf16.msra.mxu1 %v5335_v36 }
 0xb1f   :  { %4942 = vmatprep.subr.bf16.mxu0 %v5336_v42  ;;  %4964 = vmatprep.subr.bf16.mxu1 %v5337_v17 }
 0xb22   :  { %4943 = vmatpush3.bf16.msra.mxu0 %v5338_v44  ;;  %4965 = vmatpush3.bf16.msra.mxu1 %v5339_v45 }
 0xb23   :  { %4944 = vmatprep.subr.bf16.mxu0 %v5340_v46  ;;  %4966 = vmatprep.subr.bf16.mxu1 %v5341_v29 }
 0xb26   :  { %4945 = vmatpush3.bf16.msra.mxu0 %v5342_v47  ;;  %4967 = vmatpush3.bf16.msra.mxu1 %v5343_v62 }
 0xb27   :  { %4946 = vmatprep.subr.bf16.mxu0 %v5344_v37  ;;  %4968 = vmatprep.subr.bf16.mxu1 %v5345_v50 }
 0xb2a   :  { %4947 = vmatpush3.bf16.msra.mxu0 %v5346_v51  ;;  %4969 = vmatpush3.bf16.msra.mxu1 %v5347_v21 }
 0xb2b   :  { %4948 = vmatprep.subr.bf16.mxu0 %v5348_v8  ;;  %4970 = vmatprep.subr.bf16.mxu1 %v5349_v3 }
 0xb2e   :  { %4949 = vmatpush3.bf16.msra.mxu0 %v5350_v5  ;;  %4971 = vmatpush3.bf16.msra.mxu1 %v5351_v9 }
 0xb2f   :  { %4950 = vmatprep.subr.bf16.mxu0 %v5352_v4  ;;  %4972 = vmatprep.subr.bf16.mxu1 %v5353_v11 }
 0xb32   :  { %4951 = vmatpush3.bf16.msra.mxu0 %v5354_v12  ;;  %4973 = vmatpush3.bf16.msra.mxu1 %v5355_v52 }
 0xb33   :  { %4952 = vmatprep.subr.bf16.mxu0 %v5356_v38  ;;  %4974 = vmatprep.subr.bf16.mxu1 %v5357_v54 }
 0xb36   :  { %4953 = vmatpush3.bf16.msra.mxu0 %v5358_v55  ;;  %4975 = vmatpush3.bf16.msra.mxu1 %v5359_v43 }
 0xb37   :  { %4954 = vmatprep.subr.bf16.mxu0 %v5360_v28  ;;  %4976 = vmatprep.subr.bf16.mxu1 %v5361_v56 }
 0xb3a   :  { %4955 = vmatpush3.bf16.msra.mxu0 %v5362_v53  ;;  %4977 = vmatpush3.bf16.msra.mxu1 %v5363_v57 }
 0xb3b   :  { %5135 = vmatprep.subr.bf16.mxu0 %v5754_v0 }
 0xbd0   :  { %v4912_v58 = vpop.f32.mrb[60].mxu0  ;;  %v4934_v59 = vpop.f32.mrb[60].mxu1 }
 0xbd1   :  { %v4913_v63 = vpop.f32.mrb[61].mxu0  ;;  %v4935_v40 = vpop.f32.mrb[61].mxu1 }
 0xbd2   :  { %v4914_v2 = vadd.f32 %v4913_v63, %v4912_v58  ;;  %v4936_v10 = vadd.f32 %v4935_v40, %v4934_v59  ;;  %v4915_v1 = vpop.f32.mrb[62].mxu0  ;;  %v4937_v13 = vpop.f32.mrb[62].mxu1  ;;  %v4744_v59 = vld [vmem:[#allocation19] ss:$0 sm:$0xff] }
 0xbd3   :  { %v4916_v6 = vpop.f32.mrb[63].mxu0  ;;  %v4938_v14 = vpop.f32.mrb[63].mxu1 }
 0xbd4   :  { %v3578_v15 = vadd.f32 %v4936_v10, %v4914_v2  ;;  %v4917_v16 = vadd.f32 %v4916_v6, %v4915_v1  ;;  %v4939_v18 = vadd.f32 %v4938_v14, %v4937_v13 }
 0xbd6   :  { %v3584_v19 = vadd.f32 %v3578_v15, %v6313_v48  ;;  %v3581_v20 = vadd.f32 %v4939_v18, %v4917_v16 }
 0xbd8   :  { %v3585_v22 = vadd.f32 %v3581_v20, %v6315_v49 }
 0xbf0   :  { %v3834_v30 = vpop.f32.mrb[64].mxu0  ;;  %v3877_v31 = vpop.f32.mrb[64].mxu1 }
 0xbf1   :  { %v3835_v33 = vadd.f32 %v3834_v30, %v3623_v24  ;;  %v3878_v34 = vadd.f32 %v3877_v31, %v3631_v25  ;;  %v3836_v32 = vpop.f32.mrb[65].mxu0  ;;  %v3879_v36 = vpop.f32.mrb[65].mxu1  ;;  %v5370_v30 = vld [vmem:[%s6403_s15 + $0x30] sm:$0xff]   ;;  %v5371_v31 = vld [vmem:[%s6403_s15 + $0x38] sm:$0xff]  }
 0xbf2   :  { %v3837_v42 = vadd.f32 %v3836_v32, %v3627_v26  ;;  %v3880_v48 = vadd.f32 %v3879_v36, %v3635_v27  ;;  %v3838_v17 = vpop.f32.mrb[66].mxu0  ;;  %v3881_v44 = vpop.f32.mrb[66].mxu1 }
 0xbf3   :  { %v3839_v49 = vadd.f32 %v3838_v17, %v3623_v24  ;;  %v3882_v45 = vadd.f32 %v3881_v44, %v3631_v25  ;;  %v3840_v46 = vpop.f32.mrb[67].mxu0  ;;  %v3883_v39 = vpop.f32.mrb[67].mxu1  ;;  %v3886_v47 = vmax.f32 %v3835_v33, 0.0  ;;  %v3888_v41 = vmax.f32 %v3878_v34, 0.0  ;;  %v4745_v44 = vld [vmem:[#allocation20] ss:$0 sm:$0xff] }
 0xbf4   :  { %v3841_v29 = vadd.f32 %v3840_v46, %v3627_v26  ;;  %v3884_v7 = vadd.f32 %v3883_v39, %v3635_v27  ;;  %v3887_v37 = vmax.f32 %v3837_v42, 0.0  ;;  %v3889_v50 = vmax.f32 %v3880_v48, 0.0  ;;  %v5368_v26 = vld [vmem:[%s6403_s15 + $0x20] sm:$0xff]   ;;  %v5369_v27 = vld [vmem:[%s6403_s15 + $0x28] sm:$0xff]  }
 0xbf5   :  { %v3890_v62 = vmax.f32 %v3839_v49, 0.0  ;;  %v3892_v35 = vmax.f32 %v3882_v45, 0.0  ;;  %v4746_v46 = vld [vmem:[#allocation22] ss:$0 sm:$0xff] }
 0xbf6   :  { %v3891_v51 = vmax.f32 %v3841_v29, 0.0  ;;  %v3893_v21 = vmax.f32 %v3884_v7, 0.0 }
 0xbf7   :  { %v3894_v8 = vpack.c.bf16 %v3890_v62, %v3886_v47  ;;  %v3896_v3 = vpack.c.bf16 %v3892_v35, %v3888_v41 }
 0xbf8   :  { %v3895_v5 = vpack.c.bf16 %v3891_v51, %v3887_v37  ;;  %v3897_v9 = vpack.c.bf16 %v3893_v21, %v3889_v50 }
 0xbfa   :  { %4186 = vmatprep.mubr.bf16.mxu0 %v3895_v5  ;;  %4227 = vmatprep.mubr.bf16.mxu1 %v3897_v9 }
 0xbfb   :  { %4187 = vmatmul.mubr.bf16.vlgmr.msra.gmra.mrb[68].mxu0 %v3894_v8  ;;  %4228 = vmatmul.mubr.bf16.vlgmr.msra.gmra.mrb[68].mxu1 %v3896_v3  ;;  %v4747_v3 = vld [vmem:[%s6404_s16] ss:$0 sm:$0xff] }
 0xbfc   :  { %5151 = vmatprep.mubr.msk.bf16.mxu0 %vm5755_vm0, %v5754_v0 }
 0xcce   :  { %v4956_v4 = vpop.f32.mrb[68].mxu0  ;;  %v4978_v11 = vpop.f32.mrb[68].mxu1 }
 0xccf   :  { %v4957_v12 = vpop.f32.mrb[69].mxu0  ;;  %v4979_v52 = vpop.f32.mrb[69].mxu1 }
 0xcd0   :  { %v4958_v38 = vadd.f32 %v4957_v12, %v4956_v4  ;;  %v4980_v54 = vadd.f32 %v4979_v52, %v4978_v11  ;;  %v4959_v55 = vpop.f32.mrb[70].mxu0  ;;  %v4981_v43 = vpop.f32.mrb[70].mxu1 }
 0xcd1   :  { %v4960_v28 = vpop.f32.mrb[71].mxu0  ;;  %v4982_v56 = vpop.f32.mrb[71].mxu1 }
 0xcd2   :  { %v4230_v53 = vadd.f32 %v4980_v54, %v4958_v38  ;;  %v4961_v57 = vadd.f32 %v4960_v28, %v4959_v55  ;;  %v4983_v58 = vadd.f32 %v4982_v56, %v4981_v43 }
 0xcd4   :  { %v4236_v63 = vadd.f32 %v4230_v53, %v3584_v19  ;;  %v4233_v40 = vadd.f32 %v4983_v58, %v4961_v57  ;;  %v5364_v19 = vld [vmem:[%s6403_s15] sm:$0xff]  }
 0xcd5   :  { %5136 = vmatpush3.bf16.msra.mxu0 %v5364_v19 }
 0xcd6   :  { %v4237_v2 = vadd.f32 %v4233_v40, %v3585_v22  ;;  %v4245_v10 = vadd.f32 %v4744_v59, %v4236_v63  ;;  %5137 = vmatprep.subr.bf16.mxu0 %v5754_v0  ;;  %v5367_v22 = vld [vmem:[%s6403_s15 + $0x18] sm:$0xff]  }
 0xcd8   :  { %v4247_v1 = vadd.f32 %v4245_v10, %v6262_v60  ;;  %v4246_v13 = vadd.f32 %v4744_v59, %v4237_v2  ;;  %v5365_v60 = vld [vmem:[%s6403_s15 + $0x8] sm:$0xff]  }
 0xcd9   :  { %5138 = vmatpush3.bf16.msra.mxu0 %v5365_v60 }
 0xcda   :  { %4251 = vadd.xlane.f32.xlu0 %v4247_v1  ;;  %v4248_v6 = vadd.f32 %v4246_v13, %v6264_v61  ;;  %5139 = vmatprep.subr.bf16.mxu0 %v5754_v0  ;;  %v5366_v61 = vld [vmem:[%s6403_s15 + $0x10] sm:$0xff]  }
 0xcdc   :  { %4253 = vadd.xlane.f32.xlu1 %v4248_v6 }
 0xcdd   :  { %5140 = vmatpush3.bf16.msra.mxu0 %v5366_v61 }
 0xcde   :  { %5141 = vmatprep.subr.bf16.mxu0 %v5754_v0 }
 0xce1   :  { %5142 = vmatpush3.bf16.msra.mxu0 %v5367_v22 }
 0xce2   :  { %5143 = vmatprep.subr.bf16.mxu0 %v5754_v0 }
 0xce5   :  { %5144 = vmatpush3.bf16.msra.mxu0 %v5368_v26 }
 0xce6   :  { %5145 = vmatprep.subr.bf16.mxu0 %v5754_v0 }
 0xce9   :  { %5146 = vmatpush3.bf16.msra.mxu0 %v5369_v27 }
 0xcea   :  { %5147 = vmatprep.subr.bf16.mxu0 %v5754_v0 }
 0xced   :  { %5148 = vmatpush3.bf16.msra.mxu0 %v5370_v30 }
 0xcee   :  { %5149 = vmatprep.subr.bf16.mxu0 %v5754_v0 }
 0xcf1   :  { %5150 = vmatpush3.bf16.msra.mxu0 %v5371_v31 }
 0xd67   :  { %v4252_v14 = vpop.xlane.xlu0 %4251 }
 0xd68   :  { %v4255_v15 = vmul.f32 0.0078125, %v4252_v14 }
 0xd69   :  { %v4254_v16 = vpop.xlane.xlu1 %4253 }
 0xd6a   :  { %v4257_v18 = vsub.f32 %v4247_v1, %v4255_v15  ;;  %v4256_v20 = vmul.f32 0.0078125, %v4254_v16 }
 0xd6c   :  { %v4258_v23 = vsub.f32 %v4248_v6, %v4256_v20  ;;  %v4259_v24 = vmul.f32 %v4257_v18, %v4257_v18 }
 0xd6e   :  { %4261 = vadd.xlane.f32.xlu0 %v4259_v24  ;;  %v4260_v25 = vmul.f32 %v4258_v23, %v4258_v23 }
 0xd70   :  { %4263 = vadd.xlane.f32.xlu1 %v4260_v25 }
 0xdfb   :  { %v4262_v33 = vpop.xlane.xlu0 %4261 }
 0xdfc   :  { %v4265_v34 = vmul.f32 0.0078125, %v4262_v33 }
 0xdfd   :  { %v4264_v32 = vpop.xlane.xlu1 %4263 }
 0xdfe   :  { %v4267_v36 = vadd.f32 1e-05, %v4265_v34  ;;  %v4266_v42 = vmul.f32 0.0078125, %v4264_v32 }
 0xe00   :  { %5408 = vrsqrt.f32 %v4267_v36  ;;  %v4268_v48 = vadd.f32 1e-05, %v4266_v42 }
 0xe02   :  { %5410 = vrsqrt.f32 %v4268_v48 }
 0xe0a   :  { %v5409_v17 = vpop.eup %5408 }
 0xe0b   :  { %v4271_v49 = vmul.f32 %v5409_v17, %v4257_v18 }
 0xe0c   :  { %v5411_v45 = vpop.eup %5410 }
 0xe0d   :  { %v4279_v39 = vmul.f32 %v4745_v44, %v4271_v49  ;;  %v4272_v29 = vmul.f32 %v5411_v45, %v4258_v23 }
 0xe0f   :  { %v4280_v7 = vmul.f32 %v4745_v44, %v4272_v29  ;;  %v4287_v47 = vadd.f32 %v4746_v46, %v4279_v39 }
 0xe11   :  { %v4288_v41 = vadd.f32 %v4746_v46, %v4280_v7  ;;  %v4289_v0 = vpack.c.bf16 %v4287_v47, %v4287_v47 }
 0xe13   :  { %v4290_v62 = vpack.c.bf16 %v4288_v41, %v4288_v41  ;;  %v4316_v35 = vunpack.c.l.b16 %v4289_v0 }
 0xe15   :  { %v4317_v37 = vunpack.c.l.b16 %v4290_v62  ;;  %v4318_v50 = vrot.slane %v4316_v35, 7 }
 0xe17   :  { %v4319_v51 = vrot.slane %v4317_v37, 6 }
 0xe19   :  { %v4321_v21 = vsel %vm4320_vm7, %v4319_v51, %v4318_v50 }
 0xe1a   :  { %v4322_v8 = vpack.c.b16 %v4321_v21, %v4321_v21 }
 0xe1c   :  { %5152 = vmatmul.mubr.bf16.vlgmr.msra.gmra.mrb[72].mxu0 %v4322_v8 }
 0xeef   :  { %v4406_v5 = vpop.f32.mrb[72].mxu0 }
 0xef0   :  { %v4407_v9 = vadd.f32 %v4747_v3, %v4406_v5  ;;  %v5153_v4 = vpop.f32.mrb[73].mxu0 }
 0xef1   :  { %v4409_v11 = vpop.f32.mrb[74].mxu0 }
 0xef2   :  { %4412 = vst [vmem:[#allocation23] sm:$0x3] %v4407_v9  ;;  %v5154_v12 = vpop.f32.mrb[75].mxu0 }
 0xef3   :  { %5709 = shalt.err (!%p5706_p10)
}
 0xef4   :  { %s5710_s16 = scalar_lea.hbm %s6405_s17, 32 }
 0xef5   :  { %p5711_p11 = scmp.ne.s32.totalorder %s6405_s17, %s5710_s16  ;;  %p5714_p12 = scmp.lt.u32.totalorder %s5710_s16, %s6405_s17 }
 0xef7   :  { %p5716_p13 = pnand %p5714_p12, %p5711_p11 }
 0xef9   :  { %5719 = shalt.err (!%p5716_p13)
}
 0xefa   :  { %4422 = dma.vmem_to_hbm [thread:$0]  %s4420_s1, 32, %s6405_s17, [#allocation4]  }
 0xefb   :  { %5734 = dma.done.wait [#allocation4], 32  }
 0xefc   :  { %5735 = vsyncadd [#allocation4], 4294967264 }
 0xefd   :  { %4426 = vsyncpa [#allocation3], 1 }
 0xefe   :  { %4427 = vsyncpa [#allocation6], 1 }
 0xeff   :  { %4428 = vsyncpa [#allocation9], 1 }
 0xf00   :  { %4429 = vsyncpa [#allocation12], 1 }
 0xf01   :  { %4430 = vsyncpa [#allocation15], 1 }
 0xf02   :  { %4431 = vsyncpa [#allocation18], 1 }
 0xf03   :  { %4432 = vsyncpa [#allocation21], 1 }
 0xf04   :  { %4433 = vsyncpa [#allocation4], 1 }

</bundles_post_ra>
